<compile_context>
chip_gen: v6e
topology: v6e:2x2x1
jax: 0.10.0
libtpu: 0.0.40
codegen_flags: <defaults>
</compile_context>

<pallas_src>
import functools

import jax
import jax.numpy as jnp
from jax import lax
from jax.experimental import pallas as pl
from jax.experimental.pallas import tpu as pltpu


# ------------------------------------ kernel ------------------------------------

def bottleneck_kernel(x_ref, w1_ref, b1_ref, w2_ref, b2_ref, w3_ref, b3_ref,
                      out_ref, hp_ref, *, band):
    # x_ref  : (H, W, Cin)    bf16  -- one image, resident in VMEM
    # w1_ref : (Cin, P)       bf16  -- conv1 weight, BN1 scale folded in
    # w2_ref : (9, P, P)      bf16  -- conv2 weight per (dy, dx) tap, BN2 scale folded in
    # w3_ref : (P, Cout)      bf16  -- conv3 weight, BN3 scale folded in
    # b*_ref : (1, C)         f32   -- folded BN biases
    # out_ref: (H, W, Cout)   bf16
    # hp_ref : (H+2, W+2, P)  bf16  -- zero-bordered conv1 output (border == conv2 SAME padding)
    H, W, Cin = x_ref.shape
    Cout = out_ref.shape[-1]
    P = w1_ref.shape[1]
    n_bands = H // band

    # ---- zero hp borders (once per image; megacore-safe, cheap relative to whole-image work) --
    hp_ref[0:1, :, :] = jnp.zeros((1, W + 2, P), hp_ref.dtype)
    hp_ref[H + 1:H + 2, :, :] = jnp.zeros((1, W + 2, P), hp_ref.dtype)
    hp_ref[:, 0:1, :] = jnp.zeros((H + 2, 1, P), hp_ref.dtype)
    hp_ref[:, W + 1:W + 2, :] = jnp.zeros((H + 2, 1, P), hp_ref.dtype)

    # ---- conv1 (1x1) + folded BN1 + ReLU over the whole image (M = H*W, no halo recompute) ----
    h1 = jnp.dot(x_ref[...].reshape(H * W, Cin), w1_ref[...],
                 preferred_element_type=jnp.float32)
    h1 = jnp.maximum(h1 + b1_ref[...], 0.0)
    hp_ref[1:H + 1, 1:W + 1, :] = h1.reshape(H, W, P).astype(hp_ref.dtype)

    # ---- per-band conv2 (3x3) / conv3 (1x1) / residual / ReLU ---------------------------------
    def band_body(b, carry):
        r0 = pl.multiple_of(b * band, band)
        hs = hp_ref[pl.ds(r0, band + 2)]                 # (band+2, W+2, P) bf16, MXU-ready

        # conv2 as 9 accumulating matmuls (no 9x im2col buffer, no lane-axis concat)
        acc = None
        for dy in range(3):
            for dx in range(3):
                tap = hs[dy:dy + band, dx:dx + W, :].reshape(band * W, P)
                d = jnp.dot(tap, w2_ref[dy * 3 + dx],
                            preferred_element_type=jnp.float32)
                acc = d if acc is None else acc + d
        h2 = jnp.maximum(acc + b2_ref[...], 0.0)

        # conv3 (1x1) + folded BN3 + residual (identity read from VMEM-resident input) + ReLU
        h3 = jnp.dot(h2.astype(jnp.bfloat16), w3_ref[...],
                     preferred_element_type=jnp.float32) + b3_ref[...]
        identity = x_ref[pl.ds(r0, band)].reshape(band * W, Cin).astype(jnp.float32)
        out = jnp.maximum(h3 + identity, 0.0)
        out_ref[pl.ds(r0, band)] = out.reshape(band, W, Cout).astype(out_ref.dtype)
        return carry

    lax.fori_loop(0, n_bands, band_body, 0, unroll=True)


# ------------------------------------ wrapper -----------------------------------

def bottleneck_forward(x, params, *, band=8):
    """x: (N, H, W, Cin) bfloat16 NHWC. stride=1, downsample=None (Cin == 4*planes)."""
    N, H, W, Cin = x.shape
    w1, b1, w2, b2, w3, b3 = params
    P = w1.shape[1]
    Cout = w3.shape[1]
    assert Cout == Cin, "residual add (downsample=None) requires inplanes == 4*planes"
    assert H % band == 0, "H must be divisible by the row-band size"

    def const_spec(a):
        zeros = (0,) * a.ndim
        return pl.BlockSpec(a.shape, lambda n, _z=zeros: _z)

    flops = 2 * N * H * W * (Cin * P + 9 * P * P + P * Cout)
    bytes_accessed = (x.size + N * H * W * Cout) * 2 \
        + (w1.size + w2.size + w3.size) * 2 \
        + (b1.size + b2.size + b3.size) * 4

    # Explicit VMEM budget (v7x: 64 MiB physical / 32 MiB default scoped) with headroom.
    est = (2 * H * W * Cin * 2                       # double-buffered bf16 input block
           + 2 * H * W * Cout * 2                    # double-buffered bf16 output block
           + (Cin * P + 9 * P * P + P * Cout) * 2    # resident bf16 weights
           + (2 * P + Cout) * 4                      # f32 biases
           + (H + 2) * (W + 2) * P * 2               # hp scratch (bf16)
           + H * W * P * 4                           # conv1 f32 intermediate
           + band * W * (11 * P + 2 * Cout + Cin) * 4)  # per-band working set (generous)
    vmem_limit = int(min(64 * 1024 * 1024, max(8 * 1024 * 1024, 2 * est)))

    return pl.pallas_call(
        functools.partial(bottleneck_kernel, band=band),
        out_shape=jax.ShapeDtypeStruct((N, H, W, Cout), x.dtype),
        grid=(N,),
        in_specs=[
            pl.BlockSpec((None, H, W, Cin), lambda n: (n, 0, 0, 0)),
            const_spec(w1), const_spec(b1),
            const_spec(w2), const_spec(b2),
            const_spec(w3), const_spec(b3),
        ],
        out_specs=pl.BlockSpec((None, H, W, Cout), lambda n: (n, 0, 0, 0)),
        scratch_shapes=[pltpu.VMEM((H + 2, W + 2, P), jnp.bfloat16)],
        compiler_params=pltpu.CompilerParams(
            dimension_semantics=("parallel",),
            vmem_limit_bytes=vmem_limit),
        cost_estimate=pl.CostEstimate(flops=int(flops), transcendentals=0,
                                      bytes_accessed=int(bytes_accessed)),
    )(x, w1, b1, w2, b2, w3, b3)


# --------------------------- parameter construction -----------------------------

def kaiming_uniform(key, shape, fan_in):
    bound = jnp.sqrt(6.0 / fan_in)                 # gain=sqrt(2) for relu
    return jax.random.uniform(key, shape, jnp.float32, -bound, bound)


def make_raw_params(key, inplanes, planes):
    k1, k2, k3 = jax.random.split(key, 3)
    w1 = kaiming_uniform(k1, (inplanes, planes), fan_in=inplanes)         # 1x1: (Cin, P)
    w2 = kaiming_uniform(k2, (3, 3, planes, planes), fan_in=planes * 9)   # 3x3: HWIO
    w3 = kaiming_uniform(k3, (planes, planes * 4), fan_in=planes)         # 1x1: (P, 4P)

    def bn_params(c):
        r = jnp.arange(c, dtype=jnp.float32) / max(c, 1)
        gamma = 1.0 + 0.5 * r
        beta = 0.05 * r
        mean = 0.1 * r
        var = 1.0 + 0.2 * r
        return gamma, beta, mean, var

    return dict(w1=w1, w2=w2, w3=w3,
                bn1=bn_params(planes), bn2=bn_params(planes),
                bn3=bn_params(planes * 4))


def fold_params(raw, eps=1e-5):
    """Fold eval-mode BN into the conv weights (bf16 for the MXU) + f32 biases."""
    def fold(gamma, beta, mean, var):
        s = gamma / jnp.sqrt(var + eps)
        return s, beta - mean * s

    s1, b1 = fold(*raw['bn1'])
    s2, b2 = fold(*raw['bn2'])
    s3, b3 = fold(*raw['bn3'])
    P = raw['w1'].shape[1]
    w1f = (raw['w1'] * s1[None, :]).astype(jnp.bfloat16)
    w2f = (raw['w2'] * s2[None, None, None, :]).reshape(9, P, P).astype(jnp.bfloat16)
    w3f = (raw['w3'] * s3[None, :]).astype(jnp.bfloat16)
    return (w1f, b1.reshape(1, -1).astype(jnp.float32),
            w2f, b2.reshape(1, -1).astype(jnp.float32),
            w3f, b3.reshape(1, -1).astype(jnp.float32))


# ------------------------------ pure-JAX references ------------------------------

def reference_folded_bf16(x, params):
    """Same folded-BN / bf16-operand math as the kernel (tight comparison). x is bf16."""
    w1, b1, w2, b2, w3, b3 = params
    P = w1.shape[1]
    h = jnp.einsum('nhwc,cd->nhwd', x, w1, preferred_element_type=jnp.float32)
    h = jnp.maximum(h + b1.reshape(1, 1, 1, -1), 0.0).astype(jnp.bfloat16)
    h = lax.conv_general_dilated(h, w2.reshape(3, 3, P, P),
                                 window_strides=(1, 1), padding='SAME',
                                 dimension_numbers=('NHWC', 'HWIO', 'NHWC'),
                                 preferred_element_type=jnp.float32)
    h = jnp.maximum(h + b2.reshape(1, 1, 1, -1), 0.0).astype(jnp.bfloat16)
    h = jnp.einsum('nhwc,cd->nhwd', h, w3, preferred_element_type=jnp.float32) \
        + b3.reshape(1, 1, 1, -1)
    return jnp.maximum(h + x.astype(jnp.float32), 0.0)


def reference_f32(x, raw, eps=1e-5):
    """Unfolded eval-mode BN in full f32 (loose comparison, validates the fold). x is f32."""
    def bn(h, p):
        gamma, beta, mean, var = p
        return (h - mean) / jnp.sqrt(var + eps) * gamma + beta
    h = jnp.einsum('nhwc,cd->nhwd', x, raw['w1'])
    h = jnp.maximum(bn(h, raw['bn1']), 0.0)
    h = lax.conv_general_dilated(h, raw['w2'], window_strides=(1, 1), padding='SAME',
                                 dimension_numbers=('NHWC', 'HWIO', 'NHWC'))
    h = jnp.maximum(bn(h, raw['bn2']), 0.0)
    h = jnp.einsum('nhwc,cd->nhwd', h, raw['w3'])
    h = bn(h, raw['bn3'])
    return jnp.maximum(h + x, 0.0)


# ------------------------------------- main --------------------------------------

if __name__ == "__main__":
    key = jax.random.PRNGKey(0)
    kx, kp = jax.random.split(key)

    N, H, W = 2, 16, 16
    planes = 32
    inplanes = planes * 4          # 128 -> lane-dense input / conv3 output / residual

    x = jax.random.normal(kx, (N, H, W, inplanes), jnp.float32).astype(jnp.bfloat16)
    raw = make_raw_params(kp, inplanes, planes)
    params = fold_params(raw)

    out = jax.block_until_ready(bottleneck_forward(x, params, band=8))
    assert out.shape == (N, H, W, inplanes) and out.dtype == jnp.bfloat16
    out32 = out.astype(jnp.float32)

    # tight check against a reference using the same folded-BN / bf16-operand math
    ref16 = reference_folded_bf16(x, params)
    err16 = float(jnp.max(jnp.abs(out32 - ref16)))
    assert jnp.allclose(out32, ref16, atol=1e-1, rtol=5e-2), \
        f"max abs diff vs bf16 folded reference: {err16}"

    # loose check against the full-precision, unfolded BN math (bf16 rounding only)
    ref32 = reference_f32(x.astype(jnp.float32), raw)
    err32 = float(jnp.max(jnp.abs(out32 - ref32)))
    assert jnp.allclose(out32, ref32, atol=1.0, rtol=0.2), \
        f"max abs diff vs f32 reference: {err32}"

    print("KERNEL_OK")
</pallas_src>

<mosaic_0001>
module attributes {stable_mosaic.version = 11 : i64} {
  func.func @bottleneck_kernel(%arg0: i32, %arg1: memref<1x16x16x128xbf16, #tpu.memory_space<vmem>>, %arg2: memref<128x32xbf16, #tpu.memory_space<vmem>>, %arg3: memref<1x32xf32, #tpu.memory_space<vmem>>, %arg4: memref<9x32x32xbf16, #tpu.memory_space<vmem>>, %arg5: memref<1x32xf32, #tpu.memory_space<vmem>>, %arg6: memref<32x128xbf16, #tpu.memory_space<vmem>>, %arg7: memref<1x128xf32, #tpu.memory_space<vmem>>, %arg8: memref<1x16x16x128xbf16, #tpu.memory_space<vmem>>, %arg9: memref<18x18x32xbf16, #tpu.memory_space<vmem>>) attributes {dimension_semantics = [#tpu.dimension_semantics<parallel>], iteration_bounds = array<i64: 2>, scalar_prefetch = 0 : i64, scratch_operands = 1 : i64, tpu.core_type = #tpu.core_type<tc>, window_params = [{transform_indices = @transform_0, window_bounds = array<i64: 1, 16, 16, 128>}, {pipeline_mode = #tpu.pipeline_mode<synchronous>, transform_indices = @transform_1, window_bounds = array<i64: 128, 32>}, {pipeline_mode = #tpu.pipeline_mode<synchronous>, transform_indices = @transform_2, window_bounds = array<i64: 1, 32>}, {pipeline_mode = #tpu.pipeline_mode<synchronous>, transform_indices = @transform_3, window_bounds = array<i64: 9, 32, 32>}, {pipeline_mode = #tpu.pipeline_mode<synchronous>, transform_indices = @transform_4, window_bounds = array<i64: 1, 32>}, {pipeline_mode = #tpu.pipeline_mode<synchronous>, transform_indices = @transform_5, window_bounds = array<i64: 32, 128>}, {pipeline_mode = #tpu.pipeline_mode<synchronous>, transform_indices = @transform_6, window_bounds = array<i64: 1, 128>}, {transform_indices = @transform_7, window_bounds = array<i64: 1, 16, 16, 128>}]} {
    %cst = arith.constant 0.000000e+00 : bf16
    %0 = vector.broadcast %cst : bf16 to vector<1x18x32xbf16>
    %c0 = arith.constant 0 : index
    %c0_0 = arith.constant 0 : index
    %c0_1 = arith.constant 0 : index
    %1 = vector.load %arg9[%c0, %c0_0, %c0_1] : memref<18x18x32xbf16, #tpu.memory_space<vmem>>, vector<1x18x32xbf16>
    tpu.vector_store %arg9[%c0, %c0_0, %c0_1], %0 {strides = array<i32>} : memref<18x18x32xbf16, #tpu.memory_space<vmem>>, vector<1x18x32xbf16>,
    %cst_2 = arith.constant 0.000000e+00 : bf16
    %2 = vector.broadcast %cst_2 : bf16 to vector<1x18x32xbf16>
    %c17 = arith.constant 17 : index
    %c0_3 = arith.constant 0 : index
    %c0_4 = arith.constant 0 : index
    %3 = vector.load %arg9[%c17, %c0_3, %c0_4] : memref<18x18x32xbf16, #tpu.memory_space<vmem>>, vector<1x18x32xbf16>
    tpu.vector_store %arg9[%c17, %c0_3, %c0_4], %2 {strides = array<i32>} : memref<18x18x32xbf16, #tpu.memory_space<vmem>>, vector<1x18x32xbf16>,
    %cst_5 = arith.constant 0.000000e+00 : bf16
    %4 = vector.broadcast %cst_5 : bf16 to vector<18x1x32xbf16>
    %c0_6 = arith.constant 0 : index
    %c0_7 = arith.constant 0 : index
    %c0_8 = arith.constant 0 : index
    %5 = vector.load %arg9[%c0_6, %c0_7, %c0_8] : memref<18x18x32xbf16, #tpu.memory_space<vmem>>, vector<18x1x32xbf16>
    tpu.vector_store %arg9[%c0_6, %c0_7, %c0_8], %4 {strides = array<i32>} : memref<18x18x32xbf16, #tpu.memory_space<vmem>>, vector<18x1x32xbf16>,
    %cst_9 = arith.constant 0.000000e+00 : bf16
    %6 = vector.broadcast %cst_9 : bf16 to vector<18x1x32xbf16>
    %c0_10 = arith.constant 0 : index
    %c17_11 = arith.constant 17 : index
    %c0_12 = arith.constant 0 : index
    %7 = vector.load %arg9[%c0_10, %c17_11, %c0_12] : memref<18x18x32xbf16, #tpu.memory_space<vmem>>, vector<18x1x32xbf16>
    tpu.vector_store %arg9[%c0_10, %c17_11, %c0_12], %6 {strides = array<i32>} : memref<18x18x32xbf16, #tpu.memory_space<vmem>>, vector<18x1x32xbf16>,
    %c0_13 = arith.constant 0 : index
    %c0_14 = arith.constant 0 : index
    %c0_15 = arith.constant 0 : index
    %c0_16 = arith.constant 0 : index
    %8 = vector.load %arg1[%c0_13, %c0_14, %c0_15, %c0_16] : memref<1x16x16x128xbf16, #tpu.memory_space<vmem>>, vector<1x16x16x128xbf16>
    %9 = vector.shape_cast %8 : vector<1x16x16x128xbf16> to vector<16x16x128xbf16>
    %10 = vector.shape_cast %9 : vector<16x16x128xbf16> to vector<256x128xbf16>
    %c0_17 = arith.constant 0 : index
    %c0_18 = arith.constant 0 : index
    %11 = vector.load %arg2[%c0_17, %c0_18] : memref<128x32xbf16, #tpu.memory_space<vmem>>, vector<128x32xbf16>
    %cst_19 = arith.constant dense<0.000000e+00> : vector<256x32xf32>
    %12 = tpu.matmul %10, %11, %cst_19 {dimension_numbers = #tpu.dot_dimension_numbers<[1], [0], [0], [1], [0, 0, 1, 1], [], []>} : vector<256x128xbf16>, vector<128x32xbf16>, vector<256x32xf32> -> vector<256x32xf32>
    %c0_20 = arith.constant 0 : index
    %c0_21 = arith.constant 0 : index
    %13 = vector.load %arg3[%c0_20, %c0_21] : memref<1x32xf32, #tpu.memory_space<vmem>>, vector<1x32xf32>
    %14 = vector.broadcast %13 : vector<1x32xf32> to vector<256x32xf32>
    %15 = arith.addf %12, %14 : vector<256x32xf32>
    %cst_22 = arith.constant 0.000000e+00 : f32
    %16 = vector.broadcast %cst_22 : f32 to vector<256x32xf32>
    %17 = arith.maximumf %15, %16 : vector<256x32xf32>
    %18 = vector.shape_cast %17 : vector<256x32xf32> to vector<16x16x32xf32>
    %19 = arith.truncf %18 : vector<16x16x32xf32> to vector<16x16x32xbf16>
    %c1 = arith.constant 1 : index
    %c1_23 = arith.constant 1 : index
    %c0_24 = arith.constant 0 : index
    %20 = vector.load %arg9[%c1, %c1_23, %c0_24] : memref<18x18x32xbf16, #tpu.memory_space<vmem>>, vector<16x16x32xbf16>
    tpu.vector_store %arg9[%c1, %c1_23, %c0_24], %19 {strides = array<i32>} : memref<18x18x32xbf16, #tpu.memory_space<vmem>>, vector<16x16x32xbf16>,
    %c0_i32 = arith.constant 0 : i32
    %c8_i32 = arith.constant 8 : i32
    %21 = arith.muli %c0_i32, %c8_i32 : i32
    %22 = tpu.assume_multiple %21, 8 : i32
    %23 = arith.index_cast %22 : i32 to index
    %c0_25 = arith.constant 0 : index
    %c0_26 = arith.constant 0 : index
    %24 = vector.load %arg9[%23, %c0_25, %c0_26] : memref<18x18x32xbf16, #tpu.memory_space<vmem>>, vector<10x18x32xbf16>
    %25 = vector.extract_strided_slice %24 {offsets = [0, 0, 0], sizes = [8, 16, 32], strides = [1, 1, 1]} : vector<10x18x32xbf16> to vector<8x16x32xbf16>
    %26 = vector.shape_cast %25 : vector<8x16x32xbf16> to vector<128x32xbf16>
    %c0_27 = arith.constant 0 : index
    %c0_28 = arith.constant 0 : index
    %c0_29 = arith.constant 0 : index
    %27 = vector.load %arg4[%c0_27, %c0_28, %c0_29] : memref<9x32x32xbf16, #tpu.memory_space<vmem>>, vector<1x32x32xbf16>
    %28 = vector.shape_cast %27 : vector<1x32x32xbf16> to vector<32x32xbf16>
    %cst_30 = arith.constant dense<0.000000e+00> : vector<128x32xf32>
    %29 = tpu.matmul %26, %28, %cst_30 {dimension_numbers = #tpu.dot_dimension_numbers<[1], [0], [0], [1], [0, 0, 1, 1], [], []>} : vector<128x32xbf16>, vector<32x32xbf16>, vector<128x32xf32> -> vector<128x32xf32>
    %30 = vector.extract_strided_slice %24 {offsets = [0, 1, 0], sizes = [8, 16, 32], strides = [1, 1, 1]} : vector<10x18x32xbf16> to vector<8x16x32xbf16>
    %31 = vector.shape_cast %30 : vector<8x16x32xbf16> to vector<128x32xbf16>
    %c1_31 = arith.constant 1 : index
    %c0_32 = arith.constant 0 : index
    %c0_33 = arith.constant 0 : index
    %32 = vector.load %arg4[%c1_31, %c0_32, %c0_33] : memref<9x32x32xbf16, #tpu.memory_space<vmem>>, vector<1x32x32xbf16>
    %33 = vector.shape_cast %32 : vector<1x32x32xbf16> to vector<32x32xbf16>
    %cst_34 = arith.constant dense<0.000000e+00> : vector<128x32xf32>
    %34 = tpu.matmul %31, %33, %cst_34 {dimension_numbers = #tpu.dot_dimension_numbers<[1], [0], [0], [1], [0, 0, 1, 1], [], []>} : vector<128x32xbf16>, vector<32x32xbf16>, vector<128x32xf32> -> vector<128x32xf32>
    %35 = arith.addf %29, %34 : vector<128x32xf32>
    %36 = vector.extract_strided_slice %24 {offsets = [0, 2, 0], sizes = [8, 16, 32], strides = [1, 1, 1]} : vector<10x18x32xbf16> to vector<8x16x32xbf16>
    %37 = vector.shape_cast %36 : vector<8x16x32xbf16> to vector<128x32xbf16>
    %c2 = arith.constant 2 : index
    %c0_35 = arith.constant 0 : index
    %c0_36 = arith.constant 0 : index
    %38 = vector.load %arg4[%c2, %c0_35, %c0_36] : memref<9x32x32xbf16, #tpu.memory_space<vmem>>, vector<1x32x32xbf16>
    %39 = vector.shape_cast %38 : vector<1x32x32xbf16> to vector<32x32xbf16>
    %cst_37 = arith.constant dense<0.000000e+00> : vector<128x32xf32>
    %40 = tpu.matmul %37, %39, %cst_37 {dimension_numbers = #tpu.dot_dimension_numbers<[1], [0], [0], [1], [0, 0, 1, 1], [], []>} : vector<128x32xbf16>, vector<32x32xbf16>, vector<128x32xf32> -> vector<128x32xf32>
    %41 = arith.addf %35, %40 : vector<128x32xf32>
    %42 = vector.extract_strided_slice %24 {offsets = [1, 0, 0], sizes = [8, 16, 32], strides = [1, 1, 1]} : vector<10x18x32xbf16> to vector<8x16x32xbf16>
    %43 = vector.shape_cast %42 : vector<8x16x32xbf16> to vector<128x32xbf16>
    %c3 = arith.constant 3 : index
    %c0_38 = arith.constant 0 : index
    %c0_39 = arith.constant 0 : index
    %44 = vector.load %arg4[%c3, %c0_38, %c0_39] : memref<9x32x32xbf16, #tpu.memory_space<vmem>>, vector<1x32x32xbf16>
    %45 = vector.shape_cast %44 : vector<1x32x32xbf16> to vector<32x32xbf16>
    %cst_40 = arith.constant dense<0.000000e+00> : vector<128x32xf32>
    %46 = tpu.matmul %43, %45, %cst_40 {dimension_numbers = #tpu.dot_dimension_numbers<[1], [0], [0], [1], [0, 0, 1, 1], [], []>} : vector<128x32xbf16>, vector<32x32xbf16>, vector<128x32xf32> -> vector<128x32xf32>
    %47 = arith.addf %41, %46 : vector<128x32xf32>
    %48 = vector.extract_strided_slice %24 {offsets = [1, 1, 0], sizes = [8, 16, 32], strides = [1, 1, 1]} : vector<10x18x32xbf16> to vector<8x16x32xbf16>
    %49 = vector.shape_cast %48 : vector<8x16x32xbf16> to vector<128x32xbf16>
    %c4 = arith.constant 4 : index
    %c0_41 = arith.constant 0 : index
    %c0_42 = arith.constant 0 : index
    %50 = vector.load %arg4[%c4, %c0_41, %c0_42] : memref<9x32x32xbf16, #tpu.memory_space<vmem>>, vector<1x32x32xbf16>
    %51 = vector.shape_cast %50 : vector<1x32x32xbf16> to vector<32x32xbf16>
    %cst_43 = arith.constant dense<0.000000e+00> : vector<128x32xf32>
    %52 = tpu.matmul %49, %51, %cst_43 {dimension_numbers = #tpu.dot_dimension_numbers<[1], [0], [0], [1], [0, 0, 1, 1], [], []>} : vector<128x32xbf16>, vector<32x32xbf16>, vector<128x32xf32> -> vector<128x32xf32>
    %53 = arith.addf %47, %52 : vector<128x32xf32>
    %54 = vector.extract_strided_slice %24 {offsets = [1, 2, 0], sizes = [8, 16, 32], strides = [1, 1, 1]} : vector<10x18x32xbf16> to vector<8x16x32xbf16>
    %55 = vector.shape_cast %54 : vector<8x16x32xbf16> to vector<128x32xbf16>
    %c5 = arith.constant 5 : index
    %c0_44 = arith.constant 0 : index
    %c0_45 = arith.constant 0 : index
    %56 = vector.load %arg4[%c5, %c0_44, %c0_45] : memref<9x32x32xbf16, #tpu.memory_space<vmem>>, vector<1x32x32xbf16>
    %57 = vector.shape_cast %56 : vector<1x32x32xbf16> to vector<32x32xbf16>
    %cst_46 = arith.constant dense<0.000000e+00> : vector<128x32xf32>
    %58 = tpu.matmul %55, %57, %cst_46 {dimension_numbers = #tpu.dot_dimension_numbers<[1], [0], [0], [1], [0, 0, 1, 1], [], []>} : vector<128x32xbf16>, vector<32x32xbf16>, vector<128x32xf32> -> vector<128x32xf32>
    %59 = arith.addf %53, %58 : vector<128x32xf32>
    %60 = vector.extract_strided_slice %24 {offsets = [2, 0, 0], sizes = [8, 16, 32], strides = [1, 1, 1]} : vector<10x18x32xbf16> to vector<8x16x32xbf16>
    %61 = vector.shape_cast %60 : vector<8x16x32xbf16> to vector<128x32xbf16>
    %c6 = arith.constant 6 : index
    %c0_47 = arith.constant 0 : index
    %c0_48 = arith.constant 0 : index
    %62 = vector.load %arg4[%c6, %c0_47, %c0_48] : memref<9x32x32xbf16, #tpu.memory_space<vmem>>, vector<1x32x32xbf16>
    %63 = vector.shape_cast %62 : vector<1x32x32xbf16> to vector<32x32xbf16>
    %cst_49 = arith.constant dense<0.000000e+00> : vector<128x32xf32>
    %64 = tpu.matmul %61, %63, %cst_49 {dimension_numbers = #tpu.dot_dimension_numbers<[1], [0], [0], [1], [0, 0, 1, 1], [], []>} : vector<128x32xbf16>, vector<32x32xbf16>, vector<128x32xf32> -> vector<128x32xf32>
    %65 = arith.addf %59, %64 : vector<128x32xf32>
    %66 = vector.extract_strided_slice %24 {offsets = [2, 1, 0], sizes = [8, 16, 32], strides = [1, 1, 1]} : vector<10x18x32xbf16> to vector<8x16x32xbf16>
    %67 = vector.shape_cast %66 : vector<8x16x32xbf16> to vector<128x32xbf16>
    %c7 = arith.constant 7 : index
    %c0_50 = arith.constant 0 : index
    %c0_51 = arith.constant 0 : index
    %68 = vector.load %arg4[%c7, %c0_50, %c0_51] : memref<9x32x32xbf16, #tpu.memory_space<vmem>>, vector<1x32x32xbf16>
    %69 = vector.shape_cast %68 : vector<1x32x32xbf16> to vector<32x32xbf16>
    %cst_52 = arith.constant dense<0.000000e+00> : vector<128x32xf32>
    %70 = tpu.matmul %67, %69, %cst_52 {dimension_numbers = #tpu.dot_dimension_numbers<[1], [0], [0], [1], [0, 0, 1, 1], [], []>} : vector<128x32xbf16>, vector<32x32xbf16>, vector<128x32xf32> -> vector<128x32xf32>
    %71 = arith.addf %65, %70 : vector<128x32xf32>
    %72 = vector.extract_strided_slice %24 {offsets = [2, 2, 0], sizes = [8, 16, 32], strides = [1, 1, 1]} : vector<10x18x32xbf16> to vector<8x16x32xbf16>
    %73 = vector.shape_cast %72 : vector<8x16x32xbf16> to vector<128x32xbf16>
    %c8 = arith.constant 8 : index
    %c0_53 = arith.constant 0 : index
    %c0_54 = arith.constant 0 : index
    %74 = vector.load %arg4[%c8, %c0_53, %c0_54] : memref<9x32x32xbf16, #tpu.memory_space<vmem>>, vector<1x32x32xbf16>
    %75 = vector.shape_cast %74 : vector<1x32x32xbf16> to vector<32x32xbf16>
    %cst_55 = arith.constant dense<0.000000e+00> : vector<128x32xf32>
    %76 = tpu.matmul %73, %75, %cst_55 {dimension_numbers = #tpu.dot_dimension_numbers<[1], [0], [0], [1], [0, 0, 1, 1], [], []>} : vector<128x32xbf16>, vector<32x32xbf16>, vector<128x32xf32> -> vector<128x32xf32>
    %77 = arith.addf %71, %76 : vector<128x32xf32>
    %c0_56 = arith.constant 0 : index
    %c0_57 = arith.constant 0 : index
    %78 = vector.load %arg5[%c0_56, %c0_57] : memref<1x32xf32, #tpu.memory_space<vmem>>, vector<1x32xf32>
    %79 = vector.broadcast %78 : vector<1x32xf32> to vector<128x32xf32>
    %80 = arith.addf %77, %79 : vector<128x32xf32>
    %cst_58 = arith.constant 0.000000e+00 : f32
    %81 = vector.broadcast %cst_58 : f32 to vector<128x32xf32>
    %82 = arith.maximumf %80, %81 : vector<128x32xf32>
    %83 = arith.truncf %82 : vector<128x32xf32> to vector<128x32xbf16>
    %c0_59 = arith.constant 0 : index
    %c0_60 = arith.constant 0 : index
    %84 = vector.load %arg6[%c0_59, %c0_60] : memref<32x128xbf16, #tpu.memory_space<vmem>>, vector<32x128xbf16>
    %cst_61 = arith.constant dense<0.000000e+00> : vector<128x128xf32>
    %85 = tpu.matmul %83, %84, %cst_61 {dimension_numbers = #tpu.dot_dimension_numbers<[1], [0], [0], [1], [0, 0, 1, 1], [], []>} : vector<128x32xbf16>, vector<32x128xbf16>, vector<128x128xf32> -> vector<128x128xf32>
    %c0_62 = arith.constant 0 : index
    %c0_63 = arith.constant 0 : index
    %86 = vector.load %arg7[%c0_62, %c0_63] : memref<1x128xf32, #tpu.memory_space<vmem>>, vector<1x128xf32>
    %87 = vector.broadcast %86 : vector<1x128xf32> to vector<128x128xf32>
    %88 = arith.addf %85, %87 : vector<128x128xf32>
    %c0_64 = arith.constant 0 : index
    %89 = arith.index_cast %22 : i32 to index
    %c0_65 = arith.constant 0 : index
    %c0_66 = arith.constant 0 : index
    %90 = vector.load %arg1[%c0_64, %89, %c0_65, %c0_66] : memref<1x16x16x128xbf16, #tpu.memory_space<vmem>>, vector<1x8x16x128xbf16>
    %91 = vector.shape_cast %90 : vector<1x8x16x128xbf16> to vector<8x16x128xbf16>
    %92 = vector.shape_cast %91 : vector<8x16x128xbf16> to vector<128x128xbf16>
    %93 = arith.extf %92 : vector<128x128xbf16> to vector<128x128xf32>
    %94 = arith.addf %88, %93 : vector<128x128xf32>
    %cst_67 = arith.constant 0.000000e+00 : f32
    %95 = vector.broadcast %cst_67 : f32 to vector<128x128xf32>
    %96 = arith.maximumf %94, %95 : vector<128x128xf32>
    %97 = vector.shape_cast %96 : vector<128x128xf32> to vector<8x16x128xf32>
    %98 = arith.truncf %97 : vector<8x16x128xf32> to vector<8x16x128xbf16>
    %c0_68 = arith.constant 0 : index
    %99 = arith.index_cast %22 : i32 to index
    %c0_69 = arith.constant 0 : index
    %c0_70 = arith.constant 0 : index
    %100 = vector.load %arg8[%c0_68, %99, %c0_69, %c0_70] : memref<1x16x16x128xbf16, #tpu.memory_space<vmem>>, vector<1x8x16x128xbf16>
    %101 = vector.shape_cast %100 : vector<1x8x16x128xbf16> to vector<8x16x128xbf16>
    %102 = vector.shape_cast %98 : vector<8x16x128xbf16> to vector<1x8x16x128xbf16>
    tpu.vector_store %arg8[%c0_68, %99, %c0_69, %c0_70], %102 {strides = array<i32>} : memref<1x16x16x128xbf16, #tpu.memory_space<vmem>>, vector<1x8x16x128xbf16>,
    %c1_i32 = arith.constant 1 : i32
    %c8_i32_71 = arith.constant 8 : i32
    %103 = arith.muli %c1_i32, %c8_i32_71 : i32
    %104 = tpu.assume_multiple %103, 8 : i32
    %105 = arith.index_cast %104 : i32 to index
    %c0_72 = arith.constant 0 : index
    %c0_73 = arith.constant 0 : index
    %106 = vector.load %arg9[%105, %c0_72, %c0_73] : memref<18x18x32xbf16, #tpu.memory_space<vmem>>, vector<10x18x32xbf16>
    %107 = vector.extract_strided_slice %106 {offsets = [0, 0, 0], sizes = [8, 16, 32], strides = [1, 1, 1]} : vector<10x18x32xbf16> to vector<8x16x32xbf16>
    %108 = vector.shape_cast %107 : vector<8x16x32xbf16> to vector<128x32xbf16>
    %c0_74 = arith.constant 0 : index
    %c0_75 = arith.constant 0 : index
    %c0_76 = arith.constant 0 : index
    %109 = vector.load %arg4[%c0_74, %c0_75, %c0_76] : memref<9x32x32xbf16, #tpu.memory_space<vmem>>, vector<1x32x32xbf16>
    %110 = vector.shape_cast %109 : vector<1x32x32xbf16> to vector<32x32xbf16>
    %cst_77 = arith.constant dense<0.000000e+00> : vector<128x32xf32>
    %111 = tpu.matmul %108, %110, %cst_77 {dimension_numbers = #tpu.dot_dimension_numbers<[1], [0], [0], [1], [0, 0, 1, 1], [], []>} : vector<128x32xbf16>, vector<32x32xbf16>, vector<128x32xf32> -> vector<128x32xf32>
    %112 = vector.extract_strided_slice %106 {offsets = [0, 1, 0], sizes = [8, 16, 32], strides = [1, 1, 1]} : vector<10x18x32xbf16> to vector<8x16x32xbf16>
    %113 = vector.shape_cast %112 : vector<8x16x32xbf16> to vector<128x32xbf16>
    %c1_78 = arith.constant 1 : index
    %c0_79 = arith.constant 0 : index
    %c0_80 = arith.constant 0 : index
    %114 = vector.load %arg4[%c1_78, %c0_79, %c0_80] : memref<9x32x32xbf16, #tpu.memory_space<vmem>>, vector<1x32x32xbf16>
    %115 = vector.shape_cast %114 : vector<1x32x32xbf16> to vector<32x32xbf16>
    %cst_81 = arith.constant dense<0.000000e+00> : vector<128x32xf32>
    %116 = tpu.matmul %113, %115, %cst_81 {dimension_numbers = #tpu.dot_dimension_numbers<[1], [0], [0], [1], [0, 0, 1, 1], [], []>} : vector<128x32xbf16>, vector<32x32xbf16>, vector<128x32xf32> -> vector<128x32xf32>
    %117 = arith.addf %111, %116 : vector<128x32xf32>
    %118 = vector.extract_strided_slice %106 {offsets = [0, 2, 0], sizes = [8, 16, 32], strides = [1, 1, 1]} : vector<10x18x32xbf16> to vector<8x16x32xbf16>
    %119 = vector.shape_cast %118 : vector<8x16x32xbf16> to vector<128x32xbf16>
    %c2_82 = arith.constant 2 : index
    %c0_83 = arith.constant 0 : index
    %c0_84 = arith.constant 0 : index
    %120 = vector.load %arg4[%c2_82, %c0_83, %c0_84] : memref<9x32x32xbf16, #tpu.memory_space<vmem>>, vector<1x32x32xbf16>
    %121 = vector.shape_cast %120 : vector<1x32x32xbf16> to vector<32x32xbf16>
    %cst_85 = arith.constant dense<0.000000e+00> : vector<128x32xf32>
    %122 = tpu.matmul %119, %121, %cst_85 {dimension_numbers = #tpu.dot_dimension_numbers<[1], [0], [0], [1], [0, 0, 1, 1], [], []>} : vector<128x32xbf16>, vector<32x32xbf16>, vector<128x32xf32> -> vector<128x32xf32>
    %123 = arith.addf %117, %122 : vector<128x32xf32>
    %124 = vector.extract_strided_slice %106 {offsets = [1, 0, 0], sizes = [8, 16, 32], strides = [1, 1, 1]} : vector<10x18x32xbf16> to vector<8x16x32xbf16>
    %125 = vector.shape_cast %124 : vector<8x16x32xbf16> to vector<128x32xbf16>
    %c3_86 = arith.constant 3 : index
    %c0_87 = arith.constant 0 : index
    %c0_88 = arith.constant 0 : index
    %126 = vector.load %arg4[%c3_86, %c0_87, %c0_88] : memref<9x32x32xbf16, #tpu.memory_space<vmem>>, vector<1x32x32xbf16>
    %127 = vector.shape_cast %126 : vector<1x32x32xbf16> to vector<32x32xbf16>
    %cst_89 = arith.constant dense<0.000000e+00> : vector<128x32xf32>
    %128 = tpu.matmul %125, %127, %cst_89 {dimension_numbers = #tpu.dot_dimension_numbers<[1], [0], [0], [1], [0, 0, 1, 1], [], []>} : vector<128x32xbf16>, vector<32x32xbf16>, vector<128x32xf32> -> vector<128x32xf32>
    %129 = arith.addf %123, %128 : vector<128x32xf32>
    %130 = vector.extract_strided_slice %106 {offsets = [1, 1, 0], sizes = [8, 16, 32], strides = [1, 1, 1]} : vector<10x18x32xbf16> to vector<8x16x32xbf16>
    %131 = vector.shape_cast %130 : vector<8x16x32xbf16> to vector<128x32xbf16>
    %c4_90 = arith.constant 4 : index
    %c0_91 = arith.constant 0 : index
    %c0_92 = arith.constant 0 : index
    %132 = vector.load %arg4[%c4_90, %c0_91, %c0_92] : memref<9x32x32xbf16, #tpu.memory_space<vmem>>, vector<1x32x32xbf16>
    %133 = vector.shape_cast %132 : vector<1x32x32xbf16> to vector<32x32xbf16>
    %cst_93 = arith.constant dense<0.000000e+00> : vector<128x32xf32>
    %134 = tpu.matmul %131, %133, %cst_93 {dimension_numbers = #tpu.dot_dimension_numbers<[1], [0], [0], [1], [0, 0, 1, 1], [], []>} : vector<128x32xbf16>, vector<32x32xbf16>, vector<128x32xf32> -> vector<128x32xf32>
    %135 = arith.addf %129, %134 : vector<128x32xf32>
    %136 = vector.extract_strided_slice %106 {offsets = [1, 2, 0], sizes = [8, 16, 32], strides = [1, 1, 1]} : vector<10x18x32xbf16> to vector<8x16x32xbf16>
    %137 = vector.shape_cast %136 : vector<8x16x32xbf16> to vector<128x32xbf16>
    %c5_94 = arith.constant 5 : index
    %c0_95 = arith.constant 0 : index
    %c0_96 = arith.constant 0 : index
    %138 = vector.load %arg4[%c5_94, %c0_95, %c0_96] : memref<9x32x32xbf16, #tpu.memory_space<vmem>>, vector<1x32x32xbf16>
    %139 = vector.shape_cast %138 : vector<1x32x32xbf16> to vector<32x32xbf16>
    %cst_97 = arith.constant dense<0.000000e+00> : vector<128x32xf32>
    %140 = tpu.matmul %137, %139, %cst_97 {dimension_numbers = #tpu.dot_dimension_numbers<[1], [0], [0], [1], [0, 0, 1, 1], [], []>} : vector<128x32xbf16>, vector<32x32xbf16>, vector<128x32xf32> -> vector<128x32xf32>
    %141 = arith.addf %135, %140 : vector<128x32xf32>
    %142 = vector.extract_strided_slice %106 {offsets = [2, 0, 0], sizes = [8, 16, 32], strides = [1, 1, 1]} : vector<10x18x32xbf16> to vector<8x16x32xbf16>
    %143 = vector.shape_cast %142 : vector<8x16x32xbf16> to vector<128x32xbf16>
    %c6_98 = arith.constant 6 : index
    %c0_99 = arith.constant 0 : index
    %c0_100 = arith.constant 0 : index
    %144 = vector.load %arg4[%c6_98, %c0_99, %c0_100] : memref<9x32x32xbf16, #tpu.memory_space<vmem>>, vector<1x32x32xbf16>
    %145 = vector.shape_cast %144 : vector<1x32x32xbf16> to vector<32x32xbf16>
    %cst_101 = arith.constant dense<0.000000e+00> : vector<128x32xf32>
    %146 = tpu.matmul %143, %145, %cst_101 {dimension_numbers = #tpu.dot_dimension_numbers<[1], [0], [0], [1], [0, 0, 1, 1], [], []>} : vector<128x32xbf16>, vector<32x32xbf16>, vector<128x32xf32> -> vector<128x32xf32>
    %147 = arith.addf %141, %146 : vector<128x32xf32>
    %148 = vector.extract_strided_slice %106 {offsets = [2, 1, 0], sizes = [8, 16, 32], strides = [1, 1, 1]} : vector<10x18x32xbf16> to vector<8x16x32xbf16>
    %149 = vector.shape_cast %148 : vector<8x16x32xbf16> to vector<128x32xbf16>
    %c7_102 = arith.constant 7 : index
    %c0_103 = arith.constant 0 : index
    %c0_104 = arith.constant 0 : index
    %150 = vector.load %arg4[%c7_102, %c0_103, %c0_104] : memref<9x32x32xbf16, #tpu.memory_space<vmem>>, vector<1x32x32xbf16>
    %151 = vector.shape_cast %150 : vector<1x32x32xbf16> to vector<32x32xbf16>
    %cst_105 = arith.constant dense<0.000000e+00> : vector<128x32xf32>
    %152 = tpu.matmul %149, %151, %cst_105 {dimension_numbers = #tpu.dot_dimension_numbers<[1], [0], [0], [1], [0, 0, 1, 1], [], []>} : vector<128x32xbf16>, vector<32x32xbf16>, vector<128x32xf32> -> vector<128x32xf32>
    %153 = arith.addf %147, %152 : vector<128x32xf32>
    %154 = vector.extract_strided_slice %106 {offsets = [2, 2, 0], sizes = [8, 16, 32], strides = [1, 1, 1]} : vector<10x18x32xbf16> to vector<8x16x32xbf16>
    %155 = vector.shape_cast %154 : vector<8x16x32xbf16> to vector<128x32xbf16>
    %c8_106 = arith.constant 8 : index
    %c0_107 = arith.constant 0 : index
    %c0_108 = arith.constant 0 : index
    %156 = vector.load %arg4[%c8_106, %c0_107, %c0_108] : memref<9x32x32xbf16, #tpu.memory_space<vmem>>, vector<1x32x32xbf16>
    %157 = vector.shape_cast %156 : vector<1x32x32xbf16> to vector<32x32xbf16>
    %cst_109 = arith.constant dense<0.000000e+00> : vector<128x32xf32>
    %158 = tpu.matmul %155, %157, %cst_109 {dimension_numbers = #tpu.dot_dimension_numbers<[1], [0], [0], [1], [0, 0, 1, 1], [], []>} : vector<128x32xbf16>, vector<32x32xbf16>, vector<128x32xf32> -> vector<128x32xf32>
    %159 = arith.addf %153, %158 : vector<128x32xf32>
    %c0_110 = arith.constant 0 : index
    %c0_111 = arith.constant 0 : index
    %160 = vector.load %arg5[%c0_110, %c0_111] : memref<1x32xf32, #tpu.memory_space<vmem>>, vector<1x32xf32>
    %161 = vector.broadcast %160 : vector<1x32xf32> to vector<128x32xf32>
    %162 = arith.addf %159, %161 : vector<128x32xf32>
    %cst_112 = arith.constant 0.000000e+00 : f32
    %163 = vector.broadcast %cst_112 : f32 to vector<128x32xf32>
    %164 = arith.maximumf %162, %163 : vector<128x32xf32>
    %165 = arith.truncf %164 : vector<128x32xf32> to vector<128x32xbf16>
    %c0_113 = arith.constant 0 : index
    %c0_114 = arith.constant 0 : index
    %166 = vector.load %arg6[%c0_113, %c0_114] : memref<32x128xbf16, #tpu.memory_space<vmem>>, vector<32x128xbf16>
    %cst_115 = arith.constant dense<0.000000e+00> : vector<128x128xf32>
    %167 = tpu.matmul %165, %166, %cst_115 {dimension_numbers = #tpu.dot_dimension_numbers<[1], [0], [0], [1], [0, 0, 1, 1], [], []>} : vector<128x32xbf16>, vector<32x128xbf16>, vector<128x128xf32> -> vector<128x128xf32>
    %c0_116 = arith.constant 0 : index
    %c0_117 = arith.constant 0 : index
    %168 = vector.load %arg7[%c0_116, %c0_117] : memref<1x128xf32, #tpu.memory_space<vmem>>, vector<1x128xf32>
    %169 = vector.broadcast %168 : vector<1x128xf32> to vector<128x128xf32>
    %170 = arith.addf %167, %169 : vector<128x128xf32>
    %c0_118 = arith.constant 0 : index
    %171 = arith.index_cast %104 : i32 to index
    %c0_119 = arith.constant 0 : index
    %c0_120 = arith.constant 0 : index
    %172 = vector.load %arg1[%c0_118, %171, %c0_119, %c0_120] : memref<1x16x16x128xbf16, #tpu.memory_space<vmem>>, vector<1x8x16x128xbf16>
    %173 = vector.shape_cast %172 : vector<1x8x16x128xbf16> to vector<8x16x128xbf16>
    %174 = vector.shape_cast %173 : vector<8x16x128xbf16> to vector<128x128xbf16>
    %175 = arith.extf %174 : vector<128x128xbf16> to vector<128x128xf32>
    %176 = arith.addf %170, %175 : vector<128x128xf32>
    %cst_121 = arith.constant 0.000000e+00 : f32
    %177 = vector.broadcast %cst_121 : f32 to vector<128x128xf32>
    %178 = arith.maximumf %176, %177 : vector<128x128xf32>
    %179 = vector.shape_cast %178 : vector<128x128xf32> to vector<8x16x128xf32>
    %180 = arith.truncf %179 : vector<8x16x128xf32> to vector<8x16x128xbf16>
    %c0_122 = arith.constant 0 : index
    %181 = arith.index_cast %104 : i32 to index
    %c0_123 = arith.constant 0 : index
    %c0_124 = arith.constant 0 : index
    %182 = vector.load %arg8[%c0_122, %181, %c0_123, %c0_124] : memref<1x16x16x128xbf16, #tpu.memory_space<vmem>>, vector<1x8x16x128xbf16>
    %183 = vector.shape_cast %182 : vector<1x8x16x128xbf16> to vector<8x16x128xbf16>
    %184 = vector.shape_cast %180 : vector<8x16x128xbf16> to vector<1x8x16x128xbf16>
    tpu.vector_store %arg8[%c0_122, %181, %c0_123, %c0_124], %184 {strides = array<i32>} : memref<1x16x16x128xbf16, #tpu.memory_space<vmem>>, vector<1x8x16x128xbf16>,
    %c2_i32 = arith.constant 2 : i32
    return
  }
  func.func @transform_0(%arg0: i32) -> (i32, i32, i32, i32) {
    %c0_i32 = arith.constant 0 : i32
    %c0_i32_0 = arith.constant 0 : i32
    %c0_i32_1 = arith.constant 0 : i32
    %c0_i32_2 = arith.constant 0 : i32
    return %arg0, %c0_i32, %c0_i32_0, %c0_i32_1 : i32, i32, i32, i32
  }
  func.func @transform_1(%arg0: i32) -> (i32, i32) {
    %c0_i32 = arith.constant 0 : i32
    %c0_i32_0 = arith.constant 0 : i32
    %c0_i32_1 = arith.constant 0 : i32
    return %c0_i32, %c0_i32_0 : i32, i32
  }
  func.func @transform_2(%arg0: i32) -> (i32, i32) {
    %c0_i32 = arith.constant 0 : i32
    %c0_i32_0 = arith.constant 0 : i32
    %c0_i32_1 = arith.constant 0 : i32
    return %c0_i32, %c0_i32_0 : i32, i32
  }
  func.func @transform_3(%arg0: i32) -> (i32, i32, i32) {
    %c0_i32 = arith.constant 0 : i32
    %c0_i32_0 = arith.constant 0 : i32
    %c0_i32_1 = arith.constant 0 : i32
    %c0_i32_2 = arith.constant 0 : i32
    return %c0_i32, %c0_i32_0, %c0_i32_1 : i32, i32, i32
  }
  func.func @transform_4(%arg0: i32) -> (i32, i32) {
    %c0_i32 = arith.constant 0 : i32
    %c0_i32_0 = arith.constant 0 : i32
    %c0_i32_1 = arith.constant 0 : i32
    return %c0_i32, %c0_i32_0 : i32, i32
  }
  func.func @transform_5(%arg0: i32) -> (i32, i32) {
    %c0_i32 = arith.constant 0 : i32
    %c0_i32_0 = arith.constant 0 : i32
    %c0_i32_1 = arith.constant 0 : i32
    return %c0_i32, %c0_i32_0 : i32, i32
  }
  func.func @transform_6(%arg0: i32) -> (i32, i32) {
    %c0_i32 = arith.constant 0 : i32
    %c0_i32_0 = arith.constant 0 : i32
    %c0_i32_1 = arith.constant 0 : i32
    return %c0_i32, %c0_i32_0 : i32, i32
  }
  func.func @transform_7(%arg0: i32) -> (i32, i32, i32, i32) {
    %c0_i32 = arith.constant 0 : i32
    %c0_i32_0 = arith.constant 0 : i32
    %c0_i32_1 = arith.constant 0 : i32
    %c0_i32_2 = arith.constant 0 : i32
    return %arg0, %c0_i32, %c0_i32_0, %c0_i32_1 : i32, i32, i32, i32
  }
}

</mosaic_0001>

<bundles_post_ra>
// kernel: tpu_custom_call.1
= control target key start
LH: loop header
LB: loop body
LE: loop exit
PB: predicated region body
PF: predicated region fallthrough
CT: control target
= control target key end

     0   :  { %s9448_s0 = inlined_call_operand.hbm [shape: bf16[2,16,16,128], index: 0, kind: input, shape index: {}]   ;;  %s9449_s1 = inlined_call_operand.vmem [shape: bf16[128,32], index: 1, kind: input, shape index: {}]   ;;  %s9450_s2 = inlined_call_operand.vmem [shape: f32[1,32], index: 2, kind: input, shape index: {}]   ;;  %s9451_s3 = inlined_call_operand.hbm [shape: bf16[9,32,32], index: 3, kind: input, shape index: {}]   ;;  %s9452_s4 = inlined_call_operand.vmem [shape: f32[1,32], index: 4, kind: input, shape index: {}]   ;;  %s9453_s5 = inlined_call_operand.vmem [shape: bf16[32,128], index: 5, kind: input, shape index: {}]   ;;  %s9454_s6 = inlined_call_operand.vmem [shape: f32[1,128], index: 6, kind: input, shape index: {}]   ;;  %s9455_s7 = inlined_call_operand.hbm [shape: bf16[2,16,16,128], index: 7, kind: output, shape index: {}]  }
   0x1   :  { %9511 = sst [smem:[#allocation63_spill]] %s9451_s3 }
   0x2   :  { %12 = vsyncpa [#allocation4], 0 }
   0x3   :  { %14 = vsyncpa [#allocation4 + $0x1], 0 }
   0x4   :  { %15 = vsyncpa [#allocation7], 0 }
   0x5   :  { %16 = vsyncpa [#allocation5], 0 }
   0x6   :  { %18 = vsyncpa [#allocation5 + $0x1], 0  ;;  %s7176_s24 = smov 0   ;;  %s7178_s25 = smov 0  }
   0x7   :  { %s7180_s26 = smov 0   ;;  %s7182_s27 = smov 0  }
   0x8 LB: > { %s7197_s28 = sadd.s32 4294967295, %s7126_s27   ;;  %s5519_s29 = sadd.s32 4294967294, %s7126_s27   ;;  %s7126_s27 = sphi %s7182_s27, %s9758_s27   ;;  %s7122_s26 = sphi %s7180_s26, %s9757_s26   ;;  %s7118_s25 = sphi %s7178_s25, %s9756_s25   ;;  %s7114_s24 = sphi %s7176_s24, %s9755_s24  }
   0x9   : > { %p44_p0 = scmp.ne.s32.totalorder %s7118_s25, %s7114_s24  ;;  %p9457_p1 = scmp.eq.s32.totalorder %s7197_s28, 0 }
   0xa   : > { %p200_p3 = scmp.eq.s32.totalorder %s5519_s29, 1  ;;  %p5520_p5 = scmp.ge.s32.totalorder %s7126_s27, 1 }
   0xb   : > { %p7206_p4 = por %p9457_p1, %p44_p0  ;;  %p207_p7 = scmp.lt.s32.totalorder %s7126_s27, 3 }
   0xc   : > { %p7211_p6 = por %p200_p3, %p44_p0  ;;  %s7128_s10 = smov [#allocation6]  }
   0xd   : > { %s9512_s30 = scalar_select %p7206_p4, 1, 0 }
   0xe   : > { %s9513_s8 = scalar_select %p7211_p6, 1, 0 }
   0xf   : > { %p7216_p8 = pnand %p5520_p5, %p207_p7  ;;  %s225_s11 = sshll.u32 %s7128_s10, 4  ;;  %s226_s11 = int_to_ptr.vmem [resolvable:$true] %s225_s11 }
  0x10   : > { %s7230_s13 = sadd.s32 1, %s7126_s27   ;;  %s31_s14 = sadd.s32 1, %s7122_s26 }
  0x11   : > { %s9514_s9 = scalar_select %p7216_p8, 1, 0 }
  0x12   : > { %p6864_p9 = pneg %p7216_p8  ;;  %s28_s15 = ssub.s32 %s7126_s27, %s7230_s13 }
  0x13   : > { %s7015_s16 = scalar_lea.vmem %s226_s11, 2304  ;;  %p7023_p5 = scmp.lt.s32.totalorder %s226_s11, %s226_s11 }
  0x14   : > { %p7225_p11 = pnand %p6864_p9, %p9457_p1  ;;  %p7016_p13 = scmp.ne.s32.totalorder %s226_s11, %s7015_s16 }
  0x15   : > { %p7024_p7 = scmp.lt.s32.totalorder %s7015_s16, %s7015_s16 }
  0x16   : > { %p7006_p12 = pneg %p7225_p11 }
  0x17   : > { %p7025_p10 = por %p7024_p7, %p7023_p5 }
  0x18   : > { %p7018_p0 = pnand %p7016_p13, %p7006_p12 }
  0x1a   : > { %p7019_p3 = pneg %p7018_p0 }
  0x1c   : > { %p7026_p2 = pnand %p7025_p10, %p7019_p3 }
  0x1e   : > { %7029 = shalt.err (!%p7026_p2)
}
  0x1f   : > { %s9456_s17 = smov 64   ;;  %s9458_s18 = smov 4  }
  0x20   : > { %s9516_s3 = sld [smem:[#allocation63_spill]]  ;;  %p29_p2 = scmp.eq.s32.totalorder %s28_s15, 0 }
  0x21   : > { %p38_p9 = scmp.ne.s32.totalorder %s7122_s26, %s7118_s25  ;;  %p39_p10 = scmp.eq.s32.totalorder %s7126_s27, 0 }
  0x22   : > { %p6877_p12 = scmp.lt.s32.totalorder %s7126_s27, 2  ;;  %p9517_p0 = scmp.eq.s32.totalorder %s7197_s28, 1 }
  0x23   : > { %s7250_s21 = scalar_select %p29_p2, %s7122_s26, %s31_s14  }
  0x24   : > { %p40_p13 = por %p39_p10, %p38_p9  ;;  %p7254_p3 = por %p9517_p0, %p38_p9 }
  0x25   : > { %s248_s23 = sand.u32 1, %s7122_s26   ;;  %s5940_s29 = sshll.u32 %s7126_s27, 11 }
  0x26   : > { %6867 = dma.hbm_to_vmem [thread:$0]  (!%p7225_p11), %s9516_s3, 2304, %s226_s11, [#allocation7], %s9456_s17, %s9456_s17, %s9458_s18  }
  0x27   : > { %s9518_s22 = scalar_select %p7254_p3, 1, 0 }
  0x28   : > { %s5523_s10 = sshll.u32 %s248_s23, 7  ;;  %s7263_s19 = scalar_lea.hbm %s9448_s0, %s5940_s29 }
  0x29   : > { %s252_s11 = scalar_lea.vmem [#allocation3], %s5523_s10  ;;  %p7265_p11 = pnand %p6877_p12, %p40_p13 }
  0x2a   : > { %s259_s14 = sshll.u32 %s252_s11, 4  ;;  %s7271_s20 = scalar_lea.sflag [#allocation4], %s248_s23  ;;  %s7269_s14 = int_to_ptr.vmem [resolvable:$true] %s259_s14 }
  0x2b   : > { %s7030_s17 = scalar_lea.hbm %s7263_s19, 2048  ;;  %p7032_p7 = pneg %p7265_p11 }
  0x2c   : > { %p7031_p5 = scmp.ne.s32.totalorder %s7263_s19, %s7030_s17  ;;  %s7035_s10 = scalar_lea.hbm %s9448_s0, 4096 }
  0x2d   : > { %p7036_p10 = scmp.lt.s32.totalorder %s7263_s19, %s9448_s0  ;;  %p7037_p12 = scmp.lt.s32.totalorder %s7035_s10, %s7030_s17 }
  0x2e   : > { %p7033_p2 = pnand %p7032_p7, %p7031_p5 }
  0x2f   : > { %p7038_p13 = por %p7037_p12, %p7036_p10 }
  0x30   : > { %p7034_p9 = pneg %p7033_p2 }
  0x32   : > { %p7039_p0 = pnand %p7038_p13, %p7034_p9 }
  0x34   : > { %7042 = shalt.err (!%p7039_p0)
}
  0x35   : > { %s7043_s23 = scalar_lea.vmem %s7269_s14, 2048  ;;  %s7131_s18 = smov [#allocation3]  }
  0x36   : > { %p7044_p1 = scmp.ne.s32.totalorder %s7269_s14, %s7043_s23  ;;  %s7048_s3 = sshll.u32 %s7131_s18, 4  ;;  %s7049_s3 = int_to_ptr.vmem [resolvable:$false] %s7048_s3 }
  0x37   : > { %s7050_s29 = scalar_lea.vmem %s7049_s3, 4096  ;;  %p7051_p2 = scmp.lt.s32.totalorder %s7269_s14, %s7049_s3 }
  0x38   : > { %p7046_p6 = pnand %p7044_p1, %p7032_p7  ;;  %p7052_p3 = scmp.lt.s32.totalorder %s7050_s29, %s7043_s23 }
  0x3a   : > { %p7047_p5 = pneg %p7046_p6  ;;  %p7053_p4 = por %p7052_p3, %p7051_p2 }
  0x3c   : > { %p7054_p8 = pnand %p7053_p4, %p7047_p5 }
  0x3e   : > { %7057 = shalt.err (!%p7054_p8)
}
  0x3f   : > { %s9520_s17 = smov 4   ;;  %s9521_s12 = smov 64  }
  0x40   : > { %6871 = dma.hbm_to_vmem [thread:$0]  (!%p7265_p11), %s7263_s19, 2048, %s7269_s14, %s7271_s20, %s9521_s12, %s9521_s12, %s9520_s17  }
  0x41   : > { %p9522_p1 = scmp.ne.s32.totalorder %s9514_s9, 0 }
  0x43   : > { %271 = sbr.rel (%p9522_p1) target bundleno = 1327 (0x52f), region = 48 }
  0x48   : > { %s7298_s18 = sand.u32 1, %s7118_s25   ;;  %p9523_p4 = scmp.ne.s32.totalorder %s9512_s30, 0 }
  0x49   : > { %s5527_s3 = sshll.u32 %s7298_s18, 7  ;;  %s274_s10 = scalar_lea.sflag [#allocation4], %s7298_s18 }
  0x4a   : > { %s7304_s15 = scalar_lea.vmem [#allocation3], %s5527_s3 }
  0x4b   : > { %7101 = dma.done.wait (%p9523_p4), %s274_s10, 2048  }
  0x4c   : > { %7103 = vsyncadd (%p9523_p4), %s274_s10, 4294965248  ;;  %p9524_p6 = scmp.eq.s32.totalorder %s7197_s28, 0 }
  0x4e   : > { %7105 = dma.done.wait (%p9524_p6), [#allocation7], 2304   ;;  %p9525_p8 = pmov %p9524_p6 }
  0x4f   : > { %v6918_v0 = vld [vmem:[%s9449_s1 + $0x38] sm:$0xff]   ;;  %v6919_v1 = vld [vmem:[%s9449_s1 + $0x30] sm:$0xff]   ;;  %v6920_v2 = vld [vmem:[%s9449_s1 + $0x28] sm:$0xff]   ;;  %vm323_vm0 = vsmask.f32 256  ;;  %vm316_vm1 = vcmask 253952  }
  0x50   : > { %7107 = vsyncadd (%p9525_p8), [#allocation7], 4294964992  ;;  %6404 = vmatprep.subr.bf16.mxu0 %v6918_v0  ;;  %v6921_v3 = vld [vmem:[%s9449_s1 + $0x20] sm:$0xff]   ;;  %v6926_v4 = vld [vmem:[%s7304_s15] sm:$0xff]   ;;  %vm379_vm3 = vsmask.f32 7938 }
  0x51   : > { %6405 = vmatpush3.bf16.msra.mxu0 %v6918_v0  ;;  %6420 = vmatprep.mubr.bf16.mxu0 %v6926_v4  ;;  %v6922_v5 = vld [vmem:[%s9449_s1 + $0x18] sm:$0xff]   ;;  %vm7332_vm2 = vmand %vm316_vm1, %vm323_vm0  ;;  %v6923_v7 = vld [vmem:[%s9449_s1 + $0x10] sm:$0xff]   ;;  %v9528_v21 = vmov 0  ;;  %vm313_vm5 = vcmask 257024   ;;  %v7132_v49 = vmov 0   ;;  %vm1633_vm9 = vcmask 261120  }
  0x52   : > { %6406 = vmatprep.subr.bf16.mxu0 %v6919_v1  ;;  %v331_v8 = vld [vmem:[#allocation2 + $0x18] sm:$0x1]  ;;  %v6924_v9 = vld [vmem:[%s9449_s1 + $0x8] sm:$0xff]   ;;  %v6925_v11 = vld [vmem:[%s9449_s1] sm:$0xff]   ;;  %314 = vst.msk [vmem:[#allocation2] sm:$0xf] %vm313_vm5, %v7132_v49 }
  0x53   : > { %v332_v10 = vsel %vm7332_vm2, 0, %v331_v8  ;;  %v6927_v12 = vld [vmem:[%s7304_s15 + $0x8] sm:$0xff]   ;;  %v6928_v13 = vld [vmem:[%s7304_s15 + $0x10] sm:$0xff]   ;;  %v6929_v14 = vld [vmem:[%s7304_s15 + $0x18] sm:$0xff]   ;;  %315 = vst.msk [vmem:[#allocation2 + $0x4] sm:$0xf] %vm313_vm5, %v7132_v49 }
  0x54   : > { %333 = vst [vmem:[#allocation2 + $0x18] sm:$0x1] %v332_v10  ;;  %v6930_v15 = vld [vmem:[%s7304_s15 + $0x20] sm:$0xff]   ;;  %v6931_v16 = vld [vmem:[%s7304_s15 + $0x28] sm:$0xff]   ;;  %v6932_v17 = vld [vmem:[%s7304_s15 + $0x30] sm:$0xff]   ;;  %vm1936_vm10 = vcmask 1042432  }
  0x55   : > { %6407 = vmatpush3.bf16.msra.mxu0 %v6919_v1  ;;  %v6933_v18 = vld [vmem:[%s7304_s15 + $0x38] sm:$0xff]   ;;  %v6934_v19 = vld [vmem:[%s7304_s15 + $0x40] sm:$0xff]   ;;  %v6935_v20 = vld [vmem:[%s7304_s15 + $0x48] sm:$0xff]   ;;  %317 = vst.msk [vmem:[#allocation2 + $0x8] sm:$0x1] %vm316_vm1, %v7132_v49  ;;  %vm1937_vm11 = vcmask 1046532  }
  0x56   : > { %6408 = vmatprep.subr.bf16.mxu0 %v6920_v2  ;;  %vm7358_vm4 = vmand %vm316_vm1, %vm379_vm3  ;;  %v328_v22 = vld [vmem:[#allocation2 + $0xc] sm:$0x1]  ;;  %v6937_v25 = vld [vmem:[%s7304_s15 + $0x58] sm:$0xff]   ;;  %319 = vst.msk [vmem:[#allocation2 + $0xcc] sm:$0xf] %vm313_vm5, %v7132_v49  ;;  %s9061_s29 = scalar_lea.vmem [#allocation8], %s5527_s3 }
  0x57   : > { %v9529_v21 = vsel %vm7358_vm4, 4294967295, %v9528_v21  ;;  %v6936_v23 = vld [vmem:[%s7304_s15 + $0x50] sm:$0xff]   ;;  %v329_v24 = vsel %vm7332_vm2, 0, %v328_v22  ;;  %v387_v26 = vld [vmem:[#allocation2 + $0x20] sm:$0x1]  ;;  %v6938_v34 = vld [vmem:[%s7304_s15 + $0x60] sm:$0xff]  }
  0x58   : > { %9530 = vst [vmem:[#allocation12_spill] sm:$0xff] %v9529_v21  ;;  %330 = vst [vmem:[#allocation2 + $0xc] sm:$0x1] %v329_v24  ;;  %v388_v27 = vsel %vm7358_vm4, 0, %v387_v26  ;;  %v384_v28 = vld [vmem:[#allocation2 + $0x14] sm:$0x1] }
  0x59   : > { %6409 = vmatpush3.bf16.msra.mxu0 %v6920_v2  ;;  %389 = vst [vmem:[#allocation2 + $0x20] sm:$0x1] %v388_v27  ;;  %v385_v29 = vsel %vm7358_vm4, 0, %v384_v28  ;;  %v337_v30 = vld [vmem:[#allocation2 + $0x30] sm:$0x1]  ;;  %v6939_v35 = vld [vmem:[%s7304_s15 + $0x68] sm:$0xff]   ;;  %vm7441_vm12 = vmor %vm1936_vm10, %vm1937_vm11 }
  0x5a   : > { %6410 = vmatprep.subr.bf16.mxu0 %v6921_v3  ;;  %386 = vst [vmem:[#allocation2 + $0x14] sm:$0x1] %v385_v29  ;;  %v338_v31 = vsel %vm7332_vm2, 0, %v337_v30  ;;  %v334_v32 = vld [vmem:[#allocation2 + $0x24] sm:$0x1]  ;;  %v6940_v45 = vld [vmem:[%s7304_s15 + $0x70] sm:$0xff]   ;;  %vm7454_vm14 = vmand %vm313_vm5, %vm379_vm3 }
  0x5b   : > { %339 = vst [vmem:[#allocation2 + $0x30] sm:$0x1] %v338_v31  ;;  %v335_v33 = vsel %vm7332_vm2, 0, %v334_v32  ;;  %v393_v36 = vld [vmem:[#allocation2 + $0x38] sm:$0x1]  ;;  %v6941_v47 = vld [vmem:[%s7304_s15 + $0x78] sm:$0xff]  }
  0x5c   : > { %336 = vst [vmem:[#allocation2 + $0x24] sm:$0x1] %v335_v33  ;;  %v394_v37 = vsel %vm7358_vm4, 0, %v393_v36  ;;  %v390_v38 = vld [vmem:[#allocation2 + $0x2c] sm:$0x1]  ;;  %v6942_v48 = vld [vmem:[#allocation6 + $0x38] sm:$0xff]  }
  0x5d   : > { %6411 = vmatpush3.bf16.msra.mxu0 %v6921_v3  ;;  %395 = vst [vmem:[#allocation2 + $0x38] sm:$0x1] %v394_v37  ;;  %v391_v39 = vsel %vm7358_vm4, 0, %v390_v38  ;;  %v343_v40 = vld [vmem:[#allocation2 + $0x48] sm:$0x1]  ;;  %v6944_v57 = vld [vmem:[#allocation6 + $0x18] sm:$0xff]  }
  0x5e   : > { %6412 = vmatprep.subr.bf16.mxu0 %v6922_v5  ;;  %392 = vst [vmem:[#allocation2 + $0x2c] sm:$0x1] %v391_v39  ;;  %v344_v41 = vsel %vm7332_vm2, 0, %v343_v40  ;;  %v340_v42 = vld [vmem:[#allocation2 + $0x3c] sm:$0x1]  ;;  %v6943_v52 = vld [vmem:[#allocation6 + $0x30] sm:$0xff]   ;;  %6452 = vmatprep.subr.bf16.mxu1 %v6944_v57 }
  0x5f   : > { %345 = vst [vmem:[#allocation2 + $0x48] sm:$0x1] %v344_v41  ;;  %v341_v43 = vsel %vm7332_vm2, 0, %v340_v42  ;;  %v399_v44 = vld [vmem:[#allocation2 + $0x50] sm:$0x1]  ;;  %6453 = vmatpush3.bf16.msra.mxu1 %v6944_v57  ;;  %v7416_v22 = vld [vmem:[#allocation6 + $0x8] sm:$0xff]  }
  0x60   : > { %342 = vst [vmem:[#allocation2 + $0x3c] sm:$0x1] %v341_v43  ;;  %v400_v46 = vsel %vm7358_vm4, 0, %v399_v44  ;;  %320 = vst.msk [vmem:[#allocation2 + $0xd0] sm:$0xf] %vm313_vm5, %v7132_v49  ;;  %v7428_v27 = vld [vmem:[#allocation6 + $0x58] sm:$0xff]  }
  0x61   : > { %6413 = vmatpush3.bf16.msra.mxu0 %v6922_v5  ;;  %321 = vst.msk [vmem:[#allocation2 + $0xd4] sm:$0x1] %vm316_vm1, %v7132_v49  ;;  %401 = vst [vmem:[#allocation2 + $0x50] sm:$0x1] %v400_v46  ;;  %v396_v50 = vld [vmem:[#allocation2 + $0x44] sm:$0x1] }
  0x62   : > { %6414 = vmatprep.subr.bf16.mxu0 %v6923_v7  ;;  %v397_v51 = vsel %vm7358_vm4, 0, %v396_v50  ;;  %v349_v53 = vld [vmem:[#allocation2 + $0x60] sm:$0x1]  ;;  %v346_v56 = vld [vmem:[#allocation2 + $0x54] sm:$0x1]  ;;  %v9534_v46 = vmov 0 }
  0x63   : > { %398 = vst [vmem:[#allocation2 + $0x44] sm:$0x1] %v397_v51  ;;  %v350_v54 = vsel %vm7332_vm2, 0, %v349_v53  ;;  %v325_v55 = vld [vmem:[#allocation2] sm:$0x1]  ;;  %v347_v59 = vsel %vm7332_vm2, 0, %v346_v56 }
  0x64   : > { %351 = vst [vmem:[#allocation2 + $0x60] sm:$0x1] %v350_v54  ;;  %v326_v58 = vsel %vm7332_vm2, 0, %v325_v55  ;;  %348 = vst [vmem:[#allocation2 + $0x54] sm:$0x1] %v347_v59  ;;  %v9535_v46 = vsel %vm7441_vm12, 4294967295, %v9534_v46 }
  0x65   : > { %6415 = vmatpush3.bf16.msra.mxu0 %v6923_v7  ;;  %327 = vst [vmem:[#allocation2] sm:$0x1] %v326_v58  ;;  %v405_v60 = vld [vmem:[#allocation2 + $0x68] sm:$0x1]  ;;  %v402_v63 = vld [vmem:[#allocation2 + $0x5c] sm:$0x1] }
  0x66   : > { %6416 = vmatprep.subr.bf16.mxu0 %v6924_v9  ;;  %v406_v61 = vsel %vm7358_vm4, 0, %v405_v60  ;;  %v381_v62 = vld [vmem:[#allocation2 + $0x8] sm:$0x1]  ;;  %v403_v1 = vsel %vm7358_vm4, 0, %v402_v63  ;;  %v7410_v3 = vld [vmem:[#allocation2 + $0x4] sm:$0xf] }
  0x67   : > { %407 = vst [vmem:[#allocation2 + $0x68] sm:$0x1] %v406_v61  ;;  %v382_v0 = vsel %vm7358_vm4, 0, %v381_v62  ;;  %404 = vst [vmem:[#allocation2 + $0x5c] sm:$0x1] %v403_v1  ;;  %v1410_v7 = vshll.u32 %v7410_v3, 16 }
  0x68   : > { %383 = vst [vmem:[#allocation2 + $0x8] sm:$0x1] %v382_v0  ;;  %v1414_v8 = vshrl.u32 %v7410_v3, 16  ;;  %vm1397_vm6 = vsmask.f32 3328  ;;  %v1941_v32 = vrot.slane %v7410_v3, 5 }
  0x69   : > { %6417 = vmatpush3.bf16.msra.mxu0 %v6924_v9  ;;  %vm1398_vm7 = vsmask.f32 7440  ;;  %v7434_v28 = vld [vmem:[%s9450_s2] ss:$0 sm:$0xff]  ;;  %9536 = vst [vmem:[#allocation14_spill] sm:$0xff] %v9535_v46  ;;  %s5433_s12 = sshll.u32 %s9061_s29, 4  ;;  %s9403_s12 = int_to_ptr.vmem [resolvable:$true] %s5433_s12 }
  0x6a   : > { %6418 = vmatprep.subr.bf16.mxu0 %v6925_v11  ;;  %vm7418_vm8 = vmor %vm1397_vm6, %vm1398_vm7  ;;  %v1943_v42 = vrot.slane %v1941_v32, 4  ;;  %vm923_vm13 = vsmask.f32 4368  ;;  %v1255_v56 = vld [vmem:[#allocation2 + $0x18] sm:$0xf]  ;;  %s5420_s14 = scalar_lea.sflag [#allocation5], %s7298_s18 }
  0x6b   : > { %vm7468_vm15 = vmor %vm323_vm0, %vm923_vm13  ;;  %s7058_s20 = scalar_lea.vmem %s9403_s12, 2048  ;;  %p9752_p11 = scmp.ne.s32.totalorder %s9518_s22, 0 }
  0x6c   : > { %v7408_v2 = vld [vmem:[#allocation2] sm:$0xf]  ;;  %p7059_p3 = scmp.ne.s32.totalorder %s9403_s12, %s7058_s20 }
  0x6d   : > { %6419 = vmatpush3.bf16.msra.mxu0 %v6925_v11  ;;  %v1401_v4 = vshrl.u32 %v7408_v2, 16  ;;  %v1404_v5 = vshll.u32 %v7408_v2, 16  ;;  %v1412_v11 = vrot.slane %v1410_v7, 5  ;;  %v5623_v36 = vrot.slane %v7408_v2, 9 }
  0x6e   : > { %6512 = vmatprep.subr.bf16.mxu0 %v6942_v48  ;;  %p7060_p7 = pnand %p7059_p3, %p9752_p11 }
  0x6f   : > { %v1403_v9 = vrot.slane %v1401_v4, 4  ;;  %v1406_v10 = vrot.slane %v1404_v5, 5  ;;  %v7450_v50 = vsel %vm7441_vm12, %v5623_v36, %v1941_v32  ;;  %v1248_v4 = vld [vmem:[#allocation2 + $0xc] sm:$0xf] }
  0x70   : > { %6421 = vmatmul.mubr.bf16.vlgmr.msra.gmra.mxu0 %v6927_v12  ;;  %v1416_v12 = vrot.slane %v1414_v8, 4  ;;  %p7061_p9 = pneg %p7060_p7 }
  0x71   : > { %6424 = vmatprep.mubr.bf16.mxu0 %v6928_v13  ;;  %6513 = vmatpush3.bf16.msra.mxu0 %v6942_v48  ;;  %v1365_v13 = vld [vmem:[#allocation2 + $0x8] sm:$0x1] }
  0x72   : > { %6514 = vmatprep.subr.bf16.mxu0 %v6943_v52  ;;  %v1944_v41 = vrot.slane %v1365_v13, 5 }
  0x74   : > { %v7461_v61 = vsel %vm7441_vm12, %v1943_v42, %v1944_v41 }
  0x75   : > { %6515 = vmatpush3.bf16.msra.mxu0 %v6943_v52 }
  0x76   : > { %6552 = vmatprep.subr.bf16.mxu0 %v7428_v27 }
  0x78   : > { %6425 = vmatmul.mubr.bf16.gmra.mxu0 %v6929_v14  ;;  %v1407_v14 = vor.u32 %v1406_v10, %v1403_v9 }
  0x79   : > { %6428 = vmatprep.mubr.bf16.mxu0 %v6930_v15  ;;  %v1417_v15 = vor.u32 %v1416_v12, %v1412_v11 }
  0x80   : > { %6429 = vmatmul.mubr.bf16.gmra.mxu0 %v6931_v16  ;;  %v1420_v16 = vshll.u32 %v1365_v13, 16 }
  0x81   : > { %6432 = vmatprep.mubr.bf16.mxu0 %v6932_v17  ;;  %v6947_v17 = vld [vmem:[#allocation6 + $0x10] sm:$0xff]  }
  0x82   : > { %6454 = vmatprep.subr.bf16.mxu1 %v6947_v17 }
  0x83   : > { %6455 = vmatpush3.bf16.msra.mxu1 %v6947_v17 }
  0x84   : > { %6472 = vmatprep.subr.bf16.mxu1 %v7416_v22 }
  0x88   : > { %6433 = vmatmul.mubr.bf16.gmra.mxu0 %v6933_v18  ;;  %v1408_v18 = vrot.slane %v1407_v14, 4 }
  0x89   : > { %6436 = vmatprep.mubr.bf16.mxu0 %v6934_v19  ;;  %v1418_v19 = vrot.slane %v1417_v15, 4 }
  0x8a   : > { %v1413_v24 = vsel %vm7418_vm8, %v1408_v18, %v1412_v11 }
  0x90   : > { %6437 = vmatmul.mubr.bf16.gmra.mxu0 %v6935_v20  ;;  %v1422_v20 = vrot.slane %v1420_v16, 5  ;;  %v1259_v16 = vld [vmem:[#allocation2 + $0x20] sm:$0x1] }
  0x91   : > { %6440 = vmatprep.mubr.bf16.mxu0 %v6936_v23  ;;  %v9531_v23 = vmov 0 }
  0x92   : > { %v9532_v23 = vsel %vm7418_vm8, 4294967295, %v9531_v23 }
  0x93   : > { %9533 = vst [vmem:[#allocation13_spill] sm:$0xff] %v9532_v23 }
  0x98   : > { %6441 = vmatmul.mubr.bf16.gmra.mxu0 %v6937_v25  ;;  %v1423_v25 = vsel %vm7418_vm8, %v1418_v19, %v1422_v20 }
  0x99   : > { %6444 = vmatprep.mubr.bf16.mxu0 %v6938_v34  ;;  %v5587_v26 = vcombine.low %v1413_v24, %v1423_v25 }
  0x9b   : > { %6456 = vmatprep.mubr.msk.bf16.mxu1 %vm1633_vm9, %v5587_v26 }
  0xa0   : > { %6445 = vmatmul.mubr.bf16.gmra.mxu0 %v6939_v35 }
  0xa1   : > { %6448 = vmatprep.mubr.bf16.mxu0 %v6940_v45 }
  0xa8   : > { %6449 = vmatmul.mubr.bf16.gmra.mxu0 %v6941_v47 }
 0x130   : > { %v6422_v29 = vpop.f32.mrf.mxu0 }
 0x131   : > { %v677_v30 = vadd.f32 %v6422_v29, %v7434_v28 }
 0x132   : > { %v668_v31 = vpop.f32.mrf.mxu0 }
 0x133   : > { %v797_v33 = vmax.f32 %v677_v30, 0.0  ;;  %v669_v34 = vadd.f32 %v7434_v28, %v668_v31 }
 0x134   : > { %v6423_v35 = vpop.f32.mrf.mxu0 }
 0x135   : > { %v5943_v37 = vpack.c.bf16 %v797_v33, %v797_v33  ;;  %v795_v38 = vmax.f32 %v669_v34, 0.0  ;;  %v680_v39 = vadd.f32 %v6423_v35, %v7434_v28 }
 0x136   : > { %v671_v40 = vpop.f32.mrf.mxu0 }
 0x137   : > { %v943_v43 = vshrl.u32 %v5943_v37, 16  ;;  %v5941_v44 = vpack.c.bf16 %v795_v38, %v795_v38  ;;  %v798_v45 = vmax.f32 %v680_v39, 0.0  ;;  %v672_v47 = vadd.f32 %v7434_v28, %v671_v40  ;;  %v1252_v38 = vld [vmem:[#allocation2 + $0x14] sm:$0x1] }
 0x138   : > { %v6426_v48 = vpop.f32.mrf.mxu0  ;;  %v946_v52 = vshll.u32 %v5943_v37, 16 }
 0x139   : > { %v945_v51 = vrot.slane %v943_v43, 7  ;;  %v926_v53 = vshrl.u32 %v5941_v44, 16  ;;  %v5944_v54 = vpack.c.bf16 %v798_v45, %v798_v45  ;;  %v929_v57 = vshll.u32 %v5941_v44, 16 }
 0x13a   : > { %v796_v58 = vmax.f32 %v672_v47, 0.0  ;;  %v693_v59 = vadd.f32 %v6426_v48, %v7434_v28  ;;  %v684_v60 = vpop.f32.mrf.mxu0  ;;  %v1269_v47 = vld [vmem:[#allocation2 + $0x30] sm:$0xf] }
 0x13b   : > { %v948_v62 = vor.u32 %v946_v52, %v945_v51  ;;  %v949_v63 = vrot.slane %v945_v51, 4  ;;  %v928_v0 = vrot.slane %v926_v53, 7  ;;  %v951_v1 = vshrl.u32 %v5944_v54, 16 }
 0x13c   : > { %v954_v5 = vshll.u32 %v5944_v54, 16  ;;  %v5942_v7 = vpack.c.bf16 %v796_v58, %v796_v58  ;;  %v801_v8 = vmax.f32 %v693_v59, 0.0  ;;  %v685_v9 = vadd.f32 %v7434_v28, %v684_v60  ;;  %v6427_v10 = vpop.f32.mrf.mxu0 }
 0x13d   : > { %v1256_v11 = vsel %vm7454_vm14, %v948_v62, %v1255_v56  ;;  %v931_v12 = vor.u32 %v929_v57, %v928_v0  ;;  %v932_v13 = vrot.slane %v928_v0, 4  ;;  %v953_v14 = vrot.slane %v951_v1, 7 }
 0x13e   : > { %1257 = vst [vmem:[#allocation2 + $0x18] sm:$0xf] %v1256_v11  ;;  %v934_v17 = vshrl.u32 %v5942_v7, 16  ;;  %v937_v18 = vshll.u32 %v5942_v7, 16  ;;  %v5947_v19 = vpack.c.bf16 %v801_v8, %v801_v8  ;;  %v799_v20 = vmax.f32 %v685_v9, 0.0  ;;  %v687_v24 = vpop.f32.mrf.mxu0 }
 0x13f   : > { %v1249_v25 = vsel %vm7454_vm14, %v931_v12, %v1248_v4  ;;  %v956_v26 = vor.u32 %v954_v5, %v953_v14  ;;  %v958_v29 = vrot.slane %v953_v14, 4  ;;  %v696_v30 = vadd.f32 %v6427_v10, %v7434_v28  ;;  %v1262_v4 = vld [vmem:[#allocation2 + $0x24] sm:$0xf]  ;;  %v1273_v14 = vld [vmem:[#allocation2 + $0x38] sm:$0x1] }
 0x140   : > { %1250 = vst [vmem:[#allocation2 + $0xc] sm:$0xf] %v1249_v25  ;;  %v936_v31 = vrot.slane %v934_v17, 7  ;;  %v977_v32 = vshrl.u32 %v5947_v19, 16  ;;  %v980_v33 = vshll.u32 %v5947_v19, 16  ;;  %v5945_v34 = vpack.c.bf16 %v799_v20, %v799_v20  ;;  %v6430_v35 = vpop.f32.mrf.mxu0 }
 0x141   : > { %v957_v36 = vsel %vm7468_vm15, %v949_v63, %v956_v26  ;;  %v1260_v37 = vsel %vm7332_vm2, %v958_v29, %v1259_v16  ;;  %v802_v39 = vmax.f32 %v696_v30, 0.0  ;;  %v688_v40 = vadd.f32 %v7434_v28, %v687_v24 }
 0x142   : > { %1258 = vst.msk [vmem:[#allocation2 + $0x1c] sm:$0xf] %vm313_vm5, %v957_v36  ;;  %1261 = vst [vmem:[#allocation2 + $0x20] sm:$0x1] %v1260_v37  ;;  %v939_v41 = vor.u32 %v937_v18, %v936_v31  ;;  %v941_v42 = vrot.slane %v936_v31, 4  ;;  %v979_v43 = vrot.slane %v977_v32, 7  ;;  %v700_v45 = vpop.f32.mrf.mxu0  ;;  %v709_v52 = vadd.f32 %v6430_v35, %v7434_v28 }
 0x143   : > { %v960_v44 = vshrl.u32 %v5945_v34, 16  ;;  %v5948_v48 = vpack.c.bf16 %v802_v39, %v802_v39  ;;  %v800_v51 = vmax.f32 %v688_v40, 0.0  ;;  %v963_v58 = vshll.u32 %v5945_v34, 16  ;;  %v1266_v31 = vld [vmem:[#allocation2 + $0x2c] sm:$0x1] }
 0x144   : > { %v940_v54 = vsel %vm7468_vm15, %v932_v13, %v939_v41  ;;  %v1253_v56 = vsel %vm7332_vm2, %v941_v42, %v1252_v38  ;;  %v982_v57 = vor.u32 %v980_v33, %v979_v43  ;;  %v6431_v59 = vpop.f32.mrf.mxu0  ;;  %v983_v60 = vrot.slane %v979_v43, 4 }
 0x145   : > { %1251 = vst.msk [vmem:[#allocation2 + $0x10] sm:$0xf] %vm313_vm5, %v940_v54  ;;  %1254 = vst [vmem:[#allocation2 + $0x14] sm:$0x1] %v1253_v56  ;;  %v962_v62 = vrot.slane %v960_v44, 7  ;;  %v985_v63 = vshrl.u32 %v5948_v48, 16  ;;  %v5946_v0 = vpack.c.bf16 %v800_v51, %v800_v51  ;;  %v701_v7 = vadd.f32 %v7434_v28, %v700_v45 }
 0x146   : > { %v1270_v1 = vsel %vm7454_vm14, %v982_v57, %v1269_v47  ;;  %v805_v5 = vmax.f32 %v709_v52, 0.0  ;;  %v712_v8 = vadd.f32 %v6431_v59, %v7434_v28  ;;  %v703_v9 = vpop.f32.mrf.mxu0  ;;  %v988_v12 = vshll.u32 %v5948_v48, 16  ;;  %v1283_v48 = vld [vmem:[#allocation2 + $0x48] sm:$0xf]  ;;  %v1276_v59 = vld [vmem:[#allocation2 + $0x3c] sm:$0xf] }
 0x147   : > { %1271 = vst [vmem:[#allocation2 + $0x30] sm:$0xf] %v1270_v1  ;;  %v965_v10 = vor.u32 %v963_v58, %v962_v62  ;;  %v987_v11 = vrot.slane %v985_v63, 7  ;;  %v968_v13 = vshrl.u32 %v5946_v0, 16  ;;  %v971_v16 = vshll.u32 %v5946_v0, 16 }
 0x148   : > { %v5951_v17 = vpack.c.bf16 %v805_v5, %v805_v5  ;;  %v803_v18 = vmax.f32 %v701_v7, 0.0  ;;  %v806_v19 = vmax.f32 %v712_v8, 0.0  ;;  %v6434_v20 = vpop.f32.mrf.mxu0  ;;  %v966_v30 = vrot.slane %v962_v62, 4 }
 0x149   : > { %v1263_v24 = vsel %vm7454_vm14, %v965_v10, %v1262_v4  ;;  %v990_v25 = vor.u32 %v988_v12, %v987_v11  ;;  %v992_v26 = vrot.slane %v987_v11, 4  ;;  %v970_v29 = vrot.slane %v968_v13, 7 }
 0x14a   : > { %1264 = vst [vmem:[#allocation2 + $0x24] sm:$0xf] %v1263_v24  ;;  %v1011_v32 = vshrl.u32 %v5951_v17, 16  ;;  %v5949_v33 = vpack.c.bf16 %v803_v18, %v803_v18  ;;  %v5952_v34 = vpack.c.bf16 %v806_v19, %v806_v19  ;;  %v716_v35 = vpop.f32.mrf.mxu0  ;;  %v1014_v41 = vshll.u32 %v5951_v17, 16  ;;  %v7516_v19 = vld [vmem:[#allocation2 + $0xc] sm:$0xf] }
 0x14b   : > { %v991_v36 = vsel %vm7468_vm15, %v983_v60, %v990_v25  ;;  %v1274_v37 = vsel %vm7332_vm2, %v992_v26, %v1273_v14  ;;  %v973_v38 = vor.u32 %v971_v16, %v970_v29  ;;  %v975_v39 = vrot.slane %v970_v29, 4 }
 0x14c   : > { %1272 = vst.msk [vmem:[#allocation2 + $0x34] sm:$0xf] %vm313_vm5, %v991_v36  ;;  %1275 = vst [vmem:[#allocation2 + $0x38] sm:$0x1] %v1274_v37  ;;  %v1013_v40 = vrot.slane %v1011_v32, 7  ;;  %v994_v42 = vshrl.u32 %v5949_v33, 16  ;;  %v6435_v44 = vpop.f32.mrf.mxu0  ;;  %v704_v52 = vadd.f32 %v7434_v28, %v703_v9  ;;  %v725_v62 = vadd.f32 %v6434_v20, %v7434_v28 }
 0x14d   : > { %v1019_v43 = vshrl.u32 %v5952_v34, 16  ;;  %v974_v45 = vsel %vm7468_vm15, %v966_v30, %v973_v38  ;;  %v1267_v47 = vsel %vm7332_vm2, %v975_v39, %v1266_v31  ;;  %v997_v51 = vshll.u32 %v5949_v33, 16  ;;  %v1287_v9 = vld [vmem:[#allocation2 + $0x50] sm:$0x1]  ;;  %v1280_v38 = vld [vmem:[#allocation2 + $0x44] sm:$0x1] }
 0x14e   : > { %1265 = vst.msk [vmem:[#allocation2 + $0x28] sm:$0xf] %vm313_vm5, %v974_v45  ;;  %1268 = vst [vmem:[#allocation2 + $0x2c] sm:$0x1] %v1267_v47  ;;  %v1016_v54 = vor.u32 %v1014_v41, %v1013_v40  ;;  %v996_v56 = vrot.slane %v994_v42, 7  ;;  %v1022_v58 = vshll.u32 %v5952_v34, 16  ;;  %v717_v63 = vadd.f32 %v7434_v28, %v716_v35  ;;  %v719_v1 = vpop.f32.mrf.mxu0 }
 0x14f   : > { %v1021_v57 = vrot.slane %v1019_v43, 7  ;;  %v804_v60 = vmax.f32 %v704_v52, 0.0  ;;  %v728_v0 = vadd.f32 %v6435_v44, %v7434_v28  ;;  %v1017_v4 = vrot.slane %v1013_v40, 4  ;;  %v7521_v36 = vld [vmem:[#allocation2 + $0x10] sm:$0xf] }
 0x150   : > { %v1284_v5 = vsel %vm7454_vm14, %v1016_v54, %v1283_v48  ;;  %v999_v7 = vor.u32 %v997_v51, %v996_v56  ;;  %v809_v12 = vmax.f32 %v725_v62, 0.0  ;;  %v807_v13 = vmax.f32 %v717_v63, 0.0  ;;  %v1297_v47 = vld [vmem:[#allocation2 + $0x60] sm:$0xf]  ;;  %v1290_v48 = vld [vmem:[#allocation2 + $0x54] sm:$0xf] }
 0x151   : > { %v1024_v8 = vor.u32 %v1022_v58, %v1021_v57  ;;  %1285 = vst [vmem:[#allocation2 + $0x48] sm:$0xf] %v1284_v5  ;;  %v1026_v10 = vrot.slane %v1021_v57, 4  ;;  %v5950_v11 = vpack.c.bf16 %v804_v60, %v804_v60  ;;  %v810_v17 = vmax.f32 %v728_v0, 0.0  ;;  %v7529_v58 = vld [vmem:[#allocation2 + $0x1c] sm:$0xf] }
 0x152   : > { %v1277_v14 = vsel %vm7454_vm14, %v999_v7, %v1276_v59  ;;  %v720_v18 = vadd.f32 %v7434_v28, %v719_v1  ;;  %v1000_v20 = vrot.slane %v996_v56, 4  ;;  %v5955_v26 = vpack.c.bf16 %v809_v12, %v809_v12  ;;  %v1301_v63 = vld [vmem:[#allocation2 + $0x68] sm:$0x1]  ;;  %v7536_v1 = vld [vmem:[#allocation2 + $0x18] sm:$0xf] }
 0x153   : > { %v1025_v16 = vsel %vm7468_vm15, %v1017_v4, %v1024_v8  ;;  %1278 = vst [vmem:[#allocation2 + $0x3c] sm:$0xf] %v1277_v14  ;;  %v1288_v24 = vsel %vm7332_vm2, %v1026_v10, %v1287_v9  ;;  %v1002_v25 = vshrl.u32 %v5950_v11, 16  ;;  %v1005_v29 = vshll.u32 %v5950_v11, 16  ;;  %v7541_v9 = vld [vmem:[#allocation2 + $0x24] sm:$0xf] }
 0x154   : > { %1286 = vst.msk [vmem:[#allocation2 + $0x4c] sm:$0xf] %vm313_vm5, %v1025_v16  ;;  %1289 = vst [vmem:[#allocation2 + $0x50] sm:$0x1] %v1288_v24  ;;  %v5953_v30 = vpack.c.bf16 %v807_v13, %v807_v13  ;;  %v5956_v31 = vpack.c.bf16 %v810_v17, %v810_v17  ;;  %v808_v32 = vmax.f32 %v720_v18, 0.0  ;;  %v1045_v34 = vshrl.u32 %v5955_v26, 16 }
 0x155   : > { %v1004_v33 = vrot.slane %v1002_v25, 7  ;;  %v1048_v35 = vshll.u32 %v5955_v26, 16  ;;  %v1425_v37 = vshrl.u32 %v7516_v19, 16  ;;  %v1428_v42 = vshll.u32 %v7516_v19, 16  ;;  %v7543_v10 = vld [vmem:[#allocation2 + $0x28] sm:$0xf] }
 0x156   : > { %v1028_v39 = vshrl.u32 %v5953_v30, 16  ;;  %v1031_v40 = vshll.u32 %v5953_v30, 16  ;;  %v1053_v41 = vshrl.u32 %v5956_v31, 16  ;;  %v1047_v45 = vrot.slane %v1045_v34, 7  ;;  %v6954_v16 = vld [vmem:[#allocation6 + $0x50] sm:$0xff]  }
 0x157   : > { %v1007_v43 = vor.u32 %v1005_v29, %v1004_v33  ;;  %v1009_v44 = vrot.slane %v1004_v33, 4  ;;  %v5954_v51 = vpack.c.bf16 %v808_v32, %v808_v32  ;;  %v1056_v56 = vshll.u32 %v5956_v31, 16  ;;  %v1294_v25 = vld [vmem:[#allocation2 + $0x5c] sm:$0x1]  ;;  %v7557_v26 = vld [vmem:[#allocation2 + $0x14] sm:$0x1] }
 0x158   : > { %v1030_v52 = vrot.slane %v1028_v39, 7  ;;  %v1055_v54 = vrot.slane %v1053_v41, 7  ;;  %v7527_v57 = vcombine.low %v7516_v19, %v7521_v36  ;;  %v1050_v62 = vor.u32 %v1048_v35, %v1047_v45  ;;  %v7568_v33 = vld [vmem:[#allocation2 + $0x30] sm:$0xf] }
 0x159   : > { %v1008_v59 = vsel %vm7468_vm15, %v1000_v20, %v1007_v43  ;;  %v1281_v60 = vsel %vm7332_vm2, %v1009_v44, %v1280_v38  ;;  %v1438_v0 = vshrl.u32 %v7521_v36, 16  ;;  %v1051_v4 = vrot.slane %v1047_v45, 4 }
 0x15a   : > { %1279 = vst.msk [vmem:[#allocation2 + $0x40] sm:$0xf] %vm313_vm5, %v1008_v59  ;;  %1282 = vst [vmem:[#allocation2 + $0x44] sm:$0x1] %v1281_v60  ;;  %v1033_v5 = vor.u32 %v1031_v40, %v1030_v52  ;;  %v1058_v7 = vor.u32 %v1056_v56, %v1055_v54  ;;  %v1060_v8 = vrot.slane %v1055_v54, 4  ;;  %6516 = vmatprep.mubr.msk.bf16.mxu0 %vm1633_vm9, %v7527_v57  ;;  %v1034_v12 = vrot.slane %v1030_v52, 4 }
 0x15b   : > { %v1298_v11 = vsel %vm7454_vm14, %v1050_v62, %v1297_v47  ;;  %v1036_v13 = vshrl.u32 %v5954_v51, 16  ;;  %v7549_v14 = vcombine.low %v7536_v1, %v7529_v58  ;;  %v1039_v24 = vshll.u32 %v5954_v51, 16  ;;  %v7571_v40 = vld [vmem:[#allocation2 + $0x34] sm:$0xf]  ;;  %v7582_v52 = vld [vmem:[#allocation2 + $0x20] sm:$0x1] }
 0x15c   : > { %1299 = vst [vmem:[#allocation2 + $0x60] sm:$0xf] %v1298_v11  ;;  %v1291_v17 = vsel %vm7454_vm14, %v1033_v5, %v1290_v48  ;;  %v1059_v18 = vsel %vm7468_vm15, %v1051_v4, %v1058_v7  ;;  %v1302_v20 = vsel %vm7332_vm2, %v1060_v8, %v1301_v63  ;;  %v1473_v30 = vshrl.u32 %v7541_v9, 16  ;;  %v7578_v47 = vld [vmem:[#allocation6 + $0x78] sm:$0xff]   ;;  %v7599_v11 = vld [vmem:[#allocation2 + $0x3c] sm:$0xf] }
 0x15d   : > { %1292 = vst [vmem:[#allocation2 + $0x54] sm:$0xf] %v1291_v17  ;;  %1300 = vst.msk [vmem:[#allocation2 + $0x64] sm:$0xf] %vm313_vm5, %v1059_v18  ;;  %v1038_v29 = vrot.slane %v1036_v13, 7  ;;  %6517 = vmatmul.mubr.msk.bf16.vlgmr.msra.gmra.mxu0 %vm1633_vm9, %v7549_v14  ;;  %v1476_v31 = vshll.u32 %v7541_v9, 16  ;;  %v7566_v32 = vcombine.low %v7541_v9, %v7543_v10  ;;  %v7594_v4 = vcombine.low %v7568_v33, %v7571_v40 }
 0x15e   : > { %1303 = vst [vmem:[#allocation2 + $0x68] sm:$0x1] %v1302_v20  ;;  %v1427_v34 = vrot.slane %v1425_v37, 4  ;;  %v1430_v35 = vrot.slane %v1428_v42, 5  ;;  %v1434_v38 = vshll.u32 %v7521_v36, 16  ;;  %v1440_v39 = vrot.slane %v1438_v0, 4  ;;  %6553 = vmatpush3.bf16.msra.mxu0 %v7428_v27 }
 0x15f   : > { %v1041_v41 = vor.u32 %v1039_v24, %v1038_v29  ;;  %v1043_v43 = vrot.slane %v1038_v29, 4  ;;  %v1486_v44 = vshrl.u32 %v7543_v10, 16  ;;  %6520 = vmatprep.mubr.msk.bf16.mxu0 %vm1633_vm9, %v7566_v32  ;;  %v1444_v45 = vshll.u32 %v7557_v26, 16  ;;  %6554 = vmatprep.subr.bf16.mxu0 %v6954_v16 }
 0x160   : > { %v1431_v37 = vor.u32 %v1430_v35, %v1427_v34  ;;  %v1436_v42 = vrot.slane %v1434_v38, 5  ;;  %v1497_v48 = vshrl.u32 %v7568_v33, 16  ;;  %v1500_v51 = vshll.u32 %v7568_v33, 16 }
 0x161   : > { %v1042_v27 = vsel %vm7468_vm15, %v1034_v12, %v1041_v41  ;;  %v1295_v54 = vsel %vm7332_vm2, %v1043_v43, %v1294_v25  ;;  %v1446_v56 = vrot.slane %v1444_v45, 5  ;;  %v1510_v59 = vshrl.u32 %v7571_v40, 16  ;;  %v7613_v41 = vld [vmem:[#allocation2 + $0x2c] sm:$0x1]  ;;  %v7615_v43 = vld [vmem:[#allocation2 + $0x48] sm:$0xf] }
 0x162   : > { %1293 = vst.msk [vmem:[#allocation2 + $0x58] sm:$0xf] %vm313_vm5, %v1042_v27  ;;  %1296 = vst [vmem:[#allocation2 + $0x5c] sm:$0x1] %v1295_v54  ;;  %v1432_v60 = vrot.slane %v1431_v37, 4  ;;  %v1441_v62 = vor.u32 %v1440_v39, %v1436_v42  ;;  %v1449_v63 = vshrl.u32 %v7536_v1, 16  ;;  %6555 = vmatpush3.bf16.msra.mxu0 %v6954_v16 }
 0x163   : > { %v1452_v0 = vshll.u32 %v7536_v1, 16  ;;  %v1458_v5 = vshll.u32 %v7529_v58, 16  ;;  %v1462_v7 = vshrl.u32 %v7529_v58, 16  ;;  %v1468_v8 = vshll.u32 %v7582_v52, 16  ;;  %6592 = vmatprep.subr.bf16.mxu0 %v7578_v47  ;;  %v7603_v16 = vld [vmem:[#allocation2 + $0x40] sm:$0xf] }
 0x164   : > { %v1442_v12 = vrot.slane %v1441_v62, 4  ;;  %v1451_v13 = vrot.slane %v1449_v63, 4  ;;  %v1958_v18 = vrot.slane %v7582_v52, 5  ;;  %v1437_v20 = vsel %vm7418_vm8, %v1432_v60, %v1436_v42  ;;  %v6955_v54 = vld [vmem:[#allocation6] sm:$0xff]   ;;  %v7664_v53 = vld [vmem:[#allocation2 + $0x44] sm:$0x1] }
 0x165   : > { %v1454_v17 = vrot.slane %v1452_v0, 5  ;;  %6521 = vmatmul.mubr.msk.bf16.gmra.mxu0 %vm1633_vm9, %v7594_v4  ;;  %v1460_v24 = vrot.slane %v1458_v5, 5  ;;  %v1464_v25 = vrot.slane %v1462_v7, 4  ;;  %v1470_v29 = vrot.slane %v1468_v8, 5  ;;  %v7624_v0 = vld [vmem:[#allocation2 + $0x4c] sm:$0xf] }
 0x166   : > { %v1447_v34 = vsel %vm7418_vm8, %v1442_v12, %v1446_v56  ;;  %v1521_v38 = vshrl.u32 %v7599_v11, 16  ;;  %v1524_v39 = vshll.u32 %v7599_v11, 16  ;;  %v7621_v42 = vcombine.low %v7599_v11, %v7603_v16 }
 0x167   : > { %v1455_v35 = vor.u32 %v1454_v17, %v1451_v13  ;;  %v7617_v45 = vcombine.low %v1437_v20, %v1447_v34  ;;  %v1465_v37 = vor.u32 %v1464_v25, %v1460_v24  ;;  %v1475_v27 = vrot.slane %v1473_v30, 4  ;;  %v7637_v17 = vld [vmem:[#allocation2 + $0x38] sm:$0x1] }
 0x168   : > { %v1478_v56 = vrot.slane %v1476_v31, 5  ;;  %v1482_v62 = vshll.u32 %v7543_v10, 16  ;;  %v1488_v63 = vrot.slane %v1486_v44, 4  ;;  %v1534_v7 = vshrl.u32 %v7603_v16, 16  ;;  %6524 = vmatprep.mubr.msk.bf16.mxu0 %vm1633_vm9, %v7621_v42 }
 0x169   : > { %v1456_v60 = vrot.slane %v1455_v35, 4  ;;  %6457 = vmatmul.mubr.msk.bf16.vlgmr.msra.gmra.mxu1 %vm1633_vm9, %v7617_v45  ;;  %v1466_v5 = vrot.slane %v1465_v37, 4  ;;  %v1492_v8 = vshll.u32 %v7613_v41, 16  ;;  %v1545_v30 = vshrl.u32 %v7615_v43, 16 }
 0x16a   : > { %6473 = vmatpush3.bf16.msra.mxu1 %v7416_v22  ;;  %v1479_v44 = vor.u32 %v1478_v56, %v1475_v27  ;;  %v1484_v12 = vrot.slane %v1482_v62, 5  ;;  %v1548_v13 = vshll.u32 %v7615_v43, 16  ;;  %v1558_v25 = vshrl.u32 %v7624_v0, 16  ;;  %v7646_v22 = vld [vmem:[#allocation6 + $0x28] sm:$0xff]  }
 0x16b   : > { %v1461_v31 = vsel %vm7418_vm8, %v1456_v60, %v1460_v24  ;;  %v1471_v20 = vsel %vm7418_vm8, %v1466_v5, %v1470_v29  ;;  %v7644_v34 = vcombine.low %v7615_v43, %v7624_v0  ;;  %v1499_v35 = vrot.slane %v1497_v48, 4  ;;  %6474 = vmatprep.subr.bf16.mxu1 %v6955_v54 }
 0x16c   : > { %v7648_v24 = vcombine.low %v1461_v31, %v1471_v20  ;;  %v1480_v37 = vrot.slane %v1479_v44, 4  ;;  %v1489_v27 = vor.u32 %v1488_v63, %v1484_v12  ;;  %v1502_v60 = vrot.slane %v1500_v51, 5 }
 0x16d   : > { %9541 = vst [vmem:[#allocation15_spill] sm:$0xff] %v7644_v34  ;;  %v1494_v56 = vrot.slane %v1492_v8, 5  ;;  %6525 = vmatmul.mubr.msk.bf16.gmra.mxu0 %vm1633_vm9, %v7644_v34  ;;  %v1506_v29 = vshll.u32 %v7571_v40, 16  ;;  %v1512_v62 = vrot.slane %v1510_v59, 4  ;;  %v1516_v48 = vshll.u32 %v7637_v17, 16 }
 0x16e   : > { %6460 = vmatprep.mubr.msk.bf16.mxu1 %vm1633_vm9, %v7648_v24  ;;  %v1490_v5 = vrot.slane %v1489_v27, 4  ;;  %v1503_v31 = vor.u32 %v1502_v60, %v1499_v35  ;;  %v5624_v63 = vrot.slane %v7516_v19, 9  ;;  %v1948_v51 = vrot.slane %v7521_v36, 5  ;;  %6475 = vmatpush3.bf16.msra.mxu1 %v6955_v54 }
 0x16f   : > { %v1485_v8 = vsel %vm7418_vm8, %v1480_v37, %v1484_v12  ;;  %v1508_v44 = vrot.slane %v1506_v29, 5  ;;  %v1518_v20 = vrot.slane %v1516_v48, 5  ;;  %v1523_v59 = vrot.slane %v1521_v38, 4  ;;  %6492 = vmatprep.subr.bf16.mxu1 %v7646_v22 }
 0x170   : > { %v1495_v49 = vsel %vm7418_vm8, %v1490_v5, %v1494_v56  ;;  %v1504_v27 = vrot.slane %v1503_v31, 4  ;;  %v1950_v35 = vrot.slane %v1948_v51, 4  ;;  %v1951_v19 = vrot.slane %v7557_v26, 5 }
 0x171   : > { %v7670_v60 = vcombine.low %v1485_v8, %v1495_v49  ;;  %v1513_v36 = vor.u32 %v1512_v62, %v1508_v44  ;;  %v1526_v54 = vrot.slane %v1524_v39, 5  ;;  %v1530_v12 = vshll.u32 %v7603_v16, 16 }
 0x172   : > { %v1949_v37 = vsel %vm7441_vm12, %v5624_v63, %v1948_v51  ;;  %v1952_v38 = vsel %vm7441_vm12, %v1950_v35, %v1951_v19  ;;  %v1536_v29 = vrot.slane %v1534_v7, 4  ;;  %v1540_v48 = vshll.u32 %v7664_v53, 16  ;;  %v7690_v35 = vld [vmem:[#allocation2 + $0x50] sm:$0x1] }
 0x173   : > { %6461 = vmatmul.mubr.msk.bf16.gmra.mxu1 %vm1633_vm9, %v7670_v60  ;;  %v1514_v56 = vrot.slane %v1513_v36, 4  ;;  %v7680_v26 = vcombine.low %v1949_v37, %v1952_v38  ;;  %v1527_v49 = vor.u32 %v1526_v54, %v1523_v59  ;;  %v1532_v62 = vrot.slane %v1530_v12, 5  ;;  %v7706_v38 = vld [vmem:[#allocation2 + $0x54] sm:$0xf] }
 0x174   : > { %v1509_v39 = vsel %vm7418_vm8, %v1504_v27, %v1508_v44  ;;  %v5625_v5 = vrot.slane %v7536_v1, 9  ;;  %v1955_v31 = vrot.slane %v7529_v58, 5  ;;  %v1547_v63 = vrot.slane %v1545_v30, 4 }
 0x175   : > { %v1519_v7 = vsel %vm7418_vm8, %v1514_v56, %v1518_v20  ;;  %6556 = vmatprep.mubr.msk.bf16.mxu0 %vm1633_vm9, %v7680_v26  ;;  %v1528_v51 = vrot.slane %v1527_v49, 4  ;;  %v1537_v8 = vor.u32 %v1536_v29, %v1532_v62  ;;  %v1550_v59 = vrot.slane %v1548_v13, 5  ;;  %v7713_v49 = vld [vmem:[#allocation2 + $0x58] sm:$0xf] }
 0x176   : > { %v7692_v19 = vcombine.low %v1509_v39, %v1519_v7  ;;  %v1542_v36 = vrot.slane %v1540_v48, 5  ;;  %v1957_v44 = vrot.slane %v1955_v31, 4  ;;  %v1554_v1 = vshll.u32 %v7624_v0, 16 }
 0x177   : > { %v1538_v27 = vrot.slane %v1537_v8, 4  ;;  %v1956_v58 = vsel %vm7441_vm12, %v5625_v5, %v1955_v31  ;;  %v1551_v30 = vor.u32 %v1550_v59, %v1547_v63  ;;  %v1560_v20 = vrot.slane %v1558_v25, 4  ;;  %v7718_v31 = vld [vmem:[#allocation2 + $0x5c] sm:$0x1] }
 0x178   : > { %6464 = vmatprep.mubr.msk.bf16.mxu1 %vm1633_vm9, %v7692_v19  ;;  %v1533_v54 = vsel %vm7418_vm8, %v1528_v51, %v1532_v62  ;;  %v1959_v13 = vsel %vm7441_vm12, %v1957_v44, %v1958_v18  ;;  %v1556_v12 = vrot.slane %v1554_v1, 5  ;;  %v1564_v37 = vshll.u32 %v7690_v35, 16  ;;  %v6958_v62 = vld [vmem:[#allocation6 + $0x70] sm:$0xff]  }
 0x179   : > { %v1543_v29 = vsel %vm7418_vm8, %v1538_v27, %v1542_v36  ;;  %v7710_v25 = vcombine.low %v1956_v58, %v1959_v13  ;;  %v1552_v48 = vrot.slane %v1551_v30, 4  ;;  %v1962_v56 = vrot.slane %v7543_v10, 5 }
 0x17a   : > { %v7715_v52 = vcombine.low %v1533_v54, %v1543_v29  ;;  %v1561_v39 = vor.u32 %v1560_v20, %v1556_v12  ;;  %v1566_v18 = vrot.slane %v1564_v37, 5  ;;  %v5626_v5 = vrot.slane %v7541_v9, 9  ;;  %v7745_v29 = vpop.f32.mrf.mxu0 }
 0x17b   : > { %6557 = vmatmul.mubr.msk.bf16.vlgmr.msra.gmra.mxu0 %vm1633_vm9, %v7710_v25  ;;  %v1557_v63 = vsel %vm7418_vm8, %v1552_v48, %v1556_v12  ;;  %v1964_v7 = vrot.slane %v1962_v56, 4  ;;  %v1965_v10 = vrot.slane %v7613_v41, 5  ;;  %v1569_v51 = vshrl.u32 %v7706_v38, 16 }
 0x17c   : > { %6465 = vmatmul.mubr.msk.bf16.gmra.mxu1 %vm1633_vm9, %v7715_v52  ;;  %v1562_v8 = vrot.slane %v1561_v39, 4  ;;  %v1572_v59 = vshll.u32 %v7706_v38, 16  ;;  %v1578_v9 = vshll.u32 %v7713_v49, 16  ;;  %v1582_v36 = vshrl.u32 %v7713_v49, 16  ;;  %6593 = vmatpush3.bf16.msra.mxu0 %v7578_v47 }
 0x17d   : > { %v1963_v44 = vsel %vm7441_vm12, %v5626_v5, %v1962_v56  ;;  %v1966_v41 = vsel %vm7441_vm12, %v1964_v7, %v1965_v10  ;;  %v1571_v1 = vrot.slane %v1569_v51, 4  ;;  %v1588_v27 = vshll.u32 %v7718_v31, 16  ;;  %6594 = vmatprep.subr.bf16.mxu0 %v6958_v62 }
 0x17e   : > { %v1567_v58 = vsel %vm7418_vm8, %v1562_v8, %v1566_v18  ;;  %v7739_v30 = vcombine.low %v1963_v44, %v1966_v41  ;;  %v1574_v20 = vrot.slane %v1572_v59, 5  ;;  %v1580_v54 = vrot.slane %v1578_v9, 5  ;;  %v7763_v9 = vld [vmem:[#allocation2 + $0x60] sm:$0xf] }
 0x17f   : > { %v7741_v13 = vcombine.low %v1557_v63, %v1567_v58  ;;  %v1584_v47 = vrot.slane %v1582_v36, 4  ;;  %v5627_v12 = vrot.slane %v7568_v33, 9  ;;  %v1969_v37 = vrot.slane %v7571_v40, 5  ;;  %v732_v36 = vpop.f32.mrf.mxu0 }
 0x180   : > { %6560 = vmatprep.mubr.msk.bf16.mxu0 %vm1633_vm9, %v7739_v30  ;;  %v1575_v48 = vor.u32 %v1574_v20, %v1571_v1  ;;  %v1590_v56 = vrot.slane %v1588_v27, 5  ;;  %v5628_v39 = vrot.slane %v7599_v11, 9  ;;  %v1976_v18 = vrot.slane %v7603_v16, 5  ;;  %6595 = vmatpush3.bf16.msra.mxu0 %v6958_v62  ;;  %v7772_v1 = vld [vmem:[#allocation2 + $0x64] sm:$0xf] }
 0x181   : > { %6468 = vmatprep.mubr.msk.bf16.mxu1 %vm1633_vm9, %v7741_v13  ;;  %v1585_v5 = vor.u32 %v1584_v47, %v1580_v54  ;;  %v1970_v33 = vsel %vm7441_vm12, %v5627_v12, %v1969_v37  ;;  %v1971_v40 = vrot.slane %v1969_v37, 4  ;;  %v1972_v63 = vrot.slane %v7637_v17, 5  ;;  %v1389_v27 = vld [vmem:[#allocation2 + $0x68] sm:$0x1] }
 0x182   : > { %v1576_v7 = vrot.slane %v1575_v48, 4  ;;  %v1977_v10 = vsel %vm7441_vm12, %v5628_v39, %v1976_v18  ;;  %v1978_v51 = vrot.slane %v1976_v18, 4  ;;  %v1979_v11 = vrot.slane %v7664_v53, 5  ;;  %v6439_v18 = vpop.f32.mrf.mxu0 }
 0x183   : > { %v1586_v8 = vrot.slane %v1585_v5, 4  ;;  %v1973_v16 = vsel %vm7441_vm12, %v1971_v40, %v1972_v63  ;;  %v5629_v62 = vrot.slane %v7615_v43, 9  ;;  %v1983_v59 = vrot.slane %v7624_v0, 5 }
 0x184   : > { %v1581_v17 = vsel %vm7418_vm8, %v1576_v7, %v1580_v54  ;;  %v7767_v44 = vcombine.low %v1970_v33, %v1973_v16  ;;  %v1980_v41 = vsel %vm7441_vm12, %v1978_v51, %v1979_v11  ;;  %v1986_v53 = vrot.slane %v7690_v35, 5 }
 0x185   : > { %v1591_v43 = vsel %vm7418_vm8, %v1586_v8, %v1590_v56  ;;  %v7776_v0 = vcombine.low %v1977_v10, %v1980_v41  ;;  %v1985_v58 = vrot.slane %v1983_v59, 4  ;;  %v5630_v20 = vrot.slane %v7706_v38, 9  ;;  %v355_v8 = vld [vmem:[#allocation2 + $0x78] sm:$0x1] }
 0x186   : > { %v7779_v47 = vcombine.low %v1581_v17, %v1591_v43  ;;  %6561 = vmatmul.mubr.msk.bf16.gmra.mxu0 %vm1633_vm9, %v7767_v44  ;;  %v1984_v54 = vsel %vm7441_vm12, %v5629_v62, %v1983_v59  ;;  %v1990_v35 = vrot.slane %v7713_v49, 5  ;;  %v1993_v12 = vrot.slane %v7718_v31, 5  ;;  %v352_v59 = vld [vmem:[#allocation2 + $0x6c] sm:$0x1]  ;;  %v735_v43 = vpop.f32.mrf.mxu0 }
 0x187   : > { %6564 = vmatprep.mubr.msk.bf16.mxu0 %vm1633_vm9, %v7776_v0  ;;  %v1987_v37 = vsel %vm7441_vm12, %v1985_v58, %v1986_v53  ;;  %v5671_v48 = vrot.slane %v7763_v9, 9  ;;  %v2474_v56 = vrot.slane %v7772_v1, 5  ;;  %v2477_v39 = vrot.slane %v1389_v27, 5  ;;  %v411_v53 = vld [vmem:[#allocation2 + $0x80] sm:$0x1] }
 0x188   : > { %6469 = vmatmul.mubr.msk.bf16.gmra.mxu1 %vm1633_vm9, %v7779_v47  ;;  %v7795_v5 = vcombine.low %v1984_v54, %v1987_v37  ;;  %v1992_v33 = vrot.slane %v1990_v35, 4  ;;  %v7799_v31 = vcombine.low %v7706_v38, %v7713_v49  ;;  %v2312_v40 = vshrl.u32 %v7763_v9, 16 }
 0x189   : > { %v9542_v63 = vcombine.low %v7408_v2, %v7410_v3  ;;  %v1991_v7 = vsel %vm7441_vm12, %v5630_v20, %v1990_v35  ;;  %v2476_v10 = vrot.slane %v2474_v56, 4  ;;  %v2315_v51 = vshll.u32 %v7763_v9, 16 }
 0x18a   : > { %v2321_v11 = vshll.u32 %v7772_v1, 16  ;;  %v1994_v38 = vsel %vm7441_vm12, %v1992_v33, %v1993_v12  ;;  %v2314_v49 = vrot.slane %v2312_v40, 4  ;;  %v2325_v16 = vshrl.u32 %v7772_v1, 16  ;;  %v408_v12 = vld [vmem:[#allocation2 + $0x74] sm:$0x1]  ;;  %v6442_v33 = vpop.f32.mrf.mxu0  ;;  %v6959_v40 = vld [vmem:[#allocation6 + $0x20] sm:$0xff]  }
 0x18b   : > { %6476 = vmatprep.mubr.msk.bf16.mxu1 %vm1633_vm9, %v9542_v63  ;;  %v2331_v62 = vshll.u32 %v1389_v27, 16  ;;  %v2475_v2 = vsel %vm7441_vm12, %v5671_v48, %v2474_v56  ;;  %v2478_v3 = vsel %vm7441_vm12, %v2476_v10, %v2477_v39  ;;  %v2317_v17 = vrot.slane %v2315_v51, 5  ;;  %v361_v39 = vld [vmem:[#allocation2 + $0x90] sm:$0x1] }
 0x18c   : > { %v2323_v41 = vrot.slane %v2321_v11, 5  ;;  %v7817_v58 = vcombine.low %v1991_v7, %v1994_v38  ;;  %v7819_v20 = vcombine.low %v2475_v2, %v2478_v3  ;;  %v2327_v54 = vrot.slane %v2325_v16, 4  ;;  %v358_v3 = vld [vmem:[#allocation2 + $0x84] sm:$0x1] }
 0x18d   : > { %v2333_v35 = vrot.slane %v2331_v62, 5  ;;  %v2318_v37 = vor.u32 %v2317_v17, %v2314_v49  ;;  %v356_v27 = vsel %vm7332_vm2, 0, %v355_v8  ;;  %v741_v48 = vadd.f32 %v7745_v29, %v7434_v28  ;;  %v748_v17 = vpop.f32.mrf.mxu0 }
 0x18e   : > { %9543 = vst [vmem:[#allocation16_spill] sm:$0xff] %v7819_v20  ;;  %v353_v56 = vsel %vm7332_vm2, 0, %v352_v59  ;;  %6565 = vmatmul.mubr.msk.bf16.gmra.mxu0 %vm1633_vm9, %v7795_v5  ;;  %v2328_v63 = vor.u32 %v2327_v54, %v2323_v41  ;;  %357 = vst [vmem:[#allocation2 + $0x78] sm:$0x1] %v356_v27  ;;  %v733_v7 = vadd.f32 %v7434_v28, %v732_v36  ;;  %v412_v10 = vsel %vm7358_vm4, 0, %v411_v53 }
 0x18f   : > { %354 = vst [vmem:[#allocation2 + $0x6c] sm:$0x1] %v353_v56  ;;  %v744_v51 = vadd.f32 %v6439_v18, %v7434_v28  ;;  %6568 = vmatprep.mubr.msk.bf16.mxu0 %vm1633_vm9, %v7817_v58  ;;  %v2319_v29 = vrot.slane %v2318_v37, 4  ;;  %v813_v11 = vmax.f32 %v741_v48, 0.0  ;;  %413 = vst [vmem:[#allocation2 + $0x80] sm:$0x1] %v412_v10  ;;  %v736_v38 = vadd.f32 %v7434_v28, %v735_v43  ;;  %v6443_v48 = vpop.f32.mrf.mxu0 }
 0x190   : > { %v409_v8 = vsel %vm7358_vm4, 0, %v408_v12  ;;  %6477 = vmatmul.mubr.msk.bf16.vlgmr.msra.gmra.mxu1 %vm1633_vm9, %v7527_v57  ;;  %v2329_v36 = vrot.slane %v2328_v63, 4  ;;  %v811_v49 = vmax.f32 %v733_v7, 0.0  ;;  %v362_v18 = vsel %vm7332_vm2, 0, %v361_v39  ;;  %v7850_v57 = vld [vmem:[%s9450_s2] ss:$0 sm:$0xff] }
 0x191   : > { %v814_v16 = vmax.f32 %v744_v51, 0.0  ;;  %410 = vst [vmem:[#allocation2 + $0x74] sm:$0x1] %v409_v8  ;;  %6493 = vmatpush3.bf16.msra.mxu1 %v7646_v22  ;;  %6480 = vmatprep.mubr.msk.bf16.mxu1 %vm1633_vm9, %v7549_v14  ;;  %v2324_v62 = vsel %vm7418_vm8, %v2319_v29, %v2323_v41  ;;  %v5959_v59 = vpack.c.bf16 %v813_v11, %v813_v11  ;;  %v812_v28 = vmax.f32 %v736_v38, 0.0  ;;  %v751_v11 = vpop.f32.mrf.mxu0  ;;  %v7863_v8 = vld [vmem:[#allocation6 + $0x38] sm:$0xff]  }
 0x192   : > { %363 = vst [vmem:[#allocation2 + $0x90] sm:$0x1] %v362_v18  ;;  %v757_v2 = vadd.f32 %v7850_v57, %v6442_v33  ;;  %6494 = vmatprep.subr.bf16.mxu1 %v6959_v40  ;;  %v2334_v22 = vsel %vm7418_vm8, %v2329_v36, %v2333_v35  ;;  %v5957_v53 = vpack.c.bf16 %v811_v49, %v811_v49  ;;  %v359_v41 = vsel %vm7332_vm2, 0, %v358_v3 }
 0x193   : > { %v5960_v43 = vpack.c.bf16 %v814_v16, %v814_v16  ;;  %v7857_v54 = vcombine.low %v2324_v62, %v2334_v22  ;;  %v1079_v12 = vshrl.u32 %v5959_v59, 16  ;;  %v1082_v37 = vshll.u32 %v5959_v59, 16  ;;  %360 = vst [vmem:[#allocation2 + $0x84] sm:$0x1] %v359_v41 }
 0x194   : > { %v5958_v27 = vpack.c.bf16 %v812_v28, %v812_v28  ;;  %v1062_v56 = vshrl.u32 %v5957_v53, 16  ;;  %v1065_v39 = vshll.u32 %v5957_v53, 16  ;;  %v749_v51 = vadd.f32 %v7850_v57, %v748_v17  ;;  %v6446_v17 = vpop.f32.mrf.mxu0 }
 0x195   : > { %v1087_v33 = vshrl.u32 %v5960_v43, 16  ;;  %v1090_v63 = vshll.u32 %v5960_v43, 16  ;;  %6495 = vmatpush3.bf16.msra.mxu1 %v6959_v40  ;;  %v1081_v7 = vrot.slane %v1079_v12, 7  ;;  %v1311_v10 = vld [vmem:[#allocation2 + $0x78] sm:$0xf]  ;;  %v760_v29 = vadd.f32 %v7850_v57, %v6443_v48 }
 0x196   : > { %v1070_v35 = vshrl.u32 %v5958_v27, 16  ;;  %6569 = vmatmul.mubr.msk.bf16.gmra.mxu0 %vm1633_vm9, %v7819_v20  ;;  %6852 = vmatprep.subr.bf16.mxu1 %v7863_v8  ;;  %v1064_v38 = vrot.slane %v1062_v56, 7  ;;  %v1304_v36 = vld [vmem:[#allocation2 + $0x6c] sm:$0xf]  ;;  %v1073_v16 = vshll.u32 %v5958_v27, 16  ;;  %v817_v40 = vmax.f32 %v757_v2, 0.0 }
 0x197   : > { %v1089_v49 = vrot.slane %v1087_v33, 7  ;;  %6596 = vmatprep.mubr.msk.bf16.mxu0 %vm1633_vm9, %v7648_v24  ;;  %v1084_v18 = vor.u32 %v1082_v37, %v1081_v7  ;;  %v1085_v62 = vrot.slane %v1081_v7, 4  ;;  %v1315_v59 = vld [vmem:[#allocation2 + $0x80] sm:$0x1]  ;;  %v815_v3 = vmax.f32 %v749_v51, 0.0  ;;  %v764_v33 = vpop.f32.mrf.mxu0 }
 0x198   : > { %v1072_v28 = vrot.slane %v1070_v35, 7  ;;  %6481 = vmatmul.mubr.msk.bf16.gmra.mxu1 %vm1633_vm9, %v7566_v32  ;;  %v1067_v22 = vor.u32 %v1065_v39, %v1064_v38  ;;  %v1068_v53 = vrot.slane %v1064_v38, 4  ;;  %v1308_v12 = vld [vmem:[#allocation2 + $0x74] sm:$0x1]  ;;  %v5963_v48 = vpack.c.bf16 %v817_v40, %v817_v40  ;;  %v417_v56 = vld [vmem:[#allocation2 + $0x98] sm:$0x1] }
 0x199   : > { %v1092_v43 = vor.u32 %v1090_v63, %v1089_v49  ;;  %v1094_v41 = vrot.slane %v1089_v49, 4  ;;  %6484 = vmatprep.mubr.msk.bf16.mxu1 %vm1633_vm9, %v7594_v4  ;;  %v1312_v2 = vsel %vm7454_vm14, %v1084_v18, %v1311_v10  ;;  %v5961_v35 = vpack.c.bf16 %v815_v3, %v815_v3  ;;  %v414_v51 = vld [vmem:[#allocation2 + $0x8c] sm:$0x1]  ;;  %v367_v38 = vld [vmem:[#allocation2 + $0xa8] sm:$0x1]  ;;  %v6447_v3 = vpop.f32.mrf.mxu0 }
 0x19a   : > { %v1075_v37 = vor.u32 %v1073_v16, %v1072_v28  ;;  %v1077_v27 = vrot.slane %v1072_v28, 4  ;;  %1313 = vst [vmem:[#allocation2 + $0x78] sm:$0xf] %v1312_v2  ;;  %v1305_v7 = vsel %vm7454_vm14, %v1067_v22, %v1304_v36  ;;  %v1113_v36 = vshrl.u32 %v5963_v48, 16  ;;  %v364_v40 = vld [vmem:[#allocation2 + $0x9c] sm:$0x1] }
 0x19b   : > { %v1093_v39 = vsel %vm7468_vm15, %v1085_v62, %v1092_v43  ;;  %v1316_v63 = vsel %vm7332_vm2, %v1094_v41, %v1315_v59  ;;  %1306 = vst [vmem:[#allocation2 + $0x6c] sm:$0xf] %v1305_v7  ;;  %v1116_v16 = vshll.u32 %v5963_v48, 16  ;;  %v1096_v18 = vshrl.u32 %v5961_v35, 16 }
 0x19c   : > { %1314 = vst.msk [vmem:[#allocation2 + $0x7c] sm:$0xf] %vm313_vm5, %v1093_v39  ;;  %1317 = vst [vmem:[#allocation2 + $0x80] sm:$0x1] %v1316_v63  ;;  %v1076_v10 = vsel %vm7468_vm15, %v1068_v53, %v1075_v37  ;;  %v1309_v49 = vsel %vm7332_vm2, %v1077_v27, %v1308_v12  ;;  %v1099_v62 = vshll.u32 %v5961_v35, 16  ;;  %v418_v59 = vsel %vm7358_vm4, 0, %v417_v56 }
 0x19d   : > { %1307 = vst.msk [vmem:[#allocation2 + $0x70] sm:$0xf] %vm313_vm5, %v1076_v10  ;;  %1310 = vst [vmem:[#allocation2 + $0x74] sm:$0x1] %v1309_v49  ;;  %v818_v28 = vmax.f32 %v760_v29, 0.0  ;;  %v7888_v22 = vrot.slane %v1113_v36, 7  ;;  %v752_v43 = vadd.f32 %v7850_v57, %v751_v11  ;;  %v773_v29 = vadd.f32 %v7850_v57, %v6446_v17  ;;  %v7911_v10 = vpop.f32.mrf.mxu0 }
 0x19e   : > { %419 = vst [vmem:[#allocation2 + $0x98] sm:$0x1] %v418_v59  ;;  %v415_v53 = vsel %vm7358_vm4, 0, %v414_v51  ;;  %v368_v41 = vsel %vm7332_vm2, 0, %v367_v38  ;;  %6597 = vmatmul.mubr.msk.bf16.vlgmr.msra.gmra.mxu0 %vm1633_vm9, %v7670_v60  ;;  %v1325_v12 = vld [vmem:[#allocation2 + $0x90] sm:$0xf]  ;;  %v765_v39 = vadd.f32 %v7850_v57, %v764_v33 }
 0x19f   : > { %v7897_v2 = vrot.slane %v1096_v18, 7  ;;  %v5964_v37 = vpack.c.bf16 %v818_v28, %v818_v28  ;;  %416 = vst [vmem:[#allocation2 + $0x8c] sm:$0x1] %v415_v53  ;;  %369 = vst [vmem:[#allocation2 + $0xa8] sm:$0x1] %v368_v41  ;;  %v365_v27 = vsel %vm7332_vm2, 0, %v364_v40  ;;  %6600 = vmatprep.mubr.msk.bf16.mxu0 %vm1633_vm9, %v7692_v19  ;;  %v1118_v11 = vor.u32 %v1116_v16, %v7888_v22 }
 0x1a0   : > { %v1119_v48 = vrot.slane %v7888_v22, 4  ;;  %v1318_v56 = vld [vmem:[#allocation2 + $0x84] sm:$0xf]  ;;  %v816_v7 = vmax.f32 %v752_v43, 0.0  ;;  %366 = vst [vmem:[#allocation2 + $0x9c] sm:$0x1] %v365_v27  ;;  %6485 = vmatmul.mubr.msk.bf16.gmra.mxu1 %vm1633_vm9, %v7621_v42  ;;  %v776_v28 = vadd.f32 %v7850_v57, %v6447_v3 }
 0x1a1   : > { %v423_v63 = vld [vmem:[#allocation2 + $0xb0] sm:$0x1]  ;;  %v1101_v17 = vor.u32 %v1099_v62, %v7897_v2  ;;  %v1121_v51 = vshrl.u32 %v5964_v37, 16  ;;  %v1124_v38 = vshll.u32 %v5964_v37, 16  ;;  %6488 = vmatprep.mubr.msk.bf16.mxu1 %vm1633_vm9, %v7644_v34  ;;  %v1326_v49 = vsel %vm7454_vm14, %v1118_v11, %v1325_v12 }
 0x1a2   : > { %v5962_v36 = vpack.c.bf16 %v816_v7, %v816_v7  ;;  %v821_v33 = vmax.f32 %v773_v29, 0.0  ;;  %v819_v16 = vmax.f32 %v765_v39, 0.0  ;;  %v7917_v40 = vld [vmem:[#allocation2 + $0x6c] sm:$0xf]  ;;  %1327 = vst [vmem:[#allocation2 + $0x90] sm:$0xf] %v1326_v49  ;;  %v7935_v7 = vpop.f32.mrf.mxu0 }
 0x1a3   : > { %v1319_v18 = vsel %vm7454_vm14, %v1101_v17, %v1318_v56  ;;  %v1123_v62 = vrot.slane %v1121_v51, 7  ;;  %v424_v59 = vsel %vm7358_vm4, 0, %v423_v63  ;;  %v2754_v43 = vshrl.u32 %v7917_v40, 16 }
 0x1a4   : > { %v7924_v22 = vld [vmem:[#allocation2 + $0x70] sm:$0xf]  ;;  %v7926_v53 = vld [vmem:[#allocation2 + $0x74] sm:$0x1]  ;;  %v2757_v41 = vshll.u32 %v7917_v40, 16  ;;  %v5967_v12 = vpack.c.bf16 %v821_v33, %v821_v33  ;;  %v5965_v37 = vpack.c.bf16 %v819_v16, %v819_v16  ;;  %v780_v35 = vpop.f32.mrf.mxu0 }
 0x1a5   : > { %1320 = vst [vmem:[#allocation2 + $0x84] sm:$0xf] %v1319_v18  ;;  %425 = vst [vmem:[#allocation2 + $0xb0] sm:$0x1] %v424_v59  ;;  %v2763_v29 = vshll.u32 %v7924_v22, 16  ;;  %v2767_v27 = vshrl.u32 %v7924_v22, 16  ;;  %v1126_v17 = vor.u32 %v1124_v38, %v1123_v62 }
 0x1a6   : > { %v2773_v11 = vshll.u32 %v7926_v53, 16  ;;  %v1329_v56 = vld [vmem:[#allocation2 + $0x98] sm:$0x1]  ;;  %v2756_v39 = vrot.slane %v2754_v43, 4  ;;  %v2759_v63 = vrot.slane %v2757_v41, 5  ;;  %v1128_v51 = vrot.slane %v1123_v62, 4  ;;  %6601 = vmatmul.mubr.msk.bf16.gmra.mxu0 %vm1633_vm9, %v7715_v52 }
 0x1a7   : > { %v2765_v49 = vrot.slane %v2763_v29, 5  ;;  %v2769_v33 = vrot.slane %v2767_v27, 4  ;;  %v1104_v18 = vshrl.u32 %v5962_v36, 16  ;;  %6604 = vmatprep.mubr.msk.bf16.mxu0 %vm1633_vm9, %v7741_v13  ;;  %v1127_v3 = vsel %vm7468_vm15, %v1119_v48, %v1126_v17 }
 0x1a8   : > { %v2775_v16 = vrot.slane %v2773_v11, 5  ;;  %v2760_v59 = vor.u32 %v2759_v63, %v2756_v39  ;;  %v1330_v43 = vsel %vm7332_vm2, %v1128_v51, %v1329_v56  ;;  %v1107_v41 = vshll.u32 %v5962_v36, 16  ;;  %6489 = vmatmul.mubr.msk.bf16.gmra.mxu1 %vm1633_vm9, %v7799_v31  ;;  %1328 = vst.msk [vmem:[#allocation2 + $0x94] sm:$0xf] %vm313_vm5, %v1127_v3  ;;  %v420_v11 = vld [vmem:[#allocation2 + $0xa4] sm:$0x1] }
 0x1a9   : > { %v2770_v38 = vor.u32 %v2769_v33, %v2765_v49  ;;  %1331 = vst [vmem:[#allocation2 + $0x98] sm:$0x1] %v1330_v43  ;;  %v1106_v62 = vrot.slane %v1104_v18, 7  ;;  %v1147_v29 = vshrl.u32 %v5967_v12, 16  ;;  %v1150_v27 = vshll.u32 %v5967_v12, 16 }
 0x1aa   : > { %v9544_v39 = vcombine.low %v7450_v50, %v7461_v61  ;;  %v2761_v48 = vrot.slane %v2760_v59, 4  ;;  %v1322_v56 = vld [vmem:[#allocation2 + $0x8c] sm:$0x1]  ;;  %v1130_v36 = vshrl.u32 %v5965_v37, 16  ;;  %v1133_v63 = vshll.u32 %v5965_v37, 16 }
 0x1ab   : > { %v822_v17 = vmax.f32 %v776_v28, 0.0  ;;  %v2771_v51 = vrot.slane %v2770_v38, 4  ;;  %v1109_v33 = vor.u32 %v1107_v41, %v1106_v62  ;;  %v1111_v20 = vrot.slane %v1106_v62, 4  ;;  %v1339_v18 = vld [vmem:[#allocation2 + $0xa8] sm:$0xf] }
 0x1ac   : > { %6496 = vmatprep.mubr.msk.bf16.mxu1 %vm1633_vm9, %v9544_v39  ;;  %v7952_v3 = vrot.slane %v1147_v29, 7  ;;  %v2766_v12 = vsel %vm7418_vm8, %v2761_v48, %v2765_v49  ;;  %v7956_v43 = vrot.slane %v1130_v36, 7  ;;  %v421_v50 = vsel %vm7358_vm4, 0, %v420_v11  ;;  %v1332_v41 = vld [vmem:[#allocation2 + $0x9c] sm:$0xf]  ;;  %v6451_v29 = vpop.f32.mrf.mxu0 }
 0x1ad   : > { %v5968_v34 = vpack.c.bf16 %v822_v17, %v822_v17  ;;  %v2776_v61 = vsel %vm7418_vm8, %v2771_v51, %v2775_v16  ;;  %v9545_v28 = vrot.slane %v7897_v2, 4  ;;  %v1323_v59 = vsel %vm7332_vm2, %v1111_v20, %v1322_v56  ;;  %422 = vst [vmem:[#allocation2 + $0xa4] sm:$0x1] %v421_v50  ;;  %v373_v38 = vld [vmem:[#allocation2 + $0xc0] sm:$0x1] }
 0x1ae   : > { %v1152_v49 = vor.u32 %v1150_v27, %v7952_v3  ;;  %v370_v62 = vld [vmem:[#allocation2 + $0xb4] sm:$0x1]  ;;  %v5694_v39 = vcombine.low %v2766_v12, %v2776_v61  ;;  %1324 = vst [vmem:[#allocation2 + $0x8c] sm:$0x1] %v1323_v59  ;;  %v1153_v16 = vrot.slane %v7952_v3, 4  ;;  %v1135_v2 = vor.u32 %v1133_v63, %v7956_v43  ;;  %6605 = vmatmul.mubr.msk.bf16.gmra.mxu0 %vm1633_vm9, %v7779_v47  ;;  %v783_v50 = vpop.f32.mrf.mxu0  ;;  %v8001_v59 = vld [vmem:[#allocation6 + $0x48] sm:$0xff]  }
 0x1af   : > { %v1110_v37 = vsel %vm7468_vm15, %v9545_v28, %v1109_v33  ;;  %v1136_v11 = vrot.slane %v7956_v43, 4  ;;  %v429_v48 = vld [vmem:[#allocation2 + $0xc8] sm:$0x1]  ;;  %v1155_v27 = vshrl.u32 %v5968_v34, 16  ;;  %v1158_v56 = vshll.u32 %v5968_v34, 16  ;;  %6608 = vmatprep.mubr.msk.bf16.mxu0 %vm1633_vm9, %v7857_v54 }
 0x1b0   : > { %1321 = vst.msk [vmem:[#allocation2 + $0x88] sm:$0xf] %vm313_vm5, %v1110_v37  ;;  %v1340_v20 = vsel %vm7454_vm14, %v1152_v49, %v1339_v18  ;;  %v768_v36 = vadd.f32 %v7850_v57, %v7911_v10  ;;  %v426_v17 = vld [vmem:[#allocation2 + $0xbc] sm:$0x1]  ;;  %v1333_v63 = vsel %vm7454_vm14, %v1135_v2, %v1332_v41  ;;  %v374_v51 = vsel %vm7332_vm2, 0, %v373_v38  ;;  %6497 = vmatmul.mubr.msk.bf16.vlgmr.msra.gmra.mxu1 %vm1633_vm9, %v7680_v26 }
 0x1b1   : > { %1341 = vst [vmem:[#allocation2 + $0xa8] sm:$0xf] %v1340_v20  ;;  %v789_v33 = vadd.f32 %v7850_v57, %v7935_v7  ;;  %v371_v34 = vsel %vm7332_vm2, 0, %v370_v62  ;;  %1334 = vst [vmem:[#allocation2 + $0x9c] sm:$0xf] %v1333_v63  ;;  %v1157_v10 = vrot.slane %v1155_v27, 7  ;;  %v781_v12 = vadd.f32 %v7850_v57, %v780_v35  ;;  %6854 = vmatpush3.bf16.msra.mxu1 %v7863_v8 }
 0x1b2   : > { %v820_v3 = vmax.f32 %v768_v36, 0.0  ;;  %375 = vst [vmem:[#allocation2 + $0xc0] sm:$0x1] %v374_v51  ;;  %372 = vst [vmem:[#allocation2 + $0xb4] sm:$0x1] %v371_v34  ;;  %v430_v18 = vsel %vm7358_vm4, 0, %v429_v48  ;;  %6500 = vmatprep.mubr.msk.bf16.mxu1 %vm1633_vm9, %v7710_v25  ;;  %v792_v26 = vadd.f32 %v7850_v57, %v6451_v29  ;;  %v784_v37 = vadd.f32 %v7850_v57, %v783_v50 }
 0x1b3   : > { %v1343_v7 = vld [vmem:[#allocation2 + $0xb0] sm:$0x1]  ;;  %v825_v61 = vmax.f32 %v789_v33, 0.0  ;;  %431 = vst [vmem:[#allocation2 + $0xc8] sm:$0x1] %v430_v18  ;;  %v427_v28 = vsel %vm7358_vm4, 0, %v426_v17  ;;  %v1160_v49 = vor.u32 %v1158_v56, %v1157_v10 }
 0x1b4   : > { %v7003_v35 = vld [vmem:[#allocation6 + $0x30] sm:$0xff]   ;;  %v1162_v41 = vrot.slane %v1157_v10, 4  ;;  %v5966_v8 = vpack.c.bf16 %v820_v3, %v820_v3  ;;  %v823_v38 = vmax.f32 %v781_v12, 0.0  ;;  %428 = vst [vmem:[#allocation2 + $0xbc] sm:$0x1] %v427_v28  ;;  %v826_v2 = vmax.f32 %v792_v26, 0.0 }
 0x1b5   : > { %6853 = vmatprep.subr.bf16.mxu1 %v7003_v35  ;;  %v5971_v62 = vpack.c.bf16 %v825_v61, %v825_v61  ;;  %v824_v48 = vmax.f32 %v784_v37, 0.0  ;;  %v5705_v20 = vrot.slane %v7917_v40, 9  ;;  %v1161_v29 = vsel %vm7468_vm15, %v1153_v16, %v1160_v49  ;;  %v1336_v3 = vld [vmem:[#allocation2 + $0xa4] sm:$0x1] }
 0x1b6   : > { %v1344_v57 = vsel %vm7332_vm2, %v1162_v41, %v1343_v7  ;;  %v1138_v27 = vshrl.u32 %v5966_v8, 16  ;;  %v1141_v36 = vshll.u32 %v5966_v8, 16  ;;  %6855 = vmatpush3.bf16.msra.mxu1 %v7003_v35  ;;  %1342 = vst.msk [vmem:[#allocation2 + $0xac] sm:$0xf] %vm313_vm5, %v1161_v29  ;;  %v5969_v63 = vpack.c.bf16 %v823_v38, %v823_v38  ;;  %6609 = vmatmul.mubr.msk.bf16.gmra.mxu0 %vm1633_vm9, %v5694_v39 }
 0x1b7   : > { %1345 = vst [vmem:[#allocation2 + $0xb0] sm:$0x1] %v1344_v57  ;;  %v1181_v56 = vshrl.u32 %v5971_v62, 16  ;;  %v1184_v17 = vshll.u32 %v5971_v62, 16  ;;  %v5972_v51 = vpack.c.bf16 %v826_v2, %v826_v2  ;;  %6532 = vmatprep.subr.bf16.mxu1 %v8001_v59  ;;  %v5970_v34 = vpack.c.bf16 %v824_v48, %v824_v48 }
 0x1b8   : > { %v1140_v33 = vrot.slane %v1138_v27, 7  ;;  %v2916_v16 = vrot.slane %v7924_v22, 5  ;;  %v2919_v10 = vrot.slane %v7926_v53, 5  ;;  %v1164_v18 = vshrl.u32 %v5969_v63, 16  ;;  %6501 = vmatmul.mubr.msk.bf16.gmra.mxu1 %vm1633_vm9, %v7739_v30 }
 0x1b9   : > { %v1183_v12 = vrot.slane %v1181_v56, 7  ;;  %v1167_v50 = vshll.u32 %v5969_v63, 16  ;;  %v1189_v7 = vshrl.u32 %v5972_v51, 16  ;;  %v1353_v28 = vld [vmem:[#allocation2 + $0xc0] sm:$0xf]  ;;  %v1192_v37 = vshll.u32 %v5972_v51, 16  ;;  %6504 = vmatprep.mubr.msk.bf16.mxu1 %vm1633_vm9, %v7767_v44 }
 0x1ba   : > { %v1143_v61 = vor.u32 %v1141_v36, %v1140_v33  ;;  %v1145_v26 = vrot.slane %v1140_v33, 4  ;;  %v8017_v39 = vsel %vm7441_vm12, %v5705_v20, %v2916_v16  ;;  %v1166_v49 = vrot.slane %v1164_v18, 7  ;;  %v1346_v62 = vld [vmem:[#allocation2 + $0xb4] sm:$0xf]  ;;  %v1357_v27 = vld [vmem:[#allocation2 + $0xc8] sm:$0x1] }
 0x1bb   : > { %v1186_v53 = vor.u32 %v1184_v17, %v1183_v12  ;;  %v1187_v35 = vrot.slane %v1183_v12, 4  ;;  %v1191_v41 = vrot.slane %v1189_v7, 7  ;;  %v1172_v2 = vshrl.u32 %v5970_v34, 16  ;;  %v1350_v51 = vld [vmem:[#allocation2 + $0xbc] sm:$0x1] }
 0x1bc   : > { %v1144_v8 = vsel %vm7468_vm15, %v1136_v11, %v1143_v61  ;;  %v1337_v38 = vsel %vm7332_vm2, %v1145_v26, %v1336_v3  ;;  %v1175_v48 = vshll.u32 %v5970_v34, 16  ;;  %v1169_v29 = vor.u32 %v1167_v50, %v1166_v49  ;;  %v8058_v50 = vld [vmem:[#allocation2 + $0x88] sm:$0xf]  ;;  %v6963_v61 = vld [vmem:[#allocation6 + $0x40] sm:$0xff]   ;;  %v6964_v26 = vld [vmem:[#allocation6 + $0x68] sm:$0xff]  }
 0x1bd   : > { %1335 = vst.msk [vmem:[#allocation2 + $0xa0] sm:$0xf] %vm313_vm5, %v1144_v8  ;;  %1338 = vst [vmem:[#allocation2 + $0xa4] sm:$0x1] %v1337_v38  ;;  %v1354_v20 = vsel %vm7454_vm14, %v1186_v53, %v1353_v28  ;;  %v1194_v57 = vor.u32 %v1192_v37, %v1191_v41  ;;  %v1170_v43 = vrot.slane %v1166_v49, 4  ;;  %v1196_v36 = vrot.slane %v1191_v41, 4 }
 0x1be   : > { %1355 = vst [vmem:[#allocation2 + $0xc0] sm:$0xf] %v1354_v20  ;;  %v1174_v56 = vrot.slane %v1172_v2, 7  ;;  %v2918_v11 = vrot.slane %v2916_v16, 4  ;;  %v1347_v17 = vsel %vm7454_vm14, %v1169_v29, %v1346_v62  ;;  %v5649_v7 = vcombine.low %v7763_v9, %v7772_v1  ;;  %v6965_v28 = vld [vmem:[#allocation6 + $0x60] sm:$0xff]   ;;  %v6966_v9 = vld [vmem:[#allocation6 + $0x88] sm:$0xff]  }
 0x1bf   : > { %v1195_v63 = vsel %vm7468_vm15, %v1187_v35, %v1194_v57  ;;  %1348 = vst [vmem:[#allocation2 + $0xb4] sm:$0xf] %v1347_v17  ;;  %v1358_v33 = vsel %vm7332_vm2, %v1196_v36, %v1357_v27  ;;  %v8080_v1 = vld [vmem:[#allocation2 + $0x60] sm:$0xf]  ;;  %v6967_v37 = vld [vmem:[#allocation6 + $0x80] sm:$0xff]  }
 0x1c0   : > { %1356 = vst.msk [vmem:[#allocation2 + $0xc4] sm:$0xf] %vm313_vm5, %v1195_v63  ;;  %v1177_v34 = vor.u32 %v1175_v48, %v1174_v56  ;;  %v1179_v3 = vrot.slane %v1174_v56, 4  ;;  %v8039_v12 = vsel %vm7441_vm12, %v2918_v11, %v2919_v10  ;;  %1359 = vst [vmem:[#allocation2 + $0xc8] sm:$0x1] %v1358_v33  ;;  %6505 = vmatmul.mubr.msk.bf16.gmra.mxu1 %vm1633_vm9, %v7776_v0  ;;  %v8131_v53 = vld [vmem:[#allocation6 + $0x28] sm:$0xff]  }
 0x1c1   : > { %v5706_v55 = vcombine.low %v8017_v39, %v8039_v12  ;;  %6508 = vmatprep.mubr.msk.bf16.mxu1 %vm1633_vm9, %v7795_v5  ;;  %v8056_v10 = vld [vmem:[#allocation2 + $0x84] sm:$0xf]  ;;  %9548 = vst [vmem:[#allocation19_spill] sm:$0xff] %v8080_v1  ;;  %v8136_v35 = vld [vmem:[#allocation2 + $0x68] sm:$0x1] }
 0x1c2   : > { %v1178_v16 = vsel %vm7468_vm15, %v1170_v43, %v1177_v34  ;;  %v1351_v18 = vsel %vm7332_vm2, %v1179_v3, %v1350_v51  ;;  %v8062_v15 = vcombine.low %v8056_v10, %v8058_v50  ;;  %v3454_v20 = vshll.u32 %v8136_v35, 16  ;;  %v8151_v57 = vld [vmem:[#allocation2 + $0x74] sm:$0x1]  ;;  %v8159_v3 = vld [vmem:[#allocation2 + $0x90] sm:$0xf] }
 0x1c3   : > { %1349 = vst.msk [vmem:[#allocation2 + $0xb8] sm:$0xf] %vm313_vm5, %v1178_v16  ;;  %1352 = vst [vmem:[#allocation2 + $0xbc] sm:$0x1] %v1351_v18  ;;  %v3478_v34 = vshll.u32 %v8151_v57, 16  ;;  %v3507_v18 = vshrl.u32 %v8056_v10, 16 }
 0x1c4   : > { %9546 = vst [vmem:[#allocation17_spill] sm:$0xff] %v8062_v15  ;;  %v3456_v33 = vrot.slane %v3454_v20, 5  ;;  %v376_v39 = vld [vmem:[#allocation2 + $0xcc] sm:$0x1] }
 0x1c6   : > { %v8256_v6 = vld [vmem:[#allocation2 + $0xb4] sm:$0xf] }
 0x1c8   : > { %6509 = vmatmul.mubr.msk.bf16.gmra.mxu1 %vm1633_vm9, %v7817_v58 }
 0x1c9   : > { %6528 = vmatprep.mubr.msk.bf16.mxu1 %vm1633_vm9, %v7799_v31 }
 0x1d0   : > { %6529 = vmatmul.mubr.msk.bf16.vlgmr.msra.gmra.mxu1 %vm1633_vm9, %v5649_v7 }
 0x1d1   : > { %6533 = vmatpush3.bf16.msra.mxu1 %v8001_v59  ;;  %6536 = vmatprep.mubr.msk.bf16.mxu1 %vm1633_vm9, %v7617_v45  ;;  %v8078_v45 = vld [vmem:[#allocation2 + $0x64] sm:$0xf]  ;;  %v8090_v59 = vld [vmem:[#allocation2 + $0x7c] sm:$0xf] }
 0x1d2   : > { %6534 = vmatprep.subr.bf16.mxu1 %v6963_v61  ;;  %9547 = vst [vmem:[#allocation18_spill] sm:$0xff] %v8078_v45  ;;  %v3492_v36 = vshll.u32 %v8090_v59, 16  ;;  %v3496_v56 = vshrl.u32 %v8090_v59, 16 }
 0x1d4   : > { %v3498_v16 = vrot.slane %v3496_v56, 4 }
 0x1d5   : > { %6535 = vmatpush3.bf16.msra.mxu1 %v6963_v61  ;;  %v8165_v61 = vld [vmem:[#allocation2 + $0x94] sm:$0xf] }
 0x1d6   : > { %6572 = vmatprep.subr.bf16.mxu1 %v6964_v26 }
 0x1d8   : > { %6537 = vmatmul.mubr.msk.bf16.vlgmr.msra.gmra.mxu1 %vm1633_vm9, %v7648_v24 }
 0x1d9   : > { %6573 = vmatpush3.bf16.msra.mxu1 %v6964_v26  ;;  %6540 = vmatprep.mubr.msk.bf16.mxu1 %vm1633_vm9, %v7670_v60  ;;  %v8088_v60 = vld [vmem:[#allocation2 + $0x78] sm:$0xf] }
 0x1da   : > { %6574 = vmatprep.subr.bf16.mxu1 %v6965_v28  ;;  %v3483_v38 = vshrl.u32 %v8088_v60, 16  ;;  %v3486_v62 = vshll.u32 %v8088_v60, 16 }
 0x1dc   : > { %v3485_v17 = vrot.slane %v3483_v38, 4  ;;  %v3488_v63 = vrot.slane %v3486_v62, 5  ;;  %v3509_v38 = vrot.slane %v3507_v18, 4 }
 0x1dd   : > { %6575 = vmatpush3.bf16.msra.mxu1 %v6965_v28 }
 0x1de   : > { %6612 = vmatprep.subr.bf16.mxu1 %v6966_v9 }
 0x1e0   : > { %6541 = vmatmul.mubr.msk.bf16.gmra.mxu1 %vm1633_vm9, %v7692_v19  ;;  %v8094_v19 = vcombine.low %v8088_v60, %v8090_v59 }
 0x1e1   : > { %6544 = vmatprep.mubr.msk.bf16.mxu1 %vm1633_vm9, %v7715_v52  ;;  %v8100_v52 = vld [vmem:[#allocation2 + $0x6c] sm:$0xf] }
 0x1e2   : > { %9549 = vst [vmem:[#allocation20_spill] sm:$0xff] %v8094_v19 }
 0x1e8   : > { %6545 = vmatmul.mubr.msk.bf16.gmra.mxu1 %vm1633_vm9, %v7741_v13  ;;  %v8102_v13 = vld [vmem:[#allocation2 + $0x70] sm:$0xf] }
 0x1e9   : > { %6548 = vmatprep.mubr.msk.bf16.mxu1 %vm1633_vm9, %v7779_v47  ;;  %v8106_v47 = vcombine.low %v8100_v52, %v8102_v13  ;;  %v3468_v49 = vshll.u32 %v8102_v13, 16  ;;  %v3472_v8 = vshrl.u32 %v8102_v13, 16 }
 0x1eb   : > { %9550 = vst [vmem:[#allocation21_spill] sm:$0xff] %v8106_v47  ;;  %v8153_v43 = vrot.slane %v3468_v49, 5 }
 0x1f0   : > { %6549 = vmatmul.mubr.msk.bf16.gmra.mxu1 %vm1633_vm9, %v7857_v54  ;;  %v6969_v54 = vld [vmem:[#allocation6 + $0x18] sm:$0xff]  }
 0x1f1   : > { %6576 = vmatprep.mubr.msk.bf16.mxu1 %vm1633_vm9, %v7549_v14  ;;  %v9551_v14 = vld [vmem:[#allocation15_spill] sm:$0xff] }
 0x1f8   : > { %6577 = vmatmul.mubr.msk.bf16.vlgmr.msra.gmra.mxu1 %vm1633_vm9, %v7566_v32  ;;  %v9552_v32 = vcombine.low %v7917_v40, %v7924_v22  ;;  %v3435_v40 = vshrl.u32 %v8080_v1, 16  ;;  %v3438_v22 = vshll.u32 %v8080_v1, 16 }
 0x1f9   : > { %6613 = vmatpush3.bf16.msra.mxu1 %v6966_v9  ;;  %6580 = vmatprep.mubr.msk.bf16.mxu1 %vm1633_vm9, %v7594_v4  ;;  %v6970_v4 = vld [vmem:[#allocation6 + $0x10] sm:$0xff]  }
 0x1fa   : > { %6614 = vmatprep.subr.bf16.mxu1 %v6967_v37  ;;  %v3437_v2 = vrot.slane %v3435_v40, 4  ;;  %v3440_v48 = vrot.slane %v3438_v22, 5  ;;  %v8176_v40 = vrot.slane %v3478_v34, 5  ;;  %v3540_v22 = vshll.u32 %v8165_v61, 16  ;;  %v8203_v34 = vld [vmem:[#allocation2 + $0x9c] sm:$0xf] }
 0x1fc   : > { %v3441_v51 = vor.u32 %v3440_v48, %v3437_v2 }
 0x1fd   : > { %6615 = vmatpush3.bf16.msra.mxu1 %v6967_v37  ;;  %v8168_v37 = vld [vmem:[#allocation2 + $0x80] sm:$0x1] }
 0x1fe   : > { %6652 = vmatprep.subr.bf16.mxu1 %v6969_v54 }
 0x200   : > { %6581 = vmatmul.mubr.msk.bf16.gmra.mxu1 %vm1633_vm9, %v7621_v42  ;;  %v3444_v42 = vshll.u32 %v8078_v45, 16 }
 0x201   : > { %6584 = vmatprep.mubr.msk.bf16.mxu1 %vm1633_vm9, %v9551_v14  ;;  %v3516_v14 = vshll.u32 %v8058_v50, 16 }
 0x208   : > { %6585 = vmatmul.mubr.msk.bf16.gmra.mxu1 %vm1633_vm9, %v7799_v31  ;;  %v3448_v31 = vshrl.u32 %v8078_v45, 16 }
 0x209   : > { %6588 = vmatprep.mubr.msk.bf16.mxu1 %vm1633_vm9, %v5649_v7  ;;  %v3510_v7 = vshll.u32 %v8056_v10, 16 }
 0x20a   : > { %v3450_v41 = vrot.slane %v3448_v31, 4  ;;  %v3442_v31 = vrot.slane %v3441_v51, 4  ;;  %v8201_v51 = vrot.slane %v3540_v22, 5 }
 0x20b   : > { %v3512_v62 = vrot.slane %v3510_v7, 5 }
 0x210   : > { %6589 = vmatmul.mubr.msk.bf16.gmra.mxu1 %vm1633_vm9, %v9552_v32  ;;  %v3520_v32 = vshrl.u32 %v8058_v50, 16 }
 0x211   : > { %6616 = vmatprep.mubr.msk.bf16.mxu1 %vm1633_vm9, %v7710_v25  ;;  %v3459_v25 = vshrl.u32 %v8100_v52, 16 }
 0x212   : > { %v3522_v56 = vrot.slane %v3520_v32, 4 }
 0x213   : > { %v3461_v29 = vrot.slane %v3459_v25, 4  ;;  %v3544_v25 = vshrl.u32 %v8165_v61, 16 }
 0x218   : > { %6617 = vmatmul.mubr.msk.bf16.vlgmr.msra.gmra.mxu1 %vm1633_vm9, %v7739_v30  ;;  %v8138_v30 = vrot.slane %v3444_v42, 5  ;;  %v3534_v42 = vshll.u32 %v8159_v3, 16 }
 0x219   : > { %6620 = vmatprep.mubr.msk.bf16.mxu1 %vm1633_vm9, %v7767_v44  ;;  %6653 = vmatpush3.bf16.msra.mxu1 %v6969_v54  ;;  %v3462_v44 = vshll.u32 %v8100_v52, 16  ;;  %v3489_v54 = vor.u32 %v3488_v63, %v3485_v17  ;;  %v8199_v63 = vld [vmem:[#allocation2 + $0x98] sm:$0x1] }
 0x21a   : > { %6654 = vmatprep.subr.bf16.mxu1 %v6970_v4  ;;  %v3451_v11 = vor.u32 %v3450_v41, %v8138_v30  ;;  %v3447_v17 = vsel %vm7418_vm8, %v3442_v31, %v8138_v30 }
 0x21b   : > { %v3464_v27 = vrot.slane %v3462_v44, 5  ;;  %v9553_v44 = vld [vmem:[#allocation16_spill] sm:$0xff]  ;;  %v8188_v20 = vrot.slane %v3489_v54, 4 }
 0x21c   : > { %v3452_v26 = vrot.slane %v3451_v11, 4  ;;  %9555 = vst [vmem:[#allocation16_spill] sm:$0xff] %v8256_v6 }
 0x21d   : > { %6655 = vmatpush3.bf16.msra.mxu1 %v6970_v4  ;;  %v3465_v28 = vor.u32 %v3464_v27, %v3461_v29  ;;  %v3531_v4 = vshrl.u32 %v8159_v3, 16  ;;  %v8190_v29 = vld [vmem:[#allocation2 + $0x8c] sm:$0x1] }
 0x21e   : > { %6692 = vmatprep.subr.bf16.mxu1 %v8131_v53 }
 0x21f   : > { %v3466_v2 = vrot.slane %v3465_v28, 4  ;;  %v3533_v11 = vrot.slane %v3531_v4, 4  ;;  %v3526_v28 = vshll.u32 %v8190_v29, 16  ;;  %v8220_v4 = vld [vmem:[#allocation2 + $0xa8] sm:$0xf] }
 0x220   : > { %6621 = vmatmul.mubr.msk.bf16.gmra.mxu1 %vm1633_vm9, %v7776_v0  ;;  %v3474_v0 = vrot.slane %v3472_v8, 4  ;;  %v3502_v8 = vshll.u32 %v8168_v37, 16  ;;  %v3582_v12 = vshll.u32 %v8220_v4, 16 }
 0x221   : > { %6624 = vmatprep.mubr.msk.bf16.mxu1 %vm1633_vm9, %v7795_v5  ;;  %v8161_v5 = vrot.slane %v3492_v36, 5  ;;  %v8194_v36 = vrot.slane %v3516_v14, 5  ;;  %v3471_v30 = vsel %vm7418_vm8, %v3466_v2, %v8153_v43  ;;  %v3579_v2 = vshrl.u32 %v8220_v4, 16 }
 0x222   : > { %v3475_v9 = vor.u32 %v3474_v0, %v8153_v43  ;;  %v3536_v0 = vrot.slane %v3534_v42, 5  ;;  %v3504_v7 = vrot.slane %v3502_v8, 5  ;;  %v3555_v43 = vshrl.u32 %v8203_v34, 16 }
 0x223   : > { %v3499_v41 = vor.u32 %v3498_v16, %v8161_v5  ;;  %v3495_v32 = vsel %vm7418_vm8, %v8188_v20, %v8161_v5  ;;  %v3523_v31 = vor.u32 %v3522_v56, %v8194_v36  ;;  %v377_v20 = vsel %vm7332_vm2, 0, %v376_v39  ;;  %v8258_v39 = vld [vmem:[#allocation2 + $0xb8] sm:$0xf] }
 0x224   : > { %v3476_v48 = vrot.slane %v3475_v9, 4  ;;  %v8208_v9 = vld [vmem:[#allocation2 + $0xa0] sm:$0xf]  ;;  %v3537_v22 = vor.u32 %v3536_v0, %v3533_v11  ;;  %378 = vst [vmem:[#allocation2 + $0xcc] sm:$0x1] %v377_v20  ;;  %9556 = vst [vmem:[#allocation22_spill] sm:$0xff] %v8258_v39 }
 0x225   : > { %v3500_v18 = vrot.slane %v3499_v41, 4  ;;  %v3564_v41 = vshll.u32 %v8208_v9, 16  ;;  %v3568_v8 = vshrl.u32 %v8208_v9, 16  ;;  %v3524_v11 = vrot.slane %v3523_v31, 4  ;;  %v6973_v20 = vld [vmem:[#allocation6 + $0x20] sm:$0xff]  }
 0x226   : > { %v3481_v14 = vsel %vm7418_vm8, %v3476_v48, %v8176_v40  ;;  %v3558_v40 = vshll.u32 %v8203_v34, 16  ;;  %v3538_v0 = vrot.slane %v3537_v22, 4  ;;  %v3581_v31 = vrot.slane %v3579_v2, 4 }
 0x227   : > { %v8252_v24 = vcombine.low %v3471_v30, %v3481_v14  ;;  %v3584_v22 = vrot.slane %v3582_v12, 5  ;;  %v3606_v2 = vshll.u32 %v8256_v6, 16  ;;  %v3612_v12 = vshll.u32 %v8258_v39, 16 }
 0x228   : > { %6625 = vmatmul.mubr.msk.bf16.gmra.mxu1 %vm1633_vm9, %v7817_v58  ;;  %v3457_v58 = vsel %vm7418_vm8, %v3452_v26, %v3456_v33  ;;  %v3546_v33 = vrot.slane %v3544_v25, 4  ;;  %v3513_v26 = vor.u32 %v3512_v62, %v3509_v38  ;;  %v3550_v25 = vshll.u32 %v8199_v63, 16 }
 0x229   : > { %6628 = vmatprep.mubr.msk.bf16.mxu1 %vm1633_vm9, %v9553_v44  ;;  %v8182_v49 = vpop.f32.mrf.mxu1  ;;  %v5745_v54 = vcombine.low %v3447_v17, %v3457_v58  ;;  %v8227_v44 = vld [vmem:[#allocation2 + $0xac] sm:$0xf]  ;;  %v3505_v38 = vsel %vm7418_vm8, %v3500_v18, %v3504_v7  ;;  %v3528_v58 = vrot.slane %v3526_v28, 5  ;;  %v8248_v7 = vld [vmem:[#allocation2 + $0xa4] sm:$0x1]  ;;  %v8250_v28 = vrot.slane %v3564_v41, 5 }
 0x22a   : > { %v3547_v5 = vor.u32 %v3546_v33, %v8201_v51  ;;  %v3514_v62 = vrot.slane %v3513_v26, 4  ;;  %v3592_v48 = vshrl.u32 %v8227_v44, 16  ;;  %v3552_v17 = vrot.slane %v3550_v25, 5  ;;  %9554 = vst [vmem:[#allocation15_spill] sm:$0xff] %v8252_v24  ;;  %v8270_v41 = vld [vmem:[#allocation2 + $0xb0] sm:$0x1] }
 0x22b   : > { %v8192_v27 = vpop.f32.mrf.mxu1  ;;  %v3557_v33 = vrot.slane %v3555_v43, 4  ;;  %v3560_v26 = vrot.slane %v3558_v40, 5  ;;  %v3529_v14 = vsel %vm7418_vm8, %v3524_v11, %v3528_v58  ;;  %v3574_v40 = vshll.u32 %v8248_v7, 16 }
 0x22c   : > { %v3548_v18 = vrot.slane %v3547_v5, 4  ;;  %v3594_v43 = vrot.slane %v3592_v48, 4  ;;  %v8260_v5 = vcombine.low %v3495_v32, %v3505_v38  ;;  %v3519_v30 = vsel %vm7418_vm8, %v3514_v62, %v8194_v36 }
 0x22d   : > { %v8205_v16 = vpop.f32.mrf.mxu1  ;;  %v3543_v32 = vsel %vm7418_vm8, %v3538_v0, %v8201_v51  ;;  %v3561_v38 = vor.u32 %v3560_v26, %v3557_v33  ;;  %v3603_v58 = vshrl.u32 %v8256_v6, 16  ;;  %v3585_v51 = vor.u32 %v3584_v22, %v3581_v31  ;;  %v8290_v0 = vld [vmem:[#allocation6 + $0x48] sm:$0xff]  }
 0x22e   : > { %9557 = vst [vmem:[#allocation23_spill] sm:$0xff] %v8260_v5  ;;  %v3598_v11 = vshll.u32 %v8270_v41, 16  ;;  %v3576_v15 = vrot.slane %v3574_v40, 5 }
 0x22f   : > { %v8222_v42 = vpop.f32.mrf.mxu1  ;;  %v3562_v26 = vrot.slane %v3561_v38, 4  ;;  %v3605_v19 = vrot.slane %v3603_v58, 4  ;;  %v3586_v22 = vrot.slane %v3585_v51, 4 }
 0x230   : > { %6629 = vmatmul.mubr.msk.bf16.gmra.mxu1 %vm1633_vm9, %v5706_v55  ;;  %v3588_v55 = vshll.u32 %v8227_v44, 16  ;;  %v3600_v6 = vrot.slane %v3598_v11, 5  ;;  %v8339_v11 = vpop.f32.mrf.mxu0 }
 0x231   : > { %6656 = vmatprep.mubr.msk.bf16.mxu1 %vm1633_vm9, %v5745_v54  ;;  %v3570_v54 = vrot.slane %v3568_v8, 4  ;;  %v3553_v8 = vsel %vm7418_vm8, %v3548_v18, %v3552_v17  ;;  %v8292_v17 = vcombine.low %v3519_v30, %v3529_v14  ;;  %v3567_v14 = vsel %vm7418_vm8, %v3562_v26, %v8250_v28 }
 0x232   : > { %v3590_v25 = vrot.slane %v3588_v55, 5  ;;  %v3616_v55 = vshrl.u32 %v8258_v39, 16  ;;  %v8296_v18 = vcombine.low %v3543_v32, %v3553_v8  ;;  %v8300_v39 = vld [vmem:[#allocation2 + $0xbc] sm:$0x1] }
 0x233   : > { %v8246_v56 = vpop.f32.mrf.mxu1  ;;  %v3571_v36 = vor.u32 %v3570_v54, %v8250_v28  ;;  %9558 = vst [vmem:[#allocation24_spill] sm:$0xff] %v8292_v17  ;;  %v3622_v8 = vshll.u32 %v8300_v39, 16  ;;  %v3970_v28 = vrot.slane %v8078_v45, 5 }
 0x234   : > { %v3595_v48 = vor.u32 %v3594_v43, %v3590_v25  ;;  %9559 = vst [vmem:[#allocation25_spill] sm:$0xff] %v8296_v18  ;;  %v3591_v38 = vsel %vm7418_vm8, %v3586_v22, %v3590_v25 }
 0x235   : > { %v8254_v47 = vpop.f32.mrf.mxu1  ;;  %v3572_v54 = vrot.slane %v3571_v36, 4 }
 0x236   : > { %v3596_v43 = vrot.slane %v3595_v48, 4 }
 0x237   : > { %v8262_v21 = vpop.f32.mrf.mxu1 }
 0x238   : > { %6657 = vmatmul.mubr.msk.bf16.vlgmr.msra.gmra.mxu1 %vm1633_vm9, %v8252_v24  ;;  %v3614_v24 = vrot.slane %v3612_v12, 5  ;;  %v3601_v36 = vsel %vm7418_vm8, %v3596_v43, %v3600_v6  ;;  %v3972_v6 = vrot.slane %v3970_v28, 4 }
 0x239   : > { %6660 = vmatprep.mubr.msk.bf16.mxu1 %vm1633_vm9, %v8260_v5  ;;  %v8282_v62 = vpop.f32.mrf.mxu1  ;;  %6693 = vmatpush3.bf16.msra.mxu1 %v8131_v53  ;;  %v3608_v5 = vrot.slane %v3606_v2, 5  ;;  %v3618_v53 = vrot.slane %v3616_v55, 4  ;;  %v8324_v12 = vcombine.low %v3591_v38, %v3601_v36  ;;  %v5782_v38 = vrot.slane %v8100_v52, 9 }
 0x23a   : > { %6694 = vmatprep.subr.bf16.mxu1 %v6973_v20 }
 0x23b   : > { %v3609_v40 = vor.u32 %v3608_v5, %v3605_v19  ;;  %v3619_v32 = vor.u32 %v3618_v53, %v3614_v24  ;;  %9561 = vst [vmem:[#allocation27_spill] sm:$0xff] %v8324_v12  ;;  %v3624_v19 = vrot.slane %v3622_v8, 5  ;;  %v6987_v5 = vld [vmem:[%s9453_s5 + $0x8] sm:$0xff]   ;;  %v3977_v53 = vrot.slane %v8102_v13, 5 }
 0x23c   : > { %v8294_v33 = vpop.f32.mrf.mxu1  ;;  %6632 = vmatprep.subr.bf16.mxu0 %v6987_v5  ;;  %v3980_v13 = vrot.slane %v8151_v57, 5  ;;  %v3991_v57 = vrot.slane %v8058_v50, 5 }
 0x23d   : > { %6695 = vmatpush3.bf16.msra.mxu1 %v6973_v20  ;;  %v3577_v20 = vsel %vm7418_vm8, %v3572_v54, %v3576_v15  ;;  %v3610_v55 = vrot.slane %v3609_v40, 4  ;;  %v3620_v15 = vrot.slane %v3619_v32, 4  ;;  %v3973_v54 = vrot.slane %v8136_v35, 5  ;;  %6633 = vmatpush3.bf16.msra.mxu0 %v6987_v5  ;;  %v8353_v40 = vpop.f32.mrf.mxu0 }
 0x23e   : > { %v8298_v31 = vpop.f32.mrf.mxu1  ;;  %6732 = vmatprep.subr.bf16.mxu1 %v8290_v0  ;;  %v8321_v2 = vcombine.low %v3567_v14, %v3577_v20  ;;  %v5781_v14 = vrot.slane %v8080_v1, 9  ;;  %v3984_v20 = vrot.slane %v8090_v59, 5  ;;  %v3979_v36 = vrot.slane %v3977_v53, 4 }
 0x23f   : > { %v3615_v25 = vsel %vm7418_vm8, %v3610_v55, %v3614_v24  ;;  %v3625_v48 = vsel %vm7418_vm8, %v3620_v15, %v3624_v19  ;;  %v3974_v24 = vsel %vm7441_vm12, %v3972_v6, %v3973_v54  ;;  %v5783_v15 = vrot.slane %v8088_v60, 9 }
 0x240   : > { %6661 = vmatmul.mubr.msk.bf16.gmra.mxu1 %vm1633_vm9, %v8292_v17  ;;  %v8305_v30 = vpop.f32.mrf.mxu1  ;;  %9560 = vst [vmem:[#allocation26_spill] sm:$0xff] %v8321_v2  ;;  %v8347_v43 = vcombine.low %v3615_v25, %v3625_v48  ;;  %v3971_v35 = vsel %vm7441_vm12, %v5781_v14, %v3970_v28  ;;  %v3986_v59 = vrot.slane %v3984_v20, 4  ;;  %v3987_v19 = vrot.slane %v8168_v37, 5  ;;  %v8370_v28 = vpop.f32.mrf.mxu0 }
 0x241   : > { %6664 = vmatprep.mubr.msk.bf16.mxu1 %vm1633_vm9, %v8296_v18  ;;  %v5789_v8 = vcombine.low %v3971_v35, %v3974_v24  ;;  %v3998_v6 = vrot.slane %v8165_v61, 5  ;;  %v3978_v60 = vsel %vm7441_vm12, %v5782_v38, %v3977_v53  ;;  %v3981_v37 = vsel %vm7441_vm12, %v3979_v36, %v3980_v13  ;;  %v6975_v36 = vld [vmem:[#allocation6 + $0x40] sm:$0xff]  }
 0x242   : > { %v8319_v58 = vpop.f32.mrf.mxu1  ;;  %9562 = vst [vmem:[#allocation28_spill] sm:$0xff] %v8347_v43  ;;  %v3985_v48 = vsel %vm7441_vm12, %v5783_v15, %v3984_v20  ;;  %v3988_v50 = vsel %vm7441_vm12, %v3986_v59, %v3987_v19  ;;  %v3994_v54 = vrot.slane %v8190_v29, 5  ;;  %v3993_v24 = vrot.slane %v3991_v57, 4  ;;  %v8389_v35 = vpop.f32.mrf.mxu0 }
 0x243   : > { %v5785_v13 = vrot.slane %v8159_v3, 9  ;;  %v4000_v38 = vrot.slane %v3998_v6, 4  ;;  %v4001_v20 = vrot.slane %v8199_v63, 5  ;;  %v8398_v29 = vcombine.low %v3985_v48, %v3988_v50 }
 0x244   : > { %v4005_v59 = vrot.slane %v8208_v9, 5  ;;  %v8416_v19 = vpop.f32.mrf.mxu0 }
 0x245   : > { %9564 = vst [vmem:[#allocation30_spill] sm:$0xff] %v8398_v29 }
 0x248   : > { %v8329_v51 = vpop.f32.mrf.mxu1  ;;  %6665 = vmatmul.mubr.msk.bf16.gmra.mxu1 %vm1633_vm9, %v8321_v2 }
 0x249   : > { %6668 = vmatprep.mubr.msk.bf16.mxu1 %vm1633_vm9, %v8324_v12 }
 0x24a   : > { %v8341_v26 = vpop.f32.mrf.mxu1 }
 0x24c   : > { %v8345_v22 = vpop.f32.mrf.mxu1 }
 0x24e   : > { %v8355_v32 = vpop.f32.mrf.mxu1 }
 0x250   : > { %v6478_v55 = vpop.f32.mrf.mxu1  ;;  %6669 = vmatmul.mubr.msk.bf16.gmra.mxu1 %vm1633_vm9, %v8347_v43 }
 0x251   : > { %v8366_v5 = vadd.f32 %v6478_v55, %v8182_v49  ;;  %6696 = vmatprep.mubr.msk.bf16.mxu1 %vm1633_vm9, %v5789_v8  ;;  %v8391_v8 = vcombine.low %v3978_v60, %v3981_v37  ;;  %v4002_v60 = vsel %vm7441_vm12, %v4000_v38, %v4001_v20  ;;  %v4012_v37 = vrot.slane %v8227_v44, 5 }
 0x252   : > { %v1865_v52 = vpop.f32.mrf.mxu1 }
 0x253   : > { %v8374_v25 = vadd.f32 %v1865_v52, %v8192_v27  ;;  %v5784_v27 = vrot.slane %v8056_v10, 9  ;;  %9563 = vst [vmem:[#allocation29_spill] sm:$0xff] %v8391_v8  ;;  %v6988_v10 = vld [vmem:[%s9453_s5] sm:$0xff]   ;;  %v4014_v38 = vrot.slane %v4012_v37, 4 }
 0x254   : > { %v6479_v49 = vpop.f32.mrf.mxu1  ;;  %6634 = vmatprep.subr.bf16.mxu0 %v6988_v10 }
 0x255   : > { %v8386_v14 = vadd.f32 %v6479_v49, %v8205_v16  ;;  %v3992_v63 = vsel %vm7441_vm12, %v5784_v27, %v3991_v57  ;;  %v8423_v57 = vld [vmem:[#allocation6 + $0x68] sm:$0xff]   ;;  %6635 = vmatpush3.bf16.msra.mxu0 %v6988_v10  ;;  %v5786_v27 = vrot.slane %v8203_v34, 9 }
 0x256   : > { %v1868_v53 = vpop.f32.mrf.mxu1 }
 0x257   : > { %v8396_v55 = vadd.f32 %v1868_v53, %v8222_v42  ;;  %v3995_v42 = vsel %vm7441_vm12, %v3993_v24, %v3994_v54  ;;  %v4007_v24 = vrot.slane %v4005_v59, 4  ;;  %v8437_v53 = vpop.f32.mrf.mxu0 }
 0x258   : > { %v6482_v16 = vpop.f32.mrf.mxu1  ;;  %6697 = vmatmul.mubr.msk.bf16.vlgmr.msra.gmra.mxu1 %vm1633_vm9, %v8391_v8  ;;  %v8429_v50 = vcombine.low %v3992_v63, %v3995_v42  ;;  %v9579_v8 = vld [vmem:[#allocation23_spill] sm:$0xff] }
 0x259   : > { %v8406_v15 = vadd.f32 %v6482_v16, %v8246_v56  ;;  %6700 = vmatprep.mubr.msk.bf16.mxu1 %vm1633_vm9, %v8398_v29  ;;  %6733 = vmatpush3.bf16.msra.mxu1 %v8290_v0  ;;  %v3999_v56 = vsel %vm7441_vm12, %v5785_v13, %v3998_v6  ;;  %v4008_v0 = vrot.slane %v8248_v7, 5  ;;  %v4015_v7 = vrot.slane %v8270_v41, 5  ;;  %v9567_v16 = vld [vmem:[#allocation22_spill] sm:$0xff] }
 0x25a   : > { %v1881_v52 = vpop.f32.mrf.mxu1  ;;  %6734 = vmatprep.subr.bf16.mxu1 %v6975_v36  ;;  %9565 = vst [vmem:[#allocation31_spill] sm:$0xff] %v8429_v50  ;;  %v8434_v54 = vcombine.low %v3999_v56, %v4002_v60  ;;  %v4019_v63 = vrot.slane %v9567_v16, 5 }
 0x25b   : > { %v8426_v49 = vadd.f32 %v1881_v52, %v8254_v47  ;;  %v5787_v47 = vrot.slane %v8220_v4, 9  ;;  %v4009_v41 = vsel %vm7441_vm12, %v4007_v24, %v4008_v0 }
 0x25c   : > { %v6483_v48 = vpop.f32.mrf.mxu1  ;;  %9566 = vst [vmem:[#allocation32_spill] sm:$0xff] %v8434_v54 }
 0x25d   : > { %v8432_v6 = vadd.f32 %v6483_v48, %v8262_v21  ;;  %6735 = vmatpush3.bf16.msra.mxu1 %v6975_v36  ;;  %v4006_v36 = vsel %vm7441_vm12, %v5786_v27, %v4005_v59  ;;  %v4013_v52 = vsel %vm7441_vm12, %v5787_v47, %v4012_v37  ;;  %v9569_v59 = vld [vmem:[#allocation16_spill] sm:$0xff] }
 0x25e   : > { %v1884_v13 = vpop.f32.mrf.mxu1  ;;  %6772 = vmatprep.subr.bf16.mxu1 %v8423_v57  ;;  %v8466_v48 = vcombine.low %v4006_v36, %v4009_v41  ;;  %v5788_v27 = vrot.slane %v9569_v59, 9 }
 0x25f   : > { %v8443_v20 = vadd.f32 %v1884_v13, %v8282_v62  ;;  %v8457_v62 = vpop.f32.mrf.mxu0  ;;  %v4021_v13 = vrot.slane %v4019_v63, 4 }
 0x260   : > { %v6486_v21 = vpop.f32.mrf.mxu1  ;;  %6701 = vmatmul.mubr.msk.bf16.gmra.mxu1 %vm1633_vm9, %v8429_v50  ;;  %9568 = vst [vmem:[#allocation22_spill] sm:$0xff] %v8466_v48 }
 0x261   : > { %v8448_v10 = vadd.f32 %v6486_v21, %v8294_v33  ;;  %6704 = vmatprep.mubr.msk.bf16.mxu1 %vm1633_vm9, %v8434_v54  ;;  %v4016_v33 = vsel %vm7441_vm12, %v4014_v38, %v4015_v7  ;;  %v4022_v21 = vrot.slane %v8300_v39, 5  ;;  %v8475_v37 = vpop.f32.mrf.mxu0 }
 0x262   : > { %v1897_v42 = vpop.f32.mrf.mxu1  ;;  %v8472_v24 = vcombine.low %v4013_v52, %v4016_v33  ;;  %9571 = vst [vmem:[#allocation33_spill] sm:$0xff] %v8475_v37  ;;  %v8501_v33 = vld [vmem:[#allocation6 + $0x8] sm:$0xff]  }
 0x263   : > { %v8464_v56 = vadd.f32 %v1897_v42, %v8298_v31  ;;  %v4023_v39 = vsel %vm7441_vm12, %v4021_v13, %v4022_v21  ;;  %v8491_v36 = vpop.f32.mrf.mxu0  ;;  %9574 = vst [vmem:[#allocation36_spill] sm:$0xff] %v8501_v33  ;;  %6672 = vmatprep.subr.bf16.mxu0 %v8501_v33  ;;  %v9576_v21 = vld [vmem:[#allocation15_spill] sm:$0xff] }
 0x264   : > { %v6487_v60 = vpop.f32.mrf.mxu1  ;;  %9570 = vst [vmem:[#allocation16_spill] sm:$0xff] %v8472_v24  ;;  %9572 = vst [vmem:[#allocation34_spill] sm:$0xff] %v8491_v36  ;;  %v8557_v36 = vld [vmem:[#allocation2 + $0xc8] sm:$0x1] }
 0x265   : > { %v8470_v0 = vadd.f32 %v6487_v60, %v8305_v30  ;;  %v4020_v30 = vsel %vm7441_vm12, %v5788_v27, %v4019_v63  ;;  %v8503_v60 = vpop.f32.mrf.mxu0 }
 0x266   : > { %v1900_v47 = vpop.f32.mrf.mxu1  ;;  %v8496_v52 = vcombine.low %v4020_v30, %v4023_v39  ;;  %9575 = vst [vmem:[#allocation37_spill] sm:$0xff] %v8503_v60  ;;  %v8524_v39 = vld [vmem:[#allocation2 + $0xc0] sm:$0xf] }
 0x267   : > { %v8478_v38 = vadd.f32 %v1900_v47, %v8319_v58 }
 0x268   : > { %v6490_v31 = vpop.f32.mrf.mxu1  ;;  %6705 = vmatmul.mubr.msk.bf16.gmra.mxu1 %vm1633_vm9, %v8466_v48  ;;  %9573 = vst [vmem:[#allocation35_spill] sm:$0xff] %v8496_v52 }
 0x269   : > { %v8483_v7 = vadd.f32 %v6490_v31, %v8329_v51  ;;  %6708 = vmatprep.mubr.msk.bf16.mxu1 %vm1633_vm9, %v8472_v24 }
 0x26a   : > { %v1913_v58 = vpop.f32.mrf.mxu1 }
 0x26b   : > { %v8494_v41 = vadd.f32 %v1913_v58, %v8341_v26 }
 0x26c   : > { %v6491_v42 = vpop.f32.mrf.mxu1 }
 0x26d   : > { %v8499_v51 = vadd.f32 %v6491_v42, %v8345_v22  ;;  %v8516_v22 = vpop.f32.mrf.mxu0 }
 0x26e   : > { %v1916_v63 = vpop.f32.mrf.mxu1  ;;  %9577 = vst [vmem:[#allocation15_spill] sm:$0xff] %v8516_v22 }
 0x26f   : > { %v8506_v27 = vadd.f32 %v1916_v63, %v8355_v32  ;;  %v8526_v58 = vpop.f32.mrf.mxu0  ;;  %v6978_v63 = vld [vmem:[#allocation6 + $0x60] sm:$0xff]  }
 0x270   : > { %v6498_v13 = vpop.f32.mrf.mxu1  ;;  %6709 = vmatmul.mubr.msk.bf16.gmra.mxu1 %vm1633_vm9, %v8496_v52  ;;  %9578 = vst [vmem:[#allocation38_spill] sm:$0xff] %v8526_v58 }
 0x271   : > { %v8512_v26 = vadd.f32 %v6498_v13, %v8366_v5  ;;  %6736 = vmatprep.mubr.msk.bf16.mxu1 %vm1633_vm9, %v9576_v21  ;;  %v8528_v5 = vld [vmem:[#allocation2 + $0xc4] sm:$0xf] }
 0x272   : > { %v2094_v47 = vpop.f32.mrf.mxu1  ;;  %v4352_v45 = vshrl.u32 %v8528_v5, 16 }
 0x273   : > { %v8519_v31 = vadd.f32 %v2094_v47, %v8374_v25  ;;  %v4339_v25 = vshrl.u32 %v8524_v39, 16  ;;  %v4342_v47 = vshll.u32 %v8524_v39, 16 }
 0x274   : > { %v6499_v32 = vpop.f32.mrf.mxu1  ;;  %v4354_v22 = vrot.slane %v4352_v45, 4 }
 0x275   : > { %v8522_v30 = vadd.f32 %v6499_v32, %v8386_v14  ;;  %v4348_v32 = vshll.u32 %v8528_v5, 16  ;;  %v4341_v1 = vrot.slane %v4339_v25, 4  ;;  %v4344_v33 = vrot.slane %v4342_v47, 5 }
 0x276   : > { %v2097_v42 = vpop.f32.mrf.mxu1  ;;  %v4358_v25 = vshll.u32 %v8557_v36, 16 }
 0x277   : > { %v8531_v13 = vadd.f32 %v2097_v42, %v8396_v55  ;;  %v8545_v55 = vpop.f32.mrf.mxu0  ;;  %v4350_v58 = vrot.slane %v4348_v32, 5  ;;  %v4345_v45 = vor.u32 %v4344_v33, %v4341_v1 }
 0x278   : > { %v6502_v21 = vpop.f32.mrf.mxu1  ;;  %6737 = vmatmul.mubr.msk.bf16.vlgmr.msra.gmra.mxu1 %vm1633_vm9, %v9579_v8  ;;  %v8547_v8 = vld [vmem:[#allocation6 + $0x88] sm:$0xff]  }
 0x279   : > { %v8537_v14 = vadd.f32 %v6502_v21, %v8406_v15  ;;  %6740 = vmatprep.mubr.msk.bf16.mxu1 %vm1633_vm9, %v8292_v17  ;;  %6773 = vmatpush3.bf16.msra.mxu1 %v8423_v57  ;;  %v8555_v60 = vpop.f32.mrf.mxu0 }
 0x27a   : > { %v2110_v42 = vpop.f32.mrf.mxu1  ;;  %6774 = vmatprep.subr.bf16.mxu1 %v6978_v63 }
 0x27b   : > { %v8550_v15 = vadd.f32 %v2110_v42, %v8426_v49  ;;  %v8571_v47 = vpop.f32.mrf.mxu0 }
 0x27c   : > { %v6503_v21 = vpop.f32.mrf.mxu1 }
 0x27d   : > { %v8553_v17 = vadd.f32 %v6503_v21, %v8432_v6  ;;  %6775 = vmatpush3.bf16.msra.mxu1 %v6978_v63  ;;  %v4355_v63 = vor.u32 %v4354_v22, %v4350_v58 }
 0x27e   : > { %v2113_v57 = vpop.f32.mrf.mxu1  ;;  %6812 = vmatprep.subr.bf16.mxu1 %v8547_v8 }
 0x27f   : > { %v8561_v37 = vadd.f32 %v2113_v57, %v8443_v20  ;;  %v4346_v57 = vrot.slane %v4345_v45, 4 }
 0x280   : > { %v6506_v49 = vpop.f32.mrf.mxu1  ;;  %6741 = vmatmul.mubr.msk.bf16.gmra.mxu1 %vm1633_vm9, %v8296_v18  ;;  %v8579_v18 = vpop.f32.mrf.mxu0 }
 0x281   : > { %v8566_v6 = vadd.f32 %v6506_v49, %v8448_v10  ;;  %6744 = vmatprep.mubr.msk.bf16.mxu1 %vm1633_vm9, %v8321_v2  ;;  %v4356_v10 = vrot.slane %v4355_v63, 4  ;;  %v4360_v49 = vrot.slane %v4358_v25, 5 }
 0x282   : > { %v2126_v32 = vpop.f32.mrf.mxu1  ;;  %v8593_v45 = vpop.f32.mrf.mxu0 }
 0x283   : > { %v8574_v20 = vadd.f32 %v2126_v32, %v8464_v56  ;;  %v4361_v22 = vsel %vm7418_vm8, %v4356_v10, %v4360_v49 }
 0x284   : > { %v6507_v42 = vpop.f32.mrf.mxu1 }
 0x285   : > { %v8577_v21 = vadd.f32 %v6507_v42, %v8470_v0  ;;  %v4351_v0 = vsel %vm7418_vm8, %v4346_v57, %v4350_v58  ;;  %v9582_v57 = vld [vmem:[#allocation20_spill] sm:$0xff] }
 0x286   : > { %v2129_v2 = vpop.f32.mrf.mxu1  ;;  %v8596_v25 = vcombine.low %v4351_v0, %v4361_v22 }
 0x287   : > { %v8582_v1 = vadd.f32 %v2129_v2, %v8478_v38 }
 0x288   : > { %v6510_v33 = vpop.f32.mrf.mxu1  ;;  %6745 = vmatmul.mubr.msk.bf16.gmra.mxu1 %vm1633_vm9, %v8324_v12  ;;  %9580 = vst [vmem:[#allocation39_spill] sm:$0xff] %v8596_v25  ;;  %v8677_v12 = vld [vmem:[#allocation2 + $0xcc] sm:$0xf] }
 0x289   : > { %v2171_v56 = vadd.f32 %v6510_v33, %v8483_v7  ;;  %6748 = vmatprep.mubr.msk.bf16.mxu1 %vm1633_vm9, %v8347_v43  ;;  %v8599_v7 = vpop.f32.mrf.mxu0  ;;  %9595 = vst [vmem:[#allocation52_spill] sm:$0xff] %v8677_v12 }
 0x28a   : > { %v2142_v63 = vpop.f32.mrf.mxu1 }
 0x28b   : > { %v2169_v2 = vadd.f32 %v2142_v63, %v8494_v41  ;;  %v8608_v41 = vpop.f32.mrf.mxu0 }
 0x28c   : > { %v6511_v38 = vpop.f32.mrf.mxu1 }
 0x28d   : > { %v2172_v32 = vadd.f32 %v6511_v38, %v8499_v51  ;;  %v8618_v22 = vpop.f32.mrf.mxu0 }
 0x28e   : > { %v2145_v42 = vpop.f32.mrf.mxu1 }
 0x28f   : > { %v2170_v33 = vadd.f32 %v2145_v42, %v8506_v27  ;;  %v8616_v27 = vcombine.low %v8159_v3, %v8165_v61  ;;  %v9587_v42 = vld [vmem:[#allocation17_spill] sm:$0xff] }
 0x290   : > { %v6530_v43 = vpop.f32.mrf.mxu1  ;;  %6749 = vmatmul.mubr.msk.bf16.gmra.mxu1 %vm1633_vm9, %v8596_v25 }
 0x291   : > { %v8604_v58 = vadd.f32 %v6530_v43, %v2171_v56  ;;  %6776 = vmatprep.mubr.msk.bf16.mxu1 %vm1633_vm9, %v9582_v57  ;;  %9585 = vst [vmem:[#allocation43_spill] sm:$0xff] %v8616_v27  ;;  %v6986_v43 = vld [vmem:[#allocation6 + $0x80] sm:$0xff]  }
 0x292   : > { %v2280_v10 = vpop.f32.mrf.mxu1 }
 0x293   : > { %9581 = vst [vmem:[#allocation40_spill] sm:$0xff] %v8604_v58  ;;  %v8610_v49 = vadd.f32 %v2280_v10, %v2169_v2  ;;  %v8629_v2 = vpop.f32.mrf.mxu0 }
 0x294   : > { %v6531_v51 = vpop.f32.mrf.mxu1 }
 0x295   : > { %9583 = vst [vmem:[#allocation41_spill] sm:$0xff] %v8610_v49  ;;  %v8612_v0 = vadd.f32 %v6531_v51, %v2172_v32  ;;  %v8637_v32 = vcombine.low %v8203_v34, %v8208_v9  ;;  %v8643_v10 = vpop.f32.mrf.mxu0 }
 0x296   : > { %v2283_v63 = vpop.f32.mrf.mxu1  ;;  %9590 = vst [vmem:[#allocation47_spill] sm:$0xff] %v8643_v10 }
 0x297   : > { %9584 = vst [vmem:[#allocation42_spill] sm:$0xff] %v8612_v0  ;;  %v8620_v56 = vadd.f32 %v2283_v63, %v2170_v33  ;;  %9588 = vst [vmem:[#allocation45_spill] sm:$0xff] %v8637_v32  ;;  %v8641_v33 = vcombine.low %v8220_v4, %v8227_v44  ;;  %v8653_v63 = vpop.f32.mrf.mxu0  ;;  %v8661_v4 = vcombine.low %v9569_v59, %v9567_v16  ;;  %v8679_v16 = vld [vmem:[#allocation2 + $0xd0] sm:$0xf] }
 0x298   : > { %v8622_v38 = vpop.f32.mrf.mxu1  ;;  %6777 = vmatmul.mubr.msk.bf16.vlgmr.msra.gmra.mxu1 %vm1633_vm9, %v9587_v42  ;;  %9591 = vst [vmem:[#allocation48_spill] sm:$0xff] %v8653_v63  ;;  %v8665_v44 = vcombine.low %v8524_v39, %v8528_v5  ;;  %9596 = vst [vmem:[#allocation53_spill] sm:$0xff] %v8679_v16 }
 0x299   : > { %9586 = vst [vmem:[#allocation44_spill] sm:$0xff] %v8620_v56  ;;  %6780 = vmatprep.mubr.msk.bf16.mxu1 %vm1633_vm9, %v8616_v27  ;;  %6813 = vmatpush3.bf16.msra.mxu1 %v8547_v8  ;;  %9589 = vst [vmem:[#allocation46_spill] sm:$0xff] %v8641_v33  ;;  %v5841_v27 = vcombine.low %v8677_v12, %v8679_v16 }
 0x29a   : > { %v8631_v3 = vpop.f32.mrf.mxu1  ;;  %6814 = vmatprep.subr.bf16.mxu1 %v6986_v43  ;;  %9592 = vst [vmem:[#allocation49_spill] sm:$0xff] %v8661_v4  ;;  %9593 = vst [vmem:[#allocation50_spill] sm:$0xff] %v8665_v44 }
 0x29c   : > { %v8633_v61 = vpop.f32.mrf.mxu1 }
 0x29d   : > { %6815 = vmatpush3.bf16.msra.mxu1 %v6986_v43  ;;  %v8667_v43 = vpop.f32.mrf.mxu0 }
 0x29e   : > { %v8645_v51 = vpop.f32.mrf.mxu1  ;;  %9594 = vst [vmem:[#allocation51_spill] sm:$0xff] %v8667_v43 }
 0x29f   : > { %v8681_v59 = vpop.f32.mrf.mxu0 }
 0x2a0   : > { %v8647_v8 = vpop.f32.mrf.mxu1  ;;  %6781 = vmatmul.mubr.msk.bf16.gmra.mxu1 %vm1633_vm9, %v8637_v32  ;;  %9597 = vst [vmem:[#allocation54_spill] sm:$0xff] %v8681_v59 }
 0x2a1   : > { %6784 = vmatprep.mubr.msk.bf16.mxu1 %vm1633_vm9, %v8641_v33  ;;  %v8689_v42 = vpop.f32.mrf.mxu0 }
 0x2a2   : > { %v8655_v34 = vpop.f32.mrf.mxu1  ;;  %9598 = vst [vmem:[#allocation55_spill] sm:$0xff] %v8689_v42 }
 0x2a4   : > { %v8657_v9 = vpop.f32.mrf.mxu1 }
 0x2a6   : > { %v8669_v23 = vpop.f32.mrf.mxu1 }
 0x2a8   : > { %v8671_v25 = vpop.f32.mrf.mxu1  ;;  %6785 = vmatmul.mubr.msk.bf16.gmra.mxu1 %vm1633_vm9, %v8661_v4 }
 0x2a9   : > { %6788 = vmatprep.mubr.msk.bf16.mxu1 %vm1633_vm9, %v8665_v44  ;;  %v8698_v44 = vpop.f32.mrf.mxu0 }
 0x2aa   : > { %v8683_v33 = vpop.f32.mrf.mxu1  ;;  %9600 = vst [vmem:[#allocation57_spill] sm:$0xff] %v8698_v44  ;;  %v4500_v44 = vrot.slane %v8528_v5, 5 }
 0x2ab   : > { %v8704_v0 = vpop.f32.mrf.mxu0 }
 0x2ac   : > { %v8685_v32 = vpop.f32.mrf.mxu1  ;;  %9603 = vst [vmem:[#allocation60_spill] sm:$0xff] %v8704_v0  ;;  %v5829_v0 = vrot.slane %v8524_v39, 9 }
 0x2ae   : > { %v8691_v57 = vpop.f32.mrf.mxu1  ;;  %v4501_v5 = vsel %vm7441_vm12, %v5829_v0, %v4500_v44 }
 0x2b0   : > { %v8693_v4 = vpop.f32.mrf.mxu1  ;;  %6789 = vmatmul.mubr.msk.bf16.gmra.mxu1 %vm1633_vm9, %v5841_v27  ;;  %v6598_v27 = vpop.f32.mrf.mxu0 }
 0x2b1   : > { %9599 = vst [vmem:[#allocation56_spill] sm:$0xff] %v8693_v4  ;;  %6816 = vmatprep.mubr.msk.bf16.mxu1 %vm1633_vm9, %v8398_v29 }
 0x2b2   : > { %v8700_v56 = vpop.f32.mrf.mxu1  ;;  %v2834_v43 = vpop.f32.mrf.mxu0 }
 0x2b3   : > { %9601 = vst [vmem:[#allocation58_spill] sm:$0xff] %v8700_v56 }
 0x2b4   : > { %v8702_v59 = vpop.f32.mrf.mxu1 }
 0x2b5   : > { %9602 = vst [vmem:[#allocation59_spill] sm:$0xff] %v8702_v59  ;;  %v4503_v59 = vrot.slane %v8557_v36, 5 }
 0x2b6   : > { %v8706_v12 = vpop.f32.mrf.mxu1 }
 0x2b7   : > { %9604 = vst [vmem:[#allocation61_spill] sm:$0xff] %v8706_v12  ;;  %v4502_v12 = vrot.slane %v4500_v44, 4  ;;  %v2295_v44 = vadd.f32 %v8353_v40, %v8519_v31 }
 0x2b8   : > { %v6578_v16 = vpop.f32.mrf.mxu1  ;;  %6817 = vmatmul.mubr.msk.bf16.vlgmr.msra.gmra.mxu1 %vm1633_vm9, %v8429_v50 }
 0x2b9   : > { %6820 = vmatprep.mubr.msk.bf16.mxu1 %vm1633_vm9, %v8434_v54  ;;  %v6599_v54 = vpop.f32.mrf.mxu0  ;;  %v4504_v4 = vsel %vm7441_vm12, %v4502_v12, %v4503_v59  ;;  %v2297_v12 = vadd.f32 %v8339_v11, %v8512_v26  ;;  %v2296_v26 = vadd.f32 %v8389_v35, %v8531_v13 }
 0x2ba   : > { %v2674_v42 = vpop.f32.mrf.mxu1  ;;  %v8727_v39 = vcombine.low %v4501_v5, %v4504_v4 }
 0x2bb   : > { %v2837_v58 = vpop.f32.mrf.mxu0  ;;  %v2457_v4 = vadd.f32 %v8622_v38, %v2297_v12  ;;  %v2456_v31 = vadd.f32 %v8645_v51, %v2296_v26 }
 0x2bc   : > { %v6579_v29 = vpop.f32.mrf.mxu1  ;;  %9605 = vst [vmem:[#allocation62_spill] sm:$0xff] %v8727_v39 }
 0x2bd   : > { %v8735_v36 = vpop.f32.mrf.mxu0  ;;  %v2601_v38 = vadd.f32 %v8545_v55, %v2457_v4 }
 0x2be   : > { %v2677_v56 = vpop.f32.mrf.mxu1 }
 0x2bf   : > { %v8746_v59 = vpop.f32.mrf.mxu0 }
 0x2c0   : > { %v6582_v49 = vpop.f32.mrf.mxu1  ;;  %6821 = vmatmul.mubr.msk.bf16.gmra.mxu1 %vm1633_vm9, %v8466_v48 }
 0x2c1   : > { %6824 = vmatprep.mubr.msk.bf16.mxu1 %vm1633_vm9, %v8472_v24  ;;  %v8759_v12 = vpop.f32.mrf.mxu0 }
 0x2c2   : > { %v2690_v50 = vpop.f32.mrf.mxu1 }
 0x2c4   : > { %v8719_v63 = vpop.f32.mrf.mxu1 }
 0x2c6   : > { %v8725_v48 = vpop.f32.mrf.mxu1 }
 0x2c8   : > { %v8729_v10 = vpop.f32.mrf.mxu1  ;;  %6825 = vmatmul.mubr.msk.bf16.gmra.mxu1 %vm1633_vm9, %v8496_v52  ;;  %v2298_v52 = vadd.f32 %v8370_v28, %v8522_v30 }
 0x2c9   : > { %6828 = vmatprep.mubr.msk.bf16.mxu1 %vm1633_vm9, %v8727_v39  ;;  %v2455_v39 = vadd.f32 %v8631_v3, %v2295_v44  ;;  %v2301_v3 = vadd.f32 %v8416_v19, %v8537_v14  ;;  %v2739_v44 = vadd.f32 %v6578_v16, %v2601_v38  ;;  %v2302_v19 = vadd.f32 %v8457_v62, %v8553_v17  ;;  %v9608_v38 = vld [vmem:[#allocation37_spill] sm:$0xff] }
 0x2ca   : > { %v8737_v24 = vpop.f32.mrf.mxu1  ;;  %v2458_v11 = vadd.f32 %v8633_v61, %v2298_v52  ;;  %v2299_v52 = vadd.f32 %v8437_v53, %v8550_v15  ;;  %v8773_v61 = vpop.f32.mrf.mxu0  ;;  %v2600_v16 = vadd.f32 %v8579_v18, %v2456_v31  ;;  %v2303_v31 = vadd.f32 %v9608_v38, %v8574_v20  ;;  %v9616_v38 = vld [vmem:[#allocation58_spill] sm:$0xff] }
 0x2cb   : > { %v2599_v28 = vadd.f32 %v8555_v60, %v2455_v39  ;;  %v2461_v35 = vadd.f32 %v8647_v8, %v2301_v3  ;;  %v2899_v53 = vadd.f32 %v6598_v27, %v2739_v44  ;;  %v2462_v15 = vadd.f32 %v8657_v9, %v2302_v19  ;;  %v9606_v8 = vld [vmem:[#allocation33_spill] sm:$0xff]  ;;  %v8794_v9 = vld [vmem:[%s9452_s4] ss:$0 sm:$0xff] }
 0x2cc   : > { %v8741_v0 = vpop.f32.mrf.mxu1  ;;  %v2602_v55 = vadd.f32 %v8571_v47, %v2458_v11  ;;  %v2459_v51 = vadd.f32 %v8655_v34, %v2299_v52  ;;  %v2738_v47 = vadd.f32 %v2677_v56, %v2600_v16  ;;  %v8785_v26 = vpop.f32.mrf.mxu0 }
 0x2cd   : > { %v2737_v13 = vadd.f32 %v2674_v42, %v2599_v28  ;;  %v2300_v42 = vadd.f32 %v9606_v8, %v8561_v37  ;;  %v2605_v4 = vadd.f32 %v8593_v45, %v2461_v35  ;;  %v2606_v3 = vadd.f32 %v8608_v41, %v2462_v15 }
 0x2ce   : > { %v8748_v5 = vpop.f32.mrf.mxu1  ;;  %v2740_v60 = vadd.f32 %v6579_v29, %v2602_v55  ;;  %v9607_v29 = vld [vmem:[#allocation34_spill] sm:$0xff]  ;;  %v2603_v18 = vadd.f32 %v8599_v7, %v2459_v51  ;;  %v9609_v7 = vld [vmem:[#allocation15_spill] sm:$0xff]  ;;  %v2898_v35 = vadd.f32 %v2837_v58, %v2738_v47 }
 0x2cf   : > { %v2897_v34 = vadd.f32 %v2834_v43, %v2737_v13  ;;  %v2460_v17 = vadd.f32 %v8669_v23, %v2300_v42  ;;  %v2305_v62 = vadd.f32 %v9607_v29, %v8566_v6  ;;  %v2743_v56 = vadd.f32 %v6582_v49, %v2605_v4  ;;  %v2866_v13 = vpop.f32.mrf.mxu0 }
 0x2d0   : > { %v8753_v46 = vpop.f32.mrf.mxu1  ;;  %v2900_v45 = vadd.f32 %v6599_v54, %v2740_v60  ;;  %v2741_v23 = vadd.f32 %v2690_v50, %v2603_v18  ;;  %v2306_v44 = vadd.f32 %v9609_v7, %v8577_v21  ;;  %v2463_v49 = vadd.f32 %v8683_v33, %v2303_v31  ;;  %v9610_v54 = vld [vmem:[#allocation38_spill] sm:$0xff]  ;;  %v9614_v18 = vld [vmem:[#allocation48_spill] sm:$0xff] }
 0x2d1   : > { %v2465_v43 = vadd.f32 %v8671_v25, %v2305_v62  ;;  %v2304_v25 = vadd.f32 %v9610_v54, %v8582_v1  ;;  %v2744_v55 = vadd.f32 %v8719_v63, %v2606_v3  ;;  %v2604_v50 = vadd.f32 %v8618_v22, %v2460_v17  ;;  %v6607_v8 = vpop.f32.mrf.mxu0  ;;  %v9613_v17 = vld [vmem:[#allocation56_spill] sm:$0xff]  ;;  %v9617_v3 = vld [vmem:[#allocation51_spill] sm:$0xff] }
 0x2d2   : > { %v8761_v40 = vpop.f32.mrf.mxu1  ;;  %v2903_v19 = vadd.f32 %v8735_v36, %v2743_v56  ;;  %v2466_v58 = vadd.f32 %v8685_v32, %v2306_v44  ;;  %v2901_v1 = vadd.f32 %v8746_v59, %v2741_v23  ;;  %v9611_v36 = vld [vmem:[#allocation47_spill] sm:$0xff]  ;;  %v9612_v59 = vld [vmem:[#allocation40_spill] sm:$0xff]  ;;  %v6990_v44 = vld [vmem:[#allocation6] sm:$0xff]  }
 0x2d3   : > { %v2742_v60 = vadd.f32 %v8725_v48, %v2604_v50  ;;  %v2609_v33 = vadd.f32 %v8629_v2, %v2465_v43  ;;  %v2464_v42 = vadd.f32 %v8691_v57, %v2304_v25  ;;  %v2607_v47 = vadd.f32 %v9611_v36, %v2463_v49  ;;  %v2869_v43 = vpop.f32.mrf.mxu0  ;;  %v9619_v49 = vld [vmem:[#allocation59_spill] sm:$0xff] }
 0x2d4   : > { %v8769_v30 = vpop.f32.mrf.mxu1  ;;  %v2904_v48 = vadd.f32 %v8759_v12, %v2744_v55  ;;  %v2469_v29 = vadd.f32 %v9613_v17, %v9612_v59  ;;  %v9615_v12 = vld [vmem:[#allocation41_spill] sm:$0xff]  ;;  %v9626_v17 = vld [vmem:[#allocation60_spill] sm:$0xff] }
 0x2d5   : > { %v2745_v62 = vadd.f32 %v8737_v24, %v2607_v47  ;;  %v2467_v31 = vadd.f32 %v9616_v38, %v9615_v12  ;;  %v6610_v25 = vpop.f32.mrf.mxu0 }
 0x2d6   : > { %v8778_v14 = vpop.f32.mrf.mxu1 }
 0x2d7   : > { %v2882_v47 = vpop.f32.mrf.mxu0 }
 0x2d8   : > { %v6618_v39 = vpop.f32.mrf.mxu1 }
 0x2d9   : > { %v3043_v11 = vadd.f32 %v6618_v39, %v2899_v53  ;;  %v2747_v39 = vadd.f32 %v8729_v10, %v2609_v33  ;;  %v9623_v33 = vld [vmem:[#allocation61_spill] sm:$0xff] }
 0x2da   : > { %v2978_v37 = vpop.f32.mrf.mxu1 }
 0x2db   : > { %v3041_v27 = vadd.f32 %v2978_v37, %v2897_v34  ;;  %v3066_v28 = vadd.f32 %v8794_v9, %v3043_v11  ;;  %v2610_v37 = vadd.f32 %v9614_v18, %v2466_v58 }
 0x2dc   : > { %v6619_v6 = vpop.f32.mrf.mxu1 }
 0x2dd   : > { %v3044_v52 = vadd.f32 %v6619_v6, %v2900_v45  ;;  %v3064_v41 = vadd.f32 %v8794_v9, %v3041_v27  ;;  %v3082_v63 = vmax.f32 %v3066_v28, 0.0  ;;  %v2902_v45 = vadd.f32 %v8773_v61, %v2742_v60  ;;  %v9618_v61 = vld [vmem:[#allocation42_spill] sm:$0xff]  ;;  %v9621_v60 = vld [vmem:[#allocation36_spill] sm:$0xff] }
 0x2de   : > { %v2981_v20 = vpop.f32.mrf.mxu1  ;;  %v2748_v23 = vadd.f32 %v8741_v0, %v2610_v37  ;;  %v2608_v6 = vadd.f32 %v9617_v3, %v2464_v42  ;;  %v2470_v54 = vadd.f32 %v9619_v49, %v9618_v61  ;;  %v9620_v0 = vld [vmem:[#allocation54_spill] sm:$0xff] }
 0x2df   : > { %v3067_v51 = vadd.f32 %v8794_v9, %v3044_v52  ;;  %v3042_v21 = vadd.f32 %v2981_v20, %v2898_v35  ;;  %v3080_v4 = vmax.f32 %v3064_v41, 0.0  ;;  %v2907_v35 = vadd.f32 %v8785_v26, %v2747_v39  ;;  %v9622_v26 = vld [vmem:[#allocation44_spill] sm:$0xff] }
 0x2e0   : > { %v6622_v16 = vpop.f32.mrf.mxu1  ;;  %v2746_v55 = vadd.f32 %v8748_v5, %v2608_v6  ;;  %v2613_v50 = vadd.f32 %v9620_v0, %v2469_v29  ;;  %v2905_v41 = vadd.f32 %v2866_v13, %v2745_v62 }
 0x2e1   : > { %v3083_v53 = vmax.f32 %v3067_v51, 0.0  ;;  %v3065_v22 = vadd.f32 %v8794_v9, %v3042_v21  ;;  %v3047_v15 = vadd.f32 %v6622_v16, %v2903_v19  ;;  %v2468_v16 = vadd.f32 %v9623_v33, %v9622_v26  ;;  %v9628_v33 = vld [vmem:[#allocation53_spill] sm:$0xff] }
 0x2e2   : > { %v2994_v32 = vpop.f32.mrf.mxu1  ;;  %v2906_v59 = vadd.f32 %v2869_v43, %v2746_v55 }
 0x2e3   : > { %v3097_v2 = vpack.c.bf16 %v3083_v53, %v3082_v63  ;;  %v3081_v11 = vmax.f32 %v3065_v22, 0.0  ;;  %v3045_v34 = vadd.f32 %v2994_v32, %v2901_v1  ;;  %v3070_v10 = vadd.f32 %v8794_v9, %v3047_v15  ;;  %v9624_v63 = vld [vmem:[#allocation55_spill] sm:$0xff]  ;;  %v8845_v15 = vld [vmem:[#allocation6 + $0x38] sm:$0xff]  }
 0x2e4   : > { %v6623_v56 = vpop.f32.mrf.mxu1  ;;  %v2751_v1 = vadd.f32 %v8753_v46, %v2613_v50  ;;  %v2611_v5 = vadd.f32 %v9624_v63, %v2467_v31  ;;  %v2908_v22 = vadd.f32 %v6607_v8, %v2748_v23  ;;  %v2612_v29 = vadd.f32 %v9626_v17, %v2468_v16  ;;  %v9630_v63 = vld [vmem:[#allocation18_spill] sm:$0xff]  ;;  %v9638_v17 = vld [vmem:[#allocation45_spill] sm:$0xff] }
 0x2e5   : > { %v3096_v57 = vpack.c.bf16 %v3081_v11, %v3080_v4  ;;  %v3048_v27 = vadd.f32 %v6623_v56, %v2904_v48  ;;  %v3068_v24 = vadd.f32 %v8794_v9, %v3045_v34  ;;  %v3086_v51 = vmax.f32 %v3070_v10, 0.0  ;;  %v9625_v48 = vld [vmem:[#allocation57_spill] sm:$0xff] }
 0x2e6   : > { %v2997_v7 = vpop.f32.mrf.mxu1  ;;  %v2749_v32 = vadd.f32 %v8761_v40, %v2611_v5  ;;  %v2614_v4 = vadd.f32 %v9625_v48, %v2470_v54  ;;  %v2911_v56 = vadd.f32 %v6610_v25, %v2751_v1  ;;  %v2750_v10 = vadd.f32 %v8778_v14, %v2612_v29  ;;  %v9629_v1 = vld [vmem:[#allocation19_spill] sm:$0xff]  ;;  %v9639_v29 = vld [vmem:[#allocation46_spill] sm:$0xff] }
 0x2e7   : > { %v3071_v28 = vadd.f32 %v8794_v9, %v3048_v27  ;;  %v3046_v52 = vadd.f32 %v2997_v7, %v2902_v45  ;;  %6636 = vmatprep.mubr.msk.bf16.mxu0 %vm1633_vm9, %v3096_v57  ;;  %v3084_v13 = vmax.f32 %v3068_v24, 0.0  ;;  %v6611_v57 = vpop.f32.mrf.mxu0  ;;  %v4939_v16 = vrot.slane %v9628_v33, 5 }
 0x2e8   : > { %v6626_v20 = vpop.f32.mrf.mxu1  ;;  %6637 = vmatmul.mubr.msk.bf16.vlgmr.msra.gmra.mxu0 %vm1633_vm9, %v3097_v2  ;;  %v2752_v8 = vadd.f32 %v8769_v30, %v2614_v4  ;;  %v2909_v30 = vadd.f32 %v2882_v47, %v2749_v32  ;;  %v9631_v5 = vcombine.low %v9629_v1, %v9630_v63  ;;  %v9634_v32 = vld [vmem:[#allocation21_spill] sm:$0xff]  ;;  %v9635_v4 = vld [vmem:[#allocation20_spill] sm:$0xff] }
 0x2e9   : > { %v3087_v21 = vmax.f32 %v3071_v28, 0.0  ;;  %v3069_v19 = vadd.f32 %v8794_v9, %v3046_v52  ;;  %v3051_v58 = vadd.f32 %v6626_v20, %v2907_v35  ;;  %6673 = vmatpush3.bf16.msra.mxu0 %v9621_v60  ;;  %v2885_v24 = vpop.f32.mrf.mxu0  ;;  %v4791_v60 = vshrl.u32 %v9628_v33, 16 }
 0x2ea   : > { %v3010_v53 = vpop.f32.mrf.mxu1  ;;  %6674 = vmatprep.subr.bf16.mxu0 %v6990_v44  ;;  %v2912_v23 = vadd.f32 %v6611_v57, %v2752_v8  ;;  %v2910_v61 = vadd.f32 %v2885_v24, %v2750_v10  ;;  %v6996_v57 = vld [vmem:[#allocation6 + $0x50] sm:$0xff]   ;;  %v9645_v24 = vld [vmem:[#allocation31_spill] sm:$0xff] }
 0x2eb   : > { %v3099_v42 = vpack.c.bf16 %v3087_v21, %v3086_v51  ;;  %v3085_v39 = vmax.f32 %v3069_v19, 0.0  ;;  %v3049_v36 = vadd.f32 %v3010_v53, %v2905_v41  ;;  %v3074_v46 = vadd.f32 %v8794_v9, %v3051_v58  ;;  %v432_v19 = vld [vmem:[#allocation2 + $0xd4] sm:$0x1] }
 0x2ec   : > { %v6627_v2 = vpop.f32.mrf.mxu1  ;;  %v433_v26 = vsel %vm7358_vm4, 0, %v432_v19 }
 0x2ed   : > { %v3098_v11 = vpack.c.bf16 %v3085_v39, %v3084_v13  ;;  %v3052_v34 = vadd.f32 %v6627_v2, %v2908_v22  ;;  %6675 = vmatpush3.bf16.msra.mxu0 %v6990_v44  ;;  %v3072_v18 = vadd.f32 %v8794_v9, %v3049_v36  ;;  %v3090_v45 = vmax.f32 %v3074_v46, 0.0  ;;  %434 = vst [vmem:[#allocation2 + $0xd4] sm:$0x1] %v433_v26  ;;  %v9654_v26 = vld [vmem:[#allocation25_spill] sm:$0xff]  ;;  %v9655_v39 = vld [vmem:[#allocation26_spill] sm:$0xff] }
 0x2ee   : > { %v3013_v62 = vpop.f32.mrf.mxu1  ;;  %6712 = vmatprep.subr.bf16.mxu0 %v8845_v15  ;;  %v4941_v22 = vrot.slane %v4939_v16, 4 }
 0x2ef   : > { %v3075_v40 = vadd.f32 %v8794_v9, %v3052_v34  ;;  %v3050_v37 = vadd.f32 %v3013_v62, %v2906_v59  ;;  %6640 = vmatprep.mubr.msk.bf16.mxu0 %vm1633_vm9, %v3098_v11  ;;  %v3088_v3 = vmax.f32 %v3072_v18, 0.0  ;;  %v6995_v11 = vld [vmem:[#allocation6 + $0x58] sm:$0xff]   ;;  %v9637_v59 = vld [vmem:[#allocation43_spill] sm:$0xff] }
 0x2f0   : > { %v6630_v27 = vpop.f32.mrf.mxu1  ;;  %6641 = vmatmul.mubr.msk.bf16.gmra.mxu0 %vm1633_vm9, %v3099_v42  ;;  %v6994_v42 = vld [vmem:[#allocation6 + $0x30] sm:$0xff]   ;;  %v9636_v34 = vld [vmem:[#allocation17_spill] sm:$0xff] }
 0x2f1   : > { %v3091_v43 = vmax.f32 %v3075_v40, 0.0  ;;  %v3073_v12 = vadd.f32 %v8794_v9, %v3050_v37  ;;  %v3055_v38 = vadd.f32 %v6630_v27, %v2911_v56  ;;  %v9640_v40 = vld [vmem:[#allocation49_spill] sm:$0xff] }
 0x2f2   : > { %v3026_v31 = vpop.f32.mrf.mxu1  ;;  %v6997_v27 = vld [vmem:[#allocation6 + $0x78] sm:$0xff]  }
 0x2f3   : > { %v3101_v6 = vpack.c.bf16 %v3091_v43, %v3090_v45  ;;  %v3089_v7 = vmax.f32 %v3073_v12, 0.0  ;;  %v3053_v44 = vadd.f32 %v3026_v31, %v2909_v30  ;;  %v3078_v14 = vadd.f32 %v8794_v9, %v3055_v38  ;;  %v9641_v31 = vld [vmem:[#allocation50_spill] sm:$0xff] }
 0x2f4   : > { %v6631_v28 = vpop.f32.mrf.mxu1  ;;  %v8875_v13 = vld [vmem:[#allocation2 + $0xd4] sm:$0x1] }
 0x2f5   : > { %v3100_v52 = vpack.c.bf16 %v3089_v7, %v3088_v3  ;;  %v3056_v35 = vadd.f32 %v6631_v28, %v2912_v23  ;;  %v3076_v54 = vadd.f32 %v8794_v9, %v3053_v44  ;;  %v3094_v0 = vmax.f32 %v3078_v14, 0.0  ;;  %v9642_v23 = vld [vmem:[#allocation29_spill] sm:$0xff]  ;;  %v6998_v7 = vld [vmem:[#allocation6 + $0x70] sm:$0xff]   ;;  %v9644_v44 = vld [vmem:[#allocation30_spill] sm:$0xff] }
 0x2f6   : > { %v3029_v49 = vpop.f32.mrf.mxu1  ;;  %v4942_v47 = vrot.slane %v8875_v13, 5  ;;  %v9647_v14 = vld [vmem:[#allocation32_spill] sm:$0xff] }
 0x2f7   : > { %v3079_v25 = vadd.f32 %v8794_v9, %v3056_v35  ;;  %v3054_v55 = vadd.f32 %v3029_v49, %v2910_v61  ;;  %6644 = vmatprep.mubr.msk.bf16.mxu0 %vm1633_vm9, %v3100_v52  ;;  %v3092_v41 = vmax.f32 %v3076_v54, 0.0  ;;  %v9648_v35 = vld [vmem:[#allocation22_spill] sm:$0xff]  ;;  %v9649_v54 = vld [vmem:[#allocation16_spill] sm:$0xff] }
 0x2f8   : > { %6645 = vmatmul.mubr.msk.bf16.gmra.mxu0 %vm1633_vm9, %v3101_v6  ;;  %v4943_v48 = vsel %vm7441_vm12, %v4941_v22, %v4942_v47  ;;  %v8888_v46 = vpop.f32.mrf.mxu1  ;;  %v4793_v22 = vrot.slane %v4791_v60, 4  ;;  %v6007_v60 = vld [vmem:[%s7304_s15] sm:$0xff]  }
 0x2f9   : > { %v3095_v50 = vmax.f32 %v3079_v25, 0.0  ;;  %v3077_v20 = vadd.f32 %v8794_v9, %v3054_v55  ;;  %v9632_v9 = vld [vmem:[#allocation52_spill] sm:$0xff]  ;;  %v9650_v25 = vld [vmem:[#allocation35_spill] sm:$0xff] }
 0x2fa   : > { %v5863_v53 = vrot.slane %v9632_v9, 9  ;;  %v8894_v8 = vpop.f32.mrf.mxu1  ;;  %v4778_v19 = vshrl.u32 %v9632_v9, 16 }
 0x2fb   : > { %v3103_v51 = vpack.c.bf16 %v3095_v50, %v3094_v0  ;;  %v3093_v21 = vmax.f32 %v3077_v20, 0.0  ;;  %v9651_v50 = vld [vmem:[#allocation62_spill] sm:$0xff]  ;;  %v9652_v20 = vld [vmem:[#allocation23_spill] sm:$0xff] }
 0x2fc   : > { %v4940_v36 = vsel %vm7441_vm12, %v5863_v53, %v4939_v16  ;;  %v4787_v16 = vshll.u32 %v9628_v33, 16  ;;  %v4780_v63 = vrot.slane %v4778_v19, 4  ;;  %v6150_v19 = vld [vmem:[%s7304_s15 + $0x8] sm:$0xff]  }
 0x2fd   : > { %v3102_v58 = vpack.c.bf16 %v3093_v21, %v3092_v41  ;;  %v5864_v2 = vcombine.low %v4940_v36, %v4943_v48  ;;  %v9653_v21 = vld [vmem:[#allocation24_spill] sm:$0xff]  ;;  %v9656_v36 = vld [vmem:[#allocation27_spill] sm:$0xff] }
 0x2fe   : > { %v4789_v53 = vrot.slane %v4787_v16, 5  ;;  %v6012_v16 = vunpack.c.l.bf16 %v6150_v19 }
 0x2ff   : > { %6648 = vmatprep.mubr.msk.bf16.mxu0 %vm1633_vm9, %v3102_v58  ;;  %6829 = vmatmul.mubr.msk.bf16.gmra.mxu1 %vm1633_vm9, %v5864_v2  ;;  %v4781_v58 = vshll.u32 %v9632_v9, 16 }
 0x300   : > { %6649 = vmatmul.mubr.msk.bf16.gmra.mxu0 %vm1633_vm9, %v3103_v51  ;;  %v4794_v47 = vor.u32 %v4793_v22, %v4789_v53  ;;  %v6008_v22 = vunpack.c.l.bf16 %v6007_v60 }
 0x301   : > { %6676 = vmatprep.mubr.msk.bf16.mxu0 %vm1633_vm9, %v9631_v5  ;;  %v4783_v5 = vrot.slane %v4781_v58, 5 }
 0x303   : > { %v4784_v9 = vor.u32 %v4783_v5, %v4780_v63 }
 0x305   : > { %v4785_v33 = vrot.slane %v4784_v9, 4 }
 0x308   : > { %6677 = vmatmul.mubr.msk.bf16.vlgmr.msra.gmra.mxu0 %vm1633_vm9, %v9634_v32 }
 0x309   : > { %6713 = vmatpush3.bf16.msra.mxu0 %v8845_v15  ;;  %6680 = vmatprep.mubr.msk.bf16.mxu0 %vm1633_vm9, %v9635_v4  ;;  %v8896_v15 = vpop.f32.mrf.mxu1 }
 0x30a   : > { %6714 = vmatprep.subr.bf16.mxu0 %v6994_v42 }
 0x30b   : > { %v8902_v62 = vpop.f32.mrf.mxu1 }
 0x30d   : > { %6715 = vmatpush3.bf16.msra.mxu0 %v6994_v42  ;;  %v8904_v18 = vpop.f32.mrf.mxu1 }
 0x30e   : > { %6752 = vmatprep.subr.bf16.mxu0 %v6995_v11 }
 0x30f   : > { %v8910_v37 = vpop.f32.mrf.mxu1 }
 0x310   : > { %6681 = vmatmul.mubr.msk.bf16.gmra.mxu0 %vm1633_vm9, %v9636_v34 }
 0x311   : > { %6684 = vmatprep.mubr.msk.bf16.mxu0 %vm1633_vm9, %v9637_v59  ;;  %v8912_v56 = vpop.f32.mrf.mxu1 }
 0x313   : > { %v8918_v10 = vpop.f32.mrf.mxu1 }
 0x315   : > { %v8920_v30 = vpop.f32.mrf.mxu1 }
 0x317   : > { %v8926_v45 = vpop.f32.mrf.mxu1 }
 0x318   : > { %6685 = vmatmul.mubr.msk.bf16.gmra.mxu0 %vm1633_vm9, %v9638_v17 }
 0x319   : > { %6688 = vmatprep.mubr.msk.bf16.mxu0 %vm1633_vm9, %v9639_v29  ;;  %v8928_v43 = vpop.f32.mrf.mxu1 }
 0x31b   : > { %v8934_v12 = vpop.f32.mrf.mxu1 }
 0x31d   : > { %v8936_v38 = vpop.f32.mrf.mxu1 }
 0x31f   : > { %v8942_v3 = vpop.f32.mrf.mxu1 }
 0x320   : > { %6689 = vmatmul.mubr.msk.bf16.gmra.mxu0 %vm1633_vm9, %v9640_v40 }
 0x321   : > { %6716 = vmatprep.mubr.msk.bf16.mxu0 %vm1633_vm9, %v9634_v32  ;;  %v8944_v6 = vpop.f32.mrf.mxu1  ;;  %v4797_v32 = vshll.u32 %v8875_v13, 16 }
 0x322   : > { %9643 = vst [vmem:[#allocation33_spill] sm:$0xff] %v8944_v6 }
 0x323   : > { %v8950_v28 = vpop.f32.mrf.mxu1  ;;  %v4799_v2 = vrot.slane %v4797_v32, 5  ;;  %v6009_v32 = vunpack.c.h.bf16 %v6007_v60 }
 0x324   : > { %9646 = vst [vmem:[#allocation34_spill] sm:$0xff] %v8950_v28 }
 0x325   : > { %v8952_v52 = vpop.f32.mrf.mxu1 }
 0x327   : > { %v8958_v61 = vpop.f32.mrf.mxu1 }
 0x328   : > { %6717 = vmatmul.mubr.msk.bf16.vlgmr.msra.gmra.mxu0 %vm1633_vm9, %v9635_v4  ;;  %v4795_v4 = vrot.slane %v4794_v47, 4 }
 0x329   : > { %6753 = vmatpush3.bf16.msra.mxu0 %v6995_v11  ;;  %6720 = vmatprep.mubr.msk.bf16.mxu0 %vm1633_vm9, %v9636_v34  ;;  %v8960_v49 = vpop.f32.mrf.mxu1  ;;  %v9658_v34 = vld [vmem:[#allocation28_spill] sm:$0xff] }
 0x32a   : > { %6754 = vmatprep.subr.bf16.mxu0 %v6996_v57 }
 0x32b   : > { %v8966_v55 = vpop.f32.mrf.mxu1 }
 0x32d   : > { %6755 = vmatpush3.bf16.msra.mxu0 %v6996_v57  ;;  %v8968_v0 = vpop.f32.mrf.mxu1 }
 0x32e   : > { %6792 = vmatprep.subr.bf16.mxu0 %v6997_v27 }
 0x32f   : > { %v8974_v41 = vpop.f32.mrf.mxu1 }
 0x330   : > { %6721 = vmatmul.mubr.msk.bf16.gmra.mxu0 %vm1633_vm9, %v9637_v59  ;;  %v9659_v59 = vld [vmem:[#allocation39_spill] sm:$0xff] }
 0x331   : > { %6724 = vmatprep.mubr.msk.bf16.mxu0 %vm1633_vm9, %v9638_v17  ;;  %v8976_v51 = vpop.f32.mrf.mxu1 }
 0x333   : > { %v8986_v1 = vpop.f32.mrf.mxu1 }
 0x335   : > { %v8988_v42 = vpop.f32.mrf.mxu1 }
 0x337   : > { %v8995_v48 = vpop.f32.mrf.mxu1 }
 0x338   : > { %6725 = vmatmul.mubr.msk.bf16.gmra.mxu0 %vm1633_vm9, %v9639_v29  ;;  %v4790_v29 = vsel %vm7418_vm8, %v4785_v33, %v4789_v53  ;;  %v6152_v33 = vld [vmem:[%s7304_s15 + $0x18] sm:$0xff]  }
 0x339   : > { %6728 = vmatprep.mubr.msk.bf16.mxu0 %vm1633_vm9, %v9640_v40  ;;  %v8997_v11 = vpop.f32.mrf.mxu1  ;;  %v4800_v40 = vsel %vm7418_vm8, %v4795_v4, %v4799_v2 }
 0x33a   : > { %9657 = vst [vmem:[#allocation37_spill] sm:$0xff] %v8997_v11  ;;  %v5852_v57 = vcombine.low %v4790_v29, %v4800_v40  ;;  %v6151_v29 = vld [vmem:[%s7304_s15 + $0x10] sm:$0xff]   ;;  %v7000_v40 = vld [vmem:[%s9453_s5] sm:$0xff]  }
 0x33b   : > { %v9007_v13 = vpop.f32.mrf.mxu1 }
 0x33c   : > { %9661 = vst [vmem:[#allocation15_spill] sm:$0xff] %v9007_v13 }
 0x340   : > { %6729 = vmatmul.mubr.msk.bf16.gmra.mxu0 %vm1633_vm9, %v9641_v31 }
 0x341   : > { %6756 = vmatprep.mubr.msk.bf16.mxu0 %vm1633_vm9, %v9642_v23 }
 0x348   : > { %6757 = vmatmul.mubr.msk.bf16.vlgmr.msra.gmra.mxu0 %vm1633_vm9, %v9644_v44 }
 0x349   : > { %6793 = vmatpush3.bf16.msra.mxu0 %v6997_v27  ;;  %6760 = vmatprep.mubr.msk.bf16.mxu0 %vm1633_vm9, %v9645_v24  ;;  %v9009_v27 = vpop.f32.mrf.mxu1 }
 0x34a   : > { %6794 = vmatprep.subr.bf16.mxu0 %v6998_v7 }
 0x34b   : > { %v9012_v31 = vpop.f32.mrf.mxu1 }
 0x34c   : > { %9662 = vst [vmem:[#allocation38_spill] sm:$0xff] %v9012_v31 }
 0x34d   : > { %6795 = vmatpush3.bf16.msra.mxu0 %v6998_v7  ;;  %v9014_v23 = vpop.f32.mrf.mxu1 }
 0x34e   : > { %9663 = vst [vmem:[#allocation47_spill] sm:$0xff] %v9014_v23 }
 0x34f   : > { %v9016_v7 = vpop.f32.mrf.mxu1 }
 0x350   : > { %6761 = vmatmul.mubr.msk.bf16.gmra.mxu0 %vm1633_vm9, %v9647_v14  ;;  %9664 = vst [vmem:[#allocation40_spill] sm:$0xff] %v9016_v7 }
 0x351   : > { %6764 = vmatprep.mubr.msk.bf16.mxu0 %vm1633_vm9, %v9648_v35  ;;  %v9018_v44 = vpop.f32.mrf.mxu1  ;;  %v6999_v35 = vld [vmem:[%s9453_s5 + $0x8] sm:$0xff]  }
 0x352   : > { %6832 = vmatprep.subr.bf16.mxu0 %v6999_v35 }
 0x353   : > { %v9020_v24 = vpop.f32.mrf.mxu1 }
 0x355   : > { %v9022_v14 = vpop.f32.mrf.mxu1 }
 0x358   : > { %6765 = vmatmul.mubr.msk.bf16.gmra.mxu0 %vm1633_vm9, %v9649_v54  ;;  %v9027_v54 = vpop.f32.mrf.mxu1 }
 0x359   : > { %6768 = vmatprep.mubr.msk.bf16.mxu0 %vm1633_vm9, %v9650_v25 }
 0x35a   : > { %v9029_v25 = vpop.f32.mrf.mxu1 }
 0x360   : > { %6769 = vmatmul.mubr.msk.bf16.gmra.mxu0 %vm1633_vm9, %v9651_v50  ;;  %v9031_v50 = vpop.f32.mrf.mxu1 }
 0x361   : > { %6796 = vmatprep.mubr.msk.bf16.mxu0 %vm1633_vm9, %v9652_v20  ;;  %9665 = vst [vmem:[#allocation56_spill] sm:$0xff] %v9031_v50 }
 0x362   : > { %v9033_v20 = vpop.f32.mrf.mxu1 }
 0x363   : > { %9666 = vst [vmem:[#allocation48_spill] sm:$0xff] %v9033_v20 }
 0x364   : > { %v9043_v63 = vpop.f32.mrf.mxu1 }
 0x365   : > { %9668 = vst [vmem:[#allocation58_spill] sm:$0xff] %v9043_v63 }
 0x366   : > { %v9048_v4 = vpop.f32.mrf.mxu1 }
 0x368   : > { %6797 = vmatmul.mubr.msk.bf16.vlgmr.msra.gmra.mxu0 %vm1633_vm9, %v9653_v21  ;;  %v9038_v21 = vld [vmem:[%s9454_s6] ss:$0 sm:$0xff] }
 0x369   : > { %6800 = vmatprep.mubr.msk.bf16.mxu0 %vm1633_vm9, %v9654_v26  ;;  %6833 = vmatpush3.bf16.msra.mxu0 %v6999_v35  ;;  %9667 = vst [vmem:[#allocation41_spill] sm:$0xff] %v9038_v21  ;;  %v6020_v35 = vunpack.c.l.bf16 %v6152_v33 }
 0x36a   : > { %6834 = vmatprep.subr.bf16.mxu0 %v7000_v40 }
 0x36d   : > { %6835 = vmatpush3.bf16.msra.mxu0 %v7000_v40 }
 0x370   : > { %6801 = vmatmul.mubr.msk.bf16.gmra.mxu0 %vm1633_vm9, %v9655_v39  ;;  %v6013_v39 = vunpack.c.h.bf16 %v6150_v19 }
 0x371   : > { %6804 = vmatprep.mubr.msk.bf16.mxu0 %vm1633_vm9, %v9656_v36 }
 0x378   : > { %6805 = vmatmul.mubr.msk.bf16.gmra.mxu0 %vm1633_vm9, %v9658_v34 }
 0x379   : > { %6808 = vmatprep.mubr.msk.bf16.mxu0 %vm1633_vm9, %v9659_v59 }
 0x380   : > { %6809 = vmatmul.mubr.msk.bf16.gmra.mxu0 %vm1633_vm9, %v5852_v57 }
 0x3a8   : > { %v6638_v58 = vpop.f32.mrf.mxu0 }
 0x3a9   : > { %v3194_v26 = vadd.f32 %v6638_v58, %v9038_v21 }
 0x3aa   : > { %v3185_v5 = vpop.f32.mrf.mxu0 }
 0x3ab   : > { %v3186_v53 = vadd.f32 %v9038_v21, %v3185_v5  ;;  %v3285_v9 = vadd.f32 %v6012_v16, %v3194_v26  ;;  %v9056_v16 = vpop.f32.mrf.mxu1 }
 0x3ac   : > { %v6639_v36 = vpop.f32.mrf.mxu0  ;;  %9669 = vst [vmem:[#allocation51_spill] sm:$0xff] %v9056_v16 }
 0x3ad   : > { %v3197_v47 = vadd.f32 %v6639_v36, %v9038_v21  ;;  %v3283_v34 = vadd.f32 %v6008_v22, %v3186_v53  ;;  %v3301_v19 = vmax.f32 %v3285_v9, 0.0  ;;  %v6016_v53 = vunpack.c.l.bf16 %v6151_v29  ;;  %v9066_v40 = vpop.f32.mrf.mxu1 }
 0x3ae   : > { %v3188_v2 = vpop.f32.mrf.mxu0  ;;  %v6021_v22 = vunpack.c.h.bf16 %v6152_v33  ;;  %v6154_v33 = vld [vmem:[%s7304_s15 + $0x28] sm:$0xff]   ;;  %9670 = vst [vmem:[#allocation42_spill] sm:$0xff] %v9066_v40 }
 0x3af   : > { %v3286_v59 = vadd.f32 %v6013_v39, %v3197_v47  ;;  %v3189_v17 = vadd.f32 %v9038_v21, %v3188_v2  ;;  %v3299_v39 = vmax.f32 %v3283_v34, 0.0  ;;  %v6028_v16 = vunpack.c.l.bf16 %v6154_v33 }
 0x3b0   : > { %v6642_v57 = vpop.f32.mrf.mxu0 }
 0x3b1   : > { %v3302_v58 = vmax.f32 %v3286_v59, 0.0  ;;  %v3284_v26 = vadd.f32 %v6009_v32, %v3189_v17  ;;  %v3210_v60 = vadd.f32 %v6642_v57, %v9038_v21  ;;  %v6017_v17 = vunpack.c.h.bf16 %v6151_v29  ;;  %v9072_v29 = vpop.f32.mrf.mxu1 }
 0x3b2   : > { %v3201_v5 = vpop.f32.mrf.mxu0  ;;  %9671 = vst [vmem:[#allocation59_spill] sm:$0xff] %v9072_v29 }
 0x3b3   : > { %v6046_v36 = vpack.c.bf16 %v3302_v58, %v3301_v19  ;;  %v3300_v47 = vmax.f32 %v3284_v26, 0.0  ;;  %v3202_v2 = vadd.f32 %v9038_v21, %v3201_v5  ;;  %v3289_v32 = vadd.f32 %v6020_v35, %v3210_v60  ;;  %v6153_v26 = vld [vmem:[%s7304_s15 + $0x20] sm:$0xff]  }
 0x3b4   : > { %v6643_v7 = vpop.f32.mrf.mxu0  ;;  %v6024_v60 = vunpack.c.l.bf16 %v6153_v26 }
 0x3b5   : > { %6157 = vst [vmem:[%s9061_s29 + $0x8] sm:$0xff] %v6046_v36   ;;  %v6041_v9 = vpack.c.bf16 %v3300_v47, %v3299_v39  ;;  %v3213_v59 = vadd.f32 %v6643_v7, %v9038_v21  ;;  %v3287_v57 = vadd.f32 %v6016_v53, %v3202_v2  ;;  %v3305_v23 = vmax.f32 %v3289_v32, 0.0 }
 0x3b6   : > { %v3204_v34 = vpop.f32.mrf.mxu0  ;;  %v6029_v47 = vunpack.c.h.bf16 %v6154_v33 }
 0x3b7   : > { %6042 = vst [vmem:[%s9061_s29] sm:$0xff] %v6041_v9   ;;  %v3290_v19 = vadd.f32 %v6021_v22, %v3213_v59  ;;  %v3205_v58 = vadd.f32 %v9038_v21, %v3204_v34  ;;  %v3303_v53 = vmax.f32 %v3287_v57, 0.0  ;;  %v6155_v57 = vld [vmem:[%s7304_s15 + $0x30] sm:$0xff]  }
 0x3b8   : > { %v6646_v5 = vpop.f32.mrf.mxu0 }
 0x3b9   : > { %v3306_v36 = vmax.f32 %v3290_v19, 0.0  ;;  %v3288_v39 = vadd.f32 %v6017_v17, %v3205_v58  ;;  %v3226_v7 = vadd.f32 %v6646_v5, %v9038_v21  ;;  %v6025_v19 = vunpack.c.h.bf16 %v6153_v26  ;;  %v6156_v58 = vld [vmem:[%s7304_s15 + $0x38] sm:$0xff]   ;;  %v9078_v5 = vpop.f32.mrf.mxu1 }
 0x3ba   : > { %v3217_v35 = vpop.f32.mrf.mxu0 }
 0x3bb   : > { %v6056_v22 = vpack.c.bf16 %v3306_v36, %v3305_v23  ;;  %v3304_v2 = vmax.f32 %v3288_v39, 0.0  ;;  %v3218_v9 = vadd.f32 %v9038_v21, %v3217_v35  ;;  %v3293_v34 = vadd.f32 %v6028_v16, %v3226_v7  ;;  %v9084_v7 = vpop.f32.mrf.mxu1 }
 0x3bc   : > { %v6647_v59 = vpop.f32.mrf.mxu0  ;;  %v6036_v39 = vunpack.c.l.bf16 %v6156_v58  ;;  %9672 = vst [vmem:[#allocation54_spill] sm:$0xff] %v9084_v7 }
 0x3bd   : > { %6159 = vst [vmem:[%s9061_s29 + $0x18] sm:$0xff] %v6056_v22   ;;  %v6051_v32 = vpack.c.bf16 %v3304_v2, %v3303_v53  ;;  %v3229_v17 = vadd.f32 %v6647_v59, %v9038_v21  ;;  %v3291_v40 = vadd.f32 %v6024_v60, %v3218_v9  ;;  %v3309_v35 = vmax.f32 %v3293_v34, 0.0 }
 0x3be   : > { %v3220_v29 = vpop.f32.mrf.mxu0  ;;  %v6032_v2 = vunpack.c.l.bf16 %v6155_v57  ;;  %v6037_v59 = vunpack.c.h.bf16 %v6156_v58 }
 0x3bf   : > { %6158 = vst [vmem:[%s9061_s29 + $0x10] sm:$0xff] %v6051_v32   ;;  %v3294_v33 = vadd.f32 %v6029_v47, %v3229_v17  ;;  %v3221_v23 = vadd.f32 %v9038_v21, %v3220_v29  ;;  %v3307_v32 = vmax.f32 %v3291_v40, 0.0 }
 0x3c0   : > { %v6650_v36 = vpop.f32.mrf.mxu0 }
 0x3c1   : > { %v3310_v22 = vmax.f32 %v3294_v33, 0.0  ;;  %v3292_v53 = vadd.f32 %v6025_v19, %v3221_v23  ;;  %v3242_v16 = vadd.f32 %v6650_v36, %v9038_v21  ;;  %v6033_v19 = vunpack.c.h.bf16 %v6155_v57  ;;  %v9089_v33 = vpop.f32.mrf.mxu1 }
 0x3c2   : > { %v3233_v26 = vpop.f32.mrf.mxu0  ;;  %9673 = vst [vmem:[#allocation36_spill] sm:$0xff] %v9089_v33 }
 0x3c3   : > { %v6066_v60 = vpack.c.bf16 %v3310_v22, %v3309_v35  ;;  %v3308_v47 = vmax.f32 %v3292_v53, 0.0  ;;  %v3234_v29 = vadd.f32 %v9038_v21, %v3233_v26  ;;  %v3297_v63 = vadd.f32 %v6036_v39, %v3242_v16  ;;  %v9095_v26 = vpop.f32.mrf.mxu1 }
 0x3c4   : > { %v6651_v9 = vpop.f32.mrf.mxu0  ;;  %9674 = vst [vmem:[#allocation44_spill] sm:$0xff] %v9095_v26 }
 0x3c5   : > { %6161 = vst [vmem:[%s9061_s29 + $0x28] sm:$0xff] %v6066_v60   ;;  %v6061_v17 = vpack.c.bf16 %v3308_v47, %v3307_v32  ;;  %v3245_v34 = vadd.f32 %v6651_v9, %v9038_v21  ;;  %v3295_v36 = vadd.f32 %v6032_v2, %v3234_v29  ;;  %v3313_v35 = vmax.f32 %v3297_v63, 0.0 }
 0x3c6   : > { %v3236_v23 = vpop.f32.mrf.mxu0 }
 0x3c7   : > { %6160 = vst [vmem:[%s9061_s29 + $0x20] sm:$0xff] %v6061_v17   ;;  %v3298_v7 = vadd.f32 %v6037_v59, %v3245_v34  ;;  %v3237_v40 = vadd.f32 %v9038_v21, %v3236_v23  ;;  %v3311_v57 = vmax.f32 %v3295_v36, 0.0  ;;  %v9102_v59 = vpop.f32.mrf.mxu1 }
 0x3c8   : > { %v9093_v58 = vpop.f32.mrf.mxu0 }
 0x3c9   : > { %v3314_v22 = vmax.f32 %v3298_v7, 0.0  ;;  %v3296_v53 = vadd.f32 %v6033_v19, %v3237_v40  ;;  %v9109_v63 = vpop.f32.mrf.mxu1 }
 0x3ca   : > { %v9097_v39 = vpop.f32.mrf.mxu0  ;;  %9675 = vst [vmem:[#allocation61_spill] sm:$0xff] %v9109_v63 }
 0x3cb   : > { %v6076_v16 = vpack.c.bf16 %v3314_v22, %v3313_v35  ;;  %v3312_v32 = vmax.f32 %v3296_v53, 0.0  ;;  %v9115_v17 = vpop.f32.mrf.mxu1 }
 0x3cc   : > { %v9099_v60 = vpop.f32.mrf.mxu0  ;;  %9676 = vst [vmem:[#allocation55_spill] sm:$0xff] %v9115_v17 }
 0x3cd   : > { %6163 = vst [vmem:[%s9061_s29 + $0x38] sm:$0xff] %v6076_v16   ;;  %v6071_v2 = vpack.c.bf16 %v3312_v32, %v3311_v57  ;;  %v9119_v23 = vpop.f32.mrf.mxu1 }
 0x3ce   : > { %v9104_v47 = vpop.f32.mrf.mxu0  ;;  %9677 = vst [vmem:[#allocation57_spill] sm:$0xff] %v9119_v23 }
 0x3cf   : > { %6162 = vst [vmem:[%s9061_s29 + $0x30] sm:$0xff] %v6071_v2   ;;  %v9125_v35 = vpop.f32.mrf.mxu1 }
 0x3d0   : > { %v9107_v29 = vpop.f32.mrf.mxu0  ;;  %9678 = vst [vmem:[#allocation60_spill] sm:$0xff] %v9125_v35 }
 0x3d1   : > { %v9129_v57 = vpop.f32.mrf.mxu1 }
 0x3d2   : > { %v9111_v7 = vpop.f32.mrf.mxu0  ;;  %9679 = vst [vmem:[#allocation12_spill] sm:$0xff] %v9129_v57 }
 0x3d3   : > { %v9135_v2 = vpop.f32.mrf.mxu1 }
 0x3d4   : > { %v9113_v9 = vpop.f32.mrf.mxu0  ;;  %9681 = vst [vmem:[#allocation19_spill] sm:$0xff] %v9135_v2 }
 0x3d5   : > { %v9139_v33 = vpop.f32.mrf.mxu1 }
 0x3d6   : > { %v9117_v34 = vpop.f32.mrf.mxu0  ;;  %9683 = vst [vmem:[#allocation52_spill] sm:$0xff] %v9139_v33 }
 0x3d7   : > { %v9141_v28 = vpop.f32.mrf.mxu1 }
 0x3d8   : > { %v6686_v19 = vpop.f32.mrf.mxu0  ;;  %9684 = vst [vmem:[#allocation14_spill] sm:$0xff] %v9141_v28 }
 0x3d9   : > { %v9147_v57 = vpop.f32.mrf.mxu1 }
 0x3da   : > { %v9121_v36 = vpop.f32.mrf.mxu0  ;;  %9685 = vst [vmem:[#allocation21_spill] sm:$0xff] %v9147_v57 }
 0x3dc   : > { %v9123_v40 = vpop.f32.mrf.mxu0 }
 0x3de   : > { %v9127_v22 = vpop.f32.mrf.mxu0 }
 0x3e0   : > { %v6690_v53 = vpop.f32.mrf.mxu0 }
 0x3e1   : > { %v3954_v57 = vadd.f32 %v6690_v53, %v8936_v38 }
 0x3e2   : > { %v9131_v16 = vpop.f32.mrf.mxu0 }
 0x3e4   : > { %v9133_v32 = vpop.f32.mrf.mxu0 }
 0x3e5   : > { %9680 = vst [vmem:[#allocation53_spill] sm:$0xff] %v9133_v32  ;;  %v3938_v32 = vadd.f32 %v6686_v19, %v8920_v30 }
 0x3e6   : > { %v9137_v21 = vpop.f32.mrf.mxu0 }
 0x3e7   : > { %9682 = vst [vmem:[#allocation18_spill] sm:$0xff] %v9137_v21  ;;  %v9154_v21 = vpop.f32.mrf.mxu1  ;;  %v4195_v33 = vadd.f32 %v8988_v42, %v3938_v32 }
 0x3e8   : > { %v6718_v26 = vpop.f32.mrf.mxu0  ;;  %9686 = vst [vmem:[#allocation20_spill] sm:$0xff] %v9154_v21 }
 0x3e9   : > { %v9159_v50 = vpop.f32.mrf.mxu1 }
 0x3ea   : > { %v4259_v20 = vpop.f32.mrf.mxu0  ;;  %9688 = vst [vmem:[#allocation43_spill] sm:$0xff] %v9159_v50 }
 0x3eb   : > { %v9169_v19 = vpop.f32.mrf.mxu1 }
 0x3ec   : > { %v6719_v23 = vpop.f32.mrf.mxu0  ;;  %9691 = vst [vmem:[#allocation49_spill] sm:$0xff] %v9169_v19 }
 0x3ee   : > { %v9143_v35 = vpop.f32.mrf.mxu0 }
 0x3f0   : > { %v9145_v31 = vpop.f32.mrf.mxu0 }
 0x3f2   : > { %v9149_v13 = vpop.f32.mrf.mxu0 }
 0x3f4   : > { %v9152_v2 = vpop.f32.mrf.mxu0 }
 0x3f6   : > { %v9156_v6 = vpop.f32.mrf.mxu0 }
 0x3f7   : > { %9687 = vst [vmem:[#allocation17_spill] sm:$0xff] %v9156_v6  ;;  %v4199_v6 = vadd.f32 %v9009_v27, %v3954_v57 }
 0x3f8   : > { %v6726_v17 = vpop.f32.mrf.mxu0 }
 0x3f9   : > { %v4332_v28 = vadd.f32 %v6726_v17, %v4195_v33  ;;  %v9174_v33 = vpop.f32.mrf.mxu1 }
 0x3fa   : > { %v9161_v11 = vpop.f32.mrf.mxu0  ;;  %9693 = vst [vmem:[#allocation29_spill] sm:$0xff] %v9174_v33 }
 0x3fb   : > { %v9165_v63 = vadd.f32 %v9048_v4, %v4332_v28  ;;  %v9183_v28 = vpop.f32.mrf.mxu1 }
 0x3fc   : > { %v9167_v30 = vpop.f32.mrf.mxu0  ;;  %9697 = vst [vmem:[#allocation22_spill] sm:$0xff] %v9183_v28 }
 0x3fd   : > { %9689 = vst [vmem:[#allocation45_spill] sm:$0xff] %v9165_v63  ;;  %9690 = vst [vmem:[#allocation46_spill] sm:$0xff] %v9167_v30  ;;  %v9187_v19 = vpop.f32.mrf.mxu1  ;;  %v3909_v30 = vadd.f32 %v9099_v60, %v8896_v15 }
 0x3fe   : > { %v9171_v21 = vpop.f32.mrf.mxu0  ;;  %9699 = vst [vmem:[#allocation35_spill] sm:$0xff] %v9187_v19  ;;  %v3906_v19 = vadd.f32 %v9093_v58, %v8888_v46 }
 0x3ff   : > { %9692 = vst [vmem:[#allocation50_spill] sm:$0xff] %v9171_v21  ;;  %v9189_v57 = vpop.f32.mrf.mxu1  ;;  %v4188_v15 = vadd.f32 %v8960_v49, %v3909_v30 }
 0x400   : > { %v6730_v42 = vpop.f32.mrf.mxu0 }
 0x401   : > { %v4336_v32 = vadd.f32 %v6730_v42, %v4199_v6  ;;  %v9193_v33 = vpop.f32.mrf.mxu1 }
 0x402   : > { %v9176_v17 = vpop.f32.mrf.mxu0 }
 0x403   : > { %9694 = vst [vmem:[#allocation30_spill] sm:$0xff] %v9176_v17  ;;  %v9179_v50 = vadd.f32 %v9078_v5, %v4336_v32 }
 0x404   : > { %v9181_v38 = vpop.f32.mrf.mxu0 }
 0x405   : > { %9695 = vst [vmem:[#allocation31_spill] sm:$0xff] %v9179_v50  ;;  %9696 = vst [vmem:[#allocation32_spill] sm:$0xff] %v9181_v38  ;;  %v9199_v50 = vpop.f32.mrf.mxu1  ;;  %v3898_v38 = vadd.f32 %v9097_v39, %v8894_v8  ;;  %v3922_v8 = vadd.f32 %v9107_v29, %v8904_v18 }
 0x406   : > { %v9185_v4 = vpop.f32.mrf.mxu0  ;;  %9701 = vst [vmem:[#allocation23_spill] sm:$0xff] %v9199_v50 }
 0x407   : > { %9698 = vst [vmem:[#allocation16_spill] sm:$0xff] %v9185_v4  ;;  %v9209_v17 = vpop.f32.mrf.mxu1  ;;  %v4185_v58 = vadd.f32 %v8958_v61, %v3898_v38  ;;  %v9705_v38 = vld [vmem:[#allocation61_spill] sm:$0xff] }
 0x408   : > { %v6758_v53 = vpop.f32.mrf.mxu0 }
 0x40a   : > { %v4561_v63 = vpop.f32.mrf.mxu0 }
 0x40c   : > { %v6759_v27 = vpop.f32.mrf.mxu0 }
 0x40e   : > { %v4564_v6 = vpop.f32.mrf.mxu0 }
 0x410   : > { %v9191_v42 = vpop.f32.mrf.mxu0 }
 0x412   : > { %v9195_v5 = vpop.f32.mrf.mxu0 }
 0x414   : > { %v9197_v32 = vpop.f32.mrf.mxu0 }
 0x415   : > { %9700 = vst [vmem:[#allocation62_spill] sm:$0xff] %v9197_v32  ;;  %v4187_v32 = vadd.f32 %v8952_v52, %v3906_v19  ;;  %v3914_v52 = vadd.f32 %v9111_v7, %v8910_v37  ;;  %v4325_v19 = vadd.f32 %v6719_v23, %v4188_v15  ;;  %v3917_v7 = vadd.f32 %v9117_v34, %v8918_v10 }
 0x416   : > { %v9201_v28 = vpop.f32.mrf.mxu0 }
 0x417   : > { %9702 = vst [vmem:[#allocation24_spill] sm:$0xff] %v9201_v28  ;;  %v3901_v28 = vadd.f32 %v9104_v47, %v8902_v62  ;;  %v4324_v46 = vadd.f32 %v6718_v26, %v4187_v32  ;;  %v4191_v47 = vadd.f32 %v8968_v0, %v3922_v8  ;;  %v9711_v8 = vld [vmem:[#allocation53_spill] sm:$0xff] }
 0x418   : > { %v9205_v4 = vpop.f32.mrf.mxu0 }
 0x419   : > { %9703 = vst [vmem:[#allocation25_spill] sm:$0xff] %v9205_v4  ;;  %v9221_v4 = vpop.f32.mrf.mxu1  ;;  %v4186_v62 = vadd.f32 %v8966_v55, %v3901_v28  ;;  %v4483_v61 = vadd.f32 %v9018_v44, %v4324_v46  ;;  %v3930_v55 = vadd.f32 %v9121_v36, %v8926_v45  ;;  %v4189_v44 = vadd.f32 %v8974_v41, %v3914_v52  ;;  %v9712_v52 = vld [vmem:[#allocation15_spill] sm:$0xff] }
 0x41a   : > { %v9211_v21 = vpop.f32.mrf.mxu0  ;;  %v4328_v0 = vadd.f32 %v9145_v31, %v4191_v47  ;;  %v3933_v31 = vadd.f32 %v9127_v22, %v8934_v12  ;;  %v9707_v22 = vld [vmem:[#allocation37_spill] sm:$0xff]  ;;  %v9287_v47 = vld [vmem:[%s9452_s4] ss:$0 sm:$0xff] }
 0x41b   : > { %9704 = vst [vmem:[#allocation26_spill] sm:$0xff] %v9211_v21  ;;  %v4322_v21 = vadd.f32 %v4259_v20, %v4185_v58  ;;  %v9234_v26 = vpop.f32.mrf.mxu1  ;;  %v3925_v20 = vadd.f32 %v9113_v9, %v8912_v56  ;;  %v4323_v49 = vadd.f32 %v9143_v35, %v4186_v62  ;;  %v4626_v29 = vadd.f32 %v6758_v53, %v4483_v61  ;;  %v9706_v53 = vld [vmem:[#allocation17_spill] sm:$0xff] }
 0x41c   : > { %v9216_v50 = vpop.f32.mrf.mxu0  ;;  %v4484_v56 = vadd.f32 %v9022_v14, %v4325_v19  ;;  %v3946_v14 = vadd.f32 %v9131_v16, %v8942_v3  ;;  %v4487_v35 = vadd.f32 %v9029_v25, %v4328_v0  ;;  %v9708_v3 = vld [vmem:[#allocation56_spill] sm:$0xff]  ;;  %v9709_v25 = vld [vmem:[#allocation55_spill] sm:$0xff]  ;;  %v9710_v58 = vld [vmem:[#allocation33_spill] sm:$0xff]  ;;  %v4194_v19 = vadd.f32 %v9712_v52, %v3933_v31 }
 0x41d   : > { %v4481_v37 = vadd.f32 %v9020_v24, %v4322_v21  ;;  %v9252_v9 = vpop.f32.mrf.mxu1  ;;  %v3941_v24 = vadd.f32 %v9123_v40, %v8928_v43  ;;  %v4326_v21 = vadd.f32 %v9149_v13, %v4189_v44  ;;  %v4192_v45 = vadd.f32 %v8976_v51, %v3925_v20  ;;  %v9714_v20 = vld [vmem:[#allocation34_spill] sm:$0xff] }
 0x41e   : > { %v9225_v39 = vpop.f32.mrf.mxu0  ;;  %v4627_v34 = vadd.f32 %v6759_v27, %v4484_v56  ;;  %v4482_v41 = vadd.f32 %v9027_v54, %v4323_v49  ;;  %v4763_v36 = vadd.f32 %v9102_v59, %v4626_v29  ;;  %v4193_v43 = vadd.f32 %v8995_v48, %v3930_v55  ;;  %v9718_v56 = vld [vmem:[#allocation48_spill] sm:$0xff] }
 0x41f   : > { %v4624_v30 = vadd.f32 %v4561_v63, %v4481_v37  ;;  %v4190_v63 = vadd.f32 %v8986_v1, %v3917_v7  ;;  %v9270_v54 = vpop.f32.mrf.mxu1  ;;  %v4329_v59 = vadd.f32 %v9152_v2, %v4192_v45  ;;  %v4196_v27 = vadd.f32 %v9707_v22, %v3941_v24  ;;  %v9713_v2 = vld [vmem:[#allocation38_spill] sm:$0xff]  ;;  %v9716_v7 = vld [vmem:[#allocation57_spill] sm:$0xff] }
 0x420   : > { %v9230_v60 = vpop.f32.mrf.mxu0  ;;  %v4625_v40 = vadd.f32 %v4564_v6, %v4482_v41  ;;  %v4485_v16 = vadd.f32 %v9708_v3, %v4326_v21  ;;  %v4630_v48 = vadd.f32 %v9191_v42, %v4487_v35  ;;  %v4764_v46 = vadd.f32 %v9709_v25, %v4627_v34  ;;  %v9719_v21 = vld [vmem:[#allocation58_spill] sm:$0xff]  ;;  %v9729_v25 = vld [vmem:[#allocation51_spill] sm:$0xff] }
 0x421   : > { %v4761_v28 = vadd.f32 %v9705_v38, %v4624_v30  ;;  %v4327_v12 = vadd.f32 %v9706_v53, %v4190_v63  ;;  %v3957_v15 = vadd.f32 %v9711_v8, %v9710_v58  ;;  %v4197_v62 = vadd.f32 %v9713_v2, %v3946_v14  ;;  %v9293_v44 = vpop.f32.mrf.mxu1  ;;  %v9717_v30 = vld [vmem:[#allocation46_spill] sm:$0xff]  ;;  %v9724_v38 = vld [vmem:[#allocation24_spill] sm:$0xff] }
 0x422   : > { %v9237_v18 = vpop.f32.mrf.mxu0  ;;  %v4628_v61 = vadd.f32 %v9195_v5, %v4485_v16  ;;  %v4762_v55 = vadd.f32 %v9716_v7, %v4625_v40  ;;  %v4330_v0 = vadd.f32 %v9161_v11, %v4193_v43  ;;  %v4333_v5 = vadd.f32 %v9717_v30, %v4196_v27  ;;  %v9723_v35 = vld [vmem:[#allocation62_spill] sm:$0xff]  ;;  %v9733_v7 = vld [vmem:[#allocation52_spill] sm:$0xff] }
 0x423   : > { %v4488_v24 = vadd.f32 %v9718_v56, %v4329_v59  ;;  %v4486_v45 = vadd.f32 %v9719_v21, %v4327_v12  ;;  %v5032_v3 = vpop.f32.mrf.mxu1  ;;  %v9726_v16 = vld [vmem:[#allocation50_spill] sm:$0xff] }
 0x424   : > { %v9248_v23 = vpop.f32.mrf.mxu0  ;;  %v9730_v58 = vld [vmem:[#allocation42_spill] sm:$0xff] }
 0x425   : > { %v4629_v11 = vadd.f32 %v9724_v38, %v4486_v45  ;;  %v4492_v8 = vadd.f32 %v9730_v58, %v4333_v5  ;;  %v9734_v21 = vld [vmem:[#allocation30_spill] sm:$0xff]  ;;  %v9738_v38 = vld [vmem:[#allocation32_spill] sm:$0xff] }
 0x426   : > { %v9257_v10 = vpop.f32.mrf.mxu0  ;;  %v4334_v45 = vadd.f32 %v9734_v21, %v4197_v62 }
 0x428   : > { %v6798_v13 = vpop.f32.mrf.mxu0 }
 0x429   : > { %v4922_v51 = vadd.f32 %v6798_v13, %v4763_v36  ;;  %v9720_v36 = vld [vmem:[#allocation23_spill] sm:$0xff] }
 0x42a   : > { %v4857_v1 = vpop.f32.mrf.mxu0  ;;  %v9722_v13 = vld [vmem:[#allocation47_spill] sm:$0xff] }
 0x42b   : > { %v5065_v6 = vadd.f32 %v9189_v57, %v4922_v51  ;;  %v4920_v32 = vadd.f32 %v4857_v1, %v4761_v28  ;;  %v9715_v57 = vld [vmem:[#allocation18_spill] sm:$0xff]  ;;  %v4200_v40 = vadd.f32 %v9722_v13, %v3957_v15  ;;  %v4631_v51 = vadd.f32 %v9723_v35, %v4488_v24  ;;  %v9725_v28 = vld [vmem:[#allocation12_spill] sm:$0xff]  ;;  %v6827_v24 = vpop.f32.mrf.mxu1 }
 0x42c   : > { %v6799_v42 = vpop.f32.mrf.mxu0  ;;  %v3949_v49 = vadd.f32 %v9715_v57, %v9714_v20  ;;  %v4765_v53 = vadd.f32 %v9725_v28, %v4628_v61  ;;  %v4331_v1 = vadd.f32 %v9726_v16, %v4194_v19  ;;  %v9731_v20 = vld [vmem:[#allocation26_spill] sm:$0xff] }
 0x42d   : > { %v5063_v29 = vadd.f32 %v9193_v33, %v4920_v32  ;;  %v4923_v37 = vadd.f32 %v6799_v42, %v4764_v46  ;;  %v5088_v41 = vadd.f32 %v9287_v47, %v5065_v6  ;;  %v9721_v33 = vld [vmem:[#allocation60_spill] sm:$0xff]  ;;  %v9728_v6 = vld [vmem:[#allocation25_spill] sm:$0xff]  ;;  %v4489_v46 = vadd.f32 %v9729_v25, %v4330_v0  ;;  %v9737_v35 = vld [vmem:[#allocation14_spill] sm:$0xff] }
 0x42e   : > { %v4860_v34 = vpop.f32.mrf.mxu0  ;;  %v4767_v63 = vadd.f32 %v9721_v33, %v4630_v48  ;;  %v9727_v48 = vld [vmem:[#allocation45_spill] sm:$0xff]  ;;  %v9743_v25 = vld [vmem:[#allocation31_spill] sm:$0xff] }
 0x42f   : > { %v5066_v31 = vadd.f32 %v9720_v36, %v4923_v37  ;;  %v4921_v14 = vadd.f32 %v4860_v34, %v4762_v55  ;;  %v5086_v59 = vadd.f32 %v9287_v47, %v5063_v29  ;;  %v4634_v32 = vadd.f32 %v9728_v6, %v9727_v48  ;;  %v9732_v29 = vld [vmem:[#allocation19_spill] sm:$0xff]  ;;  %v9735_v34 = vld [vmem:[#allocation40_spill] sm:$0xff] }
 0x430   : > { %v6802_v43 = vpop.f32.mrf.mxu0  ;;  %v5104_v52 = vmax.f32 %v5088_v41, 0.0  ;;  %v4632_v57 = vadd.f32 %v9731_v20, %v4489_v46  ;;  %v4768_v37 = vadd.f32 %v9732_v29, %v4631_v51  ;;  %v4766_v55 = vadd.f32 %v9733_v7, %v4629_v11 }
 0x431   : > { %v5089_v12 = vadd.f32 %v9287_v47, %v5066_v31  ;;  %v5064_v22 = vadd.f32 %v9209_v17, %v4921_v14  ;;  %v4926_v27 = vadd.f32 %v6802_v43, %v4767_v63  ;;  %v5102_v30 = vmax.f32 %v5086_v59, 0.0  ;;  %v9739_v43 = vld [vmem:[#allocation16_spill] sm:$0xff] }
 0x432   : > { %v4873_v15 = vpop.f32.mrf.mxu0  ;;  %v4198_v41 = vadd.f32 %v9735_v34, %v3949_v49  ;;  %v4635_v36 = vadd.f32 %v9216_v50, %v4492_v8  ;;  %v4771_v51 = vadd.f32 %v9737_v35, %v4634_v32  ;;  %v4337_v11 = vadd.f32 %v9738_v38, %v4200_v40  ;;  %v9741_v40 = vld [vmem:[#allocation54_spill] sm:$0xff] }
 0x433   : > { %v5105_v2 = vmax.f32 %v5089_v12, 0.0  ;;  %v5087_v61 = vadd.f32 %v9287_v47, %v5064_v22  ;;  %v4924_v42 = vadd.f32 %v4873_v15, %v4765_v53  ;;  %v5069_v17 = vadd.f32 %v9221_v4, %v4926_v27  ;;  %v9736_v4 = vld [vmem:[#allocation59_spill] sm:$0xff]  ;;  %v9740_v12 = vld [vmem:[#allocation21_spill] sm:$0xff]  ;;  %v5035_v27 = vpop.f32.mrf.mxu1  ;;  %v9744_v15 = vld [vmem:[#allocation36_spill] sm:$0xff] }
 0x434   : > { %v6803_v19 = vpop.f32.mrf.mxu0  ;;  %v4490_v33 = vadd.f32 %v9736_v4, %v4331_v1  ;;  %v4335_v28 = vadd.f32 %v9739_v43, %v4198_v41  ;;  %v4769_v22 = vadd.f32 %v9740_v12, %v4632_v57  ;;  %v4493_v1 = vadd.f32 %v9741_v40, %v4334_v45  ;;  %v9747_v45 = vld [vmem:[#allocation49_spill] sm:$0xff] }
 0x435   : > { %v5119_v56 = vpack.c.bf16 %v5105_v2, %v5104_v52  ;;  %v5103_v0 = vmax.f32 %v5087_v61, 0.0  ;;  %v5067_v5 = vadd.f32 %v9234_v26, %v4924_v42  ;;  %v4927_v31 = vadd.f32 %v6803_v19, %v4768_v37  ;;  %v6830_v57 = vpop.f32.mrf.mxu1 }
 0x436   : > { %v4876_v14 = vpop.f32.mrf.mxu0  ;;  %v5092_v26 = vadd.f32 %v9287_v47, %v5069_v17  ;;  %v4633_v16 = vadd.f32 %v9225_v39, %v4490_v33  ;;  %v4496_v52 = vadd.f32 %v9744_v15, %v4337_v11  ;;  %v9745_v39 = vld [vmem:[#allocation44_spill] sm:$0xff]  ;;  %v4636_v17 = vadd.f32 %v9237_v18, %v4493_v1 }
 0x437   : > { %v5118_v63 = vpack.c.bf16 %v5103_v0, %v5102_v30  ;;  %v4925_v13 = vadd.f32 %v4876_v14, %v4766_v55  ;;  %v5070_v62 = vadd.f32 %v9252_v9, %v4927_v31  ;;  %v5090_v49 = vadd.f32 %v9287_v47, %v5067_v5  ;;  %v9742_v9 = vld [vmem:[#allocation20_spill] sm:$0xff]  ;;  %v9746_v30 = vld [vmem:[#allocation43_spill] sm:$0xff] }
 0x438   : > { %v6806_v53 = vpop.f32.mrf.mxu0  ;;  %v4772_v32 = vadd.f32 %v9742_v9, %v4635_v36  ;;  %v4494_v2 = vadd.f32 %v9745_v39, %v4335_v28  ;;  %v5108_v61 = vmax.f32 %v5092_v26, 0.0  ;;  %v5048_v36 = vpop.f32.mrf.mxu1 }
 0x439   : > { %v5068_v50 = vadd.f32 %v9270_v54, %v4925_v13  ;;  %v4930_v59 = vadd.f32 %v6806_v53, %v4771_v51  ;;  %6836 = vmatprep.mubr.msk.bf16.mxu0 %vm1633_vm9, %v5118_v63  ;;  %v5093_v48 = vadd.f32 %v9287_v47, %v5070_v62  ;;  %v4638_v54 = vadd.f32 %v9230_v60, %v9743_v25 }
 0x43a   : > { %v4889_v6 = vpop.f32.mrf.mxu0  ;;  %6837 = vmatmul.mubr.msk.bf16.vlgmr.msra.gmra.mxu0 %vm1633_vm9, %v5119_v56  ;;  %v5106_v29 = vmax.f32 %v5090_v49, 0.0  ;;  %v4639_v60 = vadd.f32 %v9248_v23, %v4496_v52  ;;  %v4637_v18 = vadd.f32 %v9257_v10, %v4494_v2  ;;  %v9748_v23 = vld [vmem:[#allocation29_spill] sm:$0xff]  ;;  %v6831_v28 = vpop.f32.mrf.mxu1  ;;  %v6165_v2 = vld [vmem:[%s7304_s15 + $0x48] sm:$0xff]  }
 0x43b   : > { %v5091_v46 = vadd.f32 %v9287_v47, %v5068_v50  ;;  %v5073_v58 = vadd.f32 %v9293_v44, %v4930_v59  ;;  %v4928_v8 = vadd.f32 %v4889_v6, %v4769_v22  ;;  %v5109_v42 = vmax.f32 %v5093_v48, 0.0  ;;  %v9750_v50 = vld [vmem:[#allocation35_spill] sm:$0xff] }
 0x43c   : > { %v6807_v20 = vpop.f32.mrf.mxu0  ;;  %v4770_v44 = vadd.f32 %v9746_v30, %v4633_v16  ;;  %v4775_v34 = vadd.f32 %v9747_v45, %v4638_v54  ;;  %v4774_v59 = vadd.f32 %v9750_v50, %v4637_v18  ;;  %v5051_v6 = vpop.f32.mrf.mxu1  ;;  %v6166_v45 = vld [vmem:[%s7304_s15 + $0x50] sm:$0xff]  }
 0x43d   : > { %v5107_v37 = vmax.f32 %v5091_v46, 0.0  ;;  %v4931_v19 = vadd.f32 %v6807_v20, %v4772_v32  ;;  %v5121_v7 = vpack.c.bf16 %v5109_v42, %v5108_v61  ;;  %v5071_v55 = vadd.f32 %v5032_v3, %v4928_v8  ;;  %v6164_v42 = vld [vmem:[%s7304_s15 + $0x40] sm:$0xff]   ;;  %v9751_v20 = vld [vmem:[#allocation41_spill] sm:$0xff] }
 0x43e   : > { %v4892_v56 = vpop.f32.mrf.mxu0  ;;  %v5096_v5 = vadd.f32 %v9287_v47, %v5073_v58  ;;  %v4773_v3 = vadd.f32 %v9748_v23, %v4636_v17  ;;  %v6084_v17 = vunpack.c.l.bf16 %v6165_v2  ;;  %v6081_v30 = vunpack.c.h.bf16 %v6164_v42 }
 0x43f   : > { %v5120_v0 = vpack.c.bf16 %v5107_v37, %v5106_v29  ;;  %v5074_v21 = vadd.f32 %v6827_v24, %v4931_v19  ;;  %v4929_v41 = vadd.f32 %v4892_v56, %v4770_v44  ;;  %v5094_v33 = vadd.f32 %v9287_v47, %v5071_v55  ;;  %v9749_v24 = vld [vmem:[#allocation22_spill] sm:$0xff]  ;;  %v6167_v44 = vld [vmem:[%s7304_s15 + $0x58] sm:$0xff]  }
 0x440   : > { %v6810_v31 = vpop.f32.mrf.mxu0  ;;  %v4776_v35 = vadd.f32 %v9749_v24, %v4639_v60  ;;  %v5112_v51 = vmax.f32 %v5096_v5, 0.0  ;;  %v6080_v37 = vunpack.c.l.bf16 %v6164_v42  ;;  %v6085_v19 = vunpack.c.h.bf16 %v6165_v2 }
 0x441   : > { %v5097_v14 = vadd.f32 %v9287_v47, %v5074_v21  ;;  %v4934_v4 = vadd.f32 %v6810_v31, %v4775_v34  ;;  %6840 = vmatprep.mubr.msk.bf16.mxu0 %vm1633_vm9, %v5120_v0  ;;  %v5072_v63 = vadd.f32 %v5035_v27, %v4929_v41  ;;  %v5110_v12 = vmax.f32 %v5094_v33, 0.0 }
 0x442   : > { %v4905_v13 = vpop.f32.mrf.mxu0  ;;  %6841 = vmatmul.mubr.msk.bf16.gmra.mxu0 %vm1633_vm9, %v5121_v7  ;;  %v6092_v41 = vunpack.c.l.bf16 %v6167_v44  ;;  %v6088_v23 = vunpack.c.l.bf16 %v6166_v45 }
 0x443   : > { %v5113_v38 = vmax.f32 %v5097_v14, 0.0  ;;  %v5077_v11 = vadd.f32 %v6830_v57, %v4934_v4  ;;  %v4932_v43 = vadd.f32 %v4905_v13, %v4773_v3  ;;  %v5095_v10 = vadd.f32 %v9287_v47, %v5072_v63 }
 0x444   : > { %v6811_v26 = vpop.f32.mrf.mxu0  ;;  %v6093_v3 = vunpack.c.h.bf16 %v6167_v44 }
 0x445   : > { %v5123_v62 = vpack.c.bf16 %v5113_v38, %v5112_v51  ;;  %v5075_v53 = vadd.f32 %v5048_v36, %v4932_v43  ;;  %v4935_v49 = vadd.f32 %v6811_v26, %v4776_v35  ;;  %v5111_v22 = vmax.f32 %v5095_v10, 0.0 }
 0x446   : > { %v4908_v27 = vpop.f32.mrf.mxu0  ;;  %v5100_v16 = vadd.f32 %v9287_v47, %v5077_v11  ;;  %v6089_v43 = vunpack.c.h.bf16 %v6166_v45 }
 0x447   : > { %v5078_v40 = vadd.f32 %v6831_v28, %v4935_v49  ;;  %v4933_v1 = vadd.f32 %v4908_v27, %v4774_v59  ;;  %v5122_v48 = vpack.c.bf16 %v5111_v22, %v5110_v12  ;;  %v5098_v9 = vadd.f32 %v9287_v47, %v5075_v53  ;;  %v6169_v53 = vld [vmem:[%s7304_s15 + $0x68] sm:$0xff]   ;;  %v6168_v22 = vld [vmem:[%s7304_s15 + $0x60] sm:$0xff]  }
 0x448   : > { %v5116_v54 = vmax.f32 %v5100_v16, 0.0  ;;  %v6100_v16 = vunpack.c.l.bf16 %v6169_v53 }
 0x449   : > { %v5101_v32 = vadd.f32 %v9287_v47, %v5078_v40  ;;  %v5076_v25 = vadd.f32 %v5051_v6, %v4933_v1  ;;  %6844 = vmatprep.mubr.msk.bf16.mxu0 %vm1633_vm9, %v5122_v48  ;;  %v5114_v8 = vmax.f32 %v5098_v9, 0.0 }
 0x44a   : > { %6845 = vmatmul.mubr.msk.bf16.gmra.mxu0 %vm1633_vm9, %v5123_v62 }
 0x44b   : > { %v5117_v46 = vmax.f32 %v5101_v32, 0.0  ;;  %v5099_v58 = vadd.f32 %v9287_v47, %v5076_v25  ;;  %v6096_v32 = vunpack.c.l.bf16 %v6168_v22  ;;  %v6101_v25 = vunpack.c.h.bf16 %v6169_v53 }
 0x44d   : > { %v5125_v15 = vpack.c.bf16 %v5117_v46, %v5116_v54  ;;  %v5115_v52 = vmax.f32 %v5099_v58, 0.0 }
 0x44f   : > { %v5124_v39 = vpack.c.bf16 %v5115_v52, %v5114_v8  ;;  %v6171_v52 = vld [vmem:[%s7304_s15 + $0x78] sm:$0xff]  }
 0x451   : > { %6848 = vmatprep.mubr.msk.bf16.mxu0 %vm1633_vm9, %v5124_v39 }
 0x452   : > { %6849 = vmatmul.mubr.msk.bf16.gmra.mxu0 %vm1633_vm9, %v5125_v15  ;;  %v6097_v15 = vunpack.c.h.bf16 %v6168_v22 }
 0x4fa   : > { %v6838_v61 = vpop.f32.mrf.mxu0 }
 0x4fb   : > { %v5216_v57 = vadd.f32 %v6838_v61, %v9751_v20 }
 0x4fc   : > { %v5207_v29 = vpop.f32.mrf.mxu0 }
 0x4fd   : > { %v5208_v47 = vadd.f32 %v9751_v20, %v5207_v29  ;;  %v5307_v7 = vadd.f32 %v6084_v17, %v5216_v57  ;;  %v6170_v57 = vld [vmem:[%s7304_s15 + $0x70] sm:$0xff]   ;;  %v6108_v29 = vunpack.c.l.bf16 %v6171_v52  ;;  %s6005_s15 = sshll.u32 %s7197_s28, 11  ;;  %s7133_s28 = smov [#allocation8]  }
 0x4fe   : > { %v6839_v60 = vpop.f32.mrf.mxu0  ;;  %s9401_s19 = scalar_lea.hbm %s9455_s7, %s6005_s15  ;;  %s7062_s30 = sshll.u32 %s7133_s28, 4  ;;  %s7063_s30 = int_to_ptr.vmem [resolvable:$false] %s7062_s30 }
 0x4ff   : > { %v5219_v55 = vadd.f32 %v6839_v60, %v9751_v20  ;;  %v5305_v0 = vadd.f32 %v6080_v37, %v5208_v47  ;;  %v5323_v36 = vmax.f32 %v5307_v7, 0.0  ;;  %s7064_s16 = scalar_lea.vmem %s7063_s30, 4096  ;;  %p7065_p10 = scmp.lt.s32.totalorder %s9403_s12, %s7063_s30 }
 0x500   : > { %v5210_v56 = vpop.f32.mrf.mxu0  ;;  %p7066_p12 = scmp.lt.s32.totalorder %s7064_s16, %s7058_s20 }
 0x501   : > { %v5308_v5 = vadd.f32 %v6085_v19, %v5219_v55  ;;  %v5211_v21 = vadd.f32 %v9751_v20, %v5210_v56  ;;  %v5321_v33 = vmax.f32 %v5305_v0, 0.0  ;;  %v6104_v55 = vunpack.c.l.bf16 %v6170_v57 }
 0x502   : > { %v6842_v34 = vpop.f32.mrf.mxu0  ;;  %p7067_p13 = por %p7066_p12, %p7065_p10 }
 0x503   : > { %v5324_v31 = vmax.f32 %v5308_v5, 0.0  ;;  %v5306_v18 = vadd.f32 %v6081_v30, %v5211_v21  ;;  %v5232_v14 = vadd.f32 %v6842_v34, %v9751_v20  ;;  %v6109_v30 = vunpack.c.h.bf16 %v6171_v52 }
 0x504   : > { %v5223_v4 = vpop.f32.mrf.mxu0  ;;  %p7068_p0 = pnand %p7067_p13, %p7061_p9 }
 0x505   : > { %v6118_v63 = vpack.c.bf16 %v5324_v31, %v5323_v36  ;;  %v5322_v13 = vmax.f32 %v5306_v18, 0.0  ;;  %v5224_v24 = vadd.f32 %v9751_v20, %v5223_v4  ;;  %v5311_v38 = vadd.f32 %v6092_v41, %v5232_v14 }
 0x506   : > { %v6843_v35 = vpop.f32.mrf.mxu0  ;;  %v6105_v36 = vunpack.c.h.bf16 %v6170_v57 }
 0x507   : > { %6173 = vst [vmem:[%s9061_s29 + $0x48] sm:$0xff] %v6118_v63   ;;  %v6113_v51 = vpack.c.bf16 %v5322_v13, %v5321_v33  ;;  %v5235_v11 = vadd.f32 %v6843_v35, %v9751_v20  ;;  %v5309_v28 = vadd.f32 %v6088_v23, %v5224_v24  ;;  %v5327_v49 = vmax.f32 %v5311_v38, 0.0 }
 0x508   : > { %v5226_v10 = vpop.f32.mrf.mxu0 }
 0x509   : > { %6172 = vst [vmem:[%s9061_s29 + $0x40] sm:$0xff] %v6113_v51   ;;  %v5312_v26 = vadd.f32 %v6093_v3, %v5235_v11  ;;  %v5227_v62 = vadd.f32 %v9751_v20, %v5226_v10  ;;  %v5325_v40 = vmax.f32 %v5309_v28, 0.0 }
 0x50a   : > { %v6846_v12 = vpop.f32.mrf.mxu0 }
 0x50b   : > { %v5328_v50 = vmax.f32 %v5312_v26, 0.0  ;;  %v5310_v59 = vadd.f32 %v6089_v43, %v5227_v62  ;;  %v5248_v27 = vadd.f32 %v6846_v12, %v9751_v20 }
 0x50c   : > { %v5239_v6 = vpop.f32.mrf.mxu0 }
 0x50d   : > { %v6128_v1 = vpack.c.bf16 %v5328_v50, %v5327_v49  ;;  %v5326_v48 = vmax.f32 %v5310_v59, 0.0  ;;  %v5240_v9 = vadd.f32 %v9751_v20, %v5239_v6  ;;  %v5315_v58 = vadd.f32 %v6100_v16, %v5248_v27 }
 0x50e   : > { %v6847_v46 = vpop.f32.mrf.mxu0 }
 0x50f   : > { %6175 = vst [vmem:[%s9061_s29 + $0x58] sm:$0xff] %v6128_v1   ;;  %v6123_v54 = vpack.c.bf16 %v5326_v48, %v5325_v40  ;;  %v5251_v8 = vadd.f32 %v6847_v46, %v9751_v20  ;;  %v5313_v2 = vadd.f32 %v6096_v32, %v5240_v9  ;;  %v5331_v47 = vmax.f32 %v5315_v58, 0.0 }
 0x510   : > { %v5242_v39 = vpop.f32.mrf.mxu0 }
 0x511   : > { %6174 = vst [vmem:[%s9061_s29 + $0x50] sm:$0xff] %v6123_v54   ;;  %v5316_v61 = vadd.f32 %v6101_v25, %v5251_v8  ;;  %v5243_v42 = vadd.f32 %v9751_v20, %v5242_v39  ;;  %v5329_v44 = vmax.f32 %v5313_v2, 0.0 }
 0x512   : > { %v6850_v17 = vpop.f32.mrf.mxu0 }
 0x513   : > { %v5332_v37 = vmax.f32 %v5316_v61, 0.0  ;;  %v5314_v19 = vadd.f32 %v6097_v15, %v5243_v42  ;;  %v5264_v60 = vadd.f32 %v6850_v17, %v9751_v20 }
 0x514   : > { %v5255_v7 = vpop.f32.mrf.mxu0 }
 0x515   : > { %v6138_v56 = vpack.c.bf16 %v5332_v37, %v5331_v47  ;;  %v5330_v0 = vmax.f32 %v5314_v19, 0.0  ;;  %v5256_v5 = vadd.f32 %v9751_v20, %v5255_v7  ;;  %v5319_v34 = vadd.f32 %v6108_v29, %v5264_v60 }
 0x516   : > { %v6851_v21 = vpop.f32.mrf.mxu0 }
 0x517   : > { %6177 = vst [vmem:[%s9061_s29 + $0x68] sm:$0xff] %v6138_v56   ;;  %v6133_v45 = vpack.c.bf16 %v5330_v0, %v5329_v44  ;;  %v5267_v41 = vadd.f32 %v6851_v21, %v9751_v20  ;;  %v5317_v18 = vadd.f32 %v6104_v55, %v5256_v5  ;;  %v5335_v23 = vmax.f32 %v5319_v34, 0.0 }
 0x518   : > { %v5258_v31 = vpop.f32.mrf.mxu0 }
 0x519   : > { %6176 = vst [vmem:[%s9061_s29 + $0x60] sm:$0xff] %v6133_v45   ;;  %v5320_v14 = vadd.f32 %v6109_v30, %v5267_v41  ;;  %v5259_v4 = vadd.f32 %v9751_v20, %v5258_v31  ;;  %v5333_v63 = vmax.f32 %v5317_v18, 0.0 }
 0x51b   : > { %v5336_v3 = vmax.f32 %v5320_v14, 0.0  ;;  %v5318_v33 = vadd.f32 %v6105_v36, %v5259_v4 }
 0x51d   : > { %v6148_v13 = vpack.c.bf16 %v5336_v3, %v5335_v23  ;;  %v5334_v24 = vmax.f32 %v5318_v33, 0.0 }
 0x51f   : > { %6179 = vst [vmem:[%s9061_s29 + $0x78] sm:$0xff] %v6148_v13   ;;  %v6143_v20 = vpack.c.bf16 %v5334_v24, %v5333_v63 }
 0x521   : > { %6178 = vst [vmem:[%s9061_s29 + $0x70] sm:$0xff] %v6143_v20  }
 0x522   : > { %7071 = shalt.err (!%p7068_p0)
}
 0x523   : > { %s7072_s11 = scalar_lea.hbm %s9401_s19, 2048  ;;  %s7076_s3 = scalar_lea.hbm %s9455_s7, 4096 }
 0x524   : > { %p7073_p5 = scmp.ne.s32.totalorder %s9401_s19, %s7072_s11  ;;  %p7077_p4 = scmp.lt.s32.totalorder %s9401_s19, %s9455_s7 }
 0x525   : > { %p7078_p6 = scmp.lt.s32.totalorder %s7076_s3, %s7072_s11 }
 0x526   : > { %p7074_p2 = pnand %p7073_p5, %p9752_p11 }
 0x527   : > { %p7079_p8 = por %p7078_p6, %p7077_p4 }
 0x528   : > { %p7075_p1 = pneg %p7074_p2 }
 0x52a   : > { %p7080_p3 = pnand %p7079_p8, %p7075_p1 }
 0x52c   : > { %7083 = shalt.err (!%p7080_p3)
}
 0x52d   : > { %s7134_s10 = smov 64   ;;  %s7135_s9 = smov 4  }
 0x52e   : > { %6862 = dma.vmem_to_hbm [thread:$0]  (%p9752_p11), %s9403_s12, 2048, %s9401_s19, %s5420_s14, %s7134_s10, %s7134_s10, %s7135_s9  }
 0x52f PF: > { %s5448_s20 = sand.u32 1, %s7114_s24   ;;  %p9753_p7 = scmp.ne.s32.totalorder %s9513_s8, 0 }
 0x530   : > { %p9754_p9 = scmp.ge.s32.totalorder %s7126_s27, 2  ;;  %s5449_s28 = scalar_lea.sflag [#allocation5], %s5448_s20 }
 0x532   : > { %p6873_p10 = pnand %p9754_p9, %p9753_p7 }
 0x534   : > { %p6874_p12 = pneg %p6873_p10 }
 0x536   : > { %7109 = dma.done.wait (%p6874_p12), %s5449_s28, 2048  }
 0x537   : > { %7111 = vsyncadd (%p6874_p12), %s5449_s28, 4294965248  ;;  %p21_p13 = scmp.ge.s32.totalorder %s7230_s13, 4   ;;  %s9755_s24 = smov %s7118_s25 }
 0x538   : > { %s9756_s25 = smov %s7122_s26  ;;  %s9757_s26 = smov %s7250_s21 }
 0x539   : > { %s9758_s27 = smov %s7230_s13  ;;  %23 = sbr.rel (!%p21_p13) target bundleno = 8 (0x8), region = 113 }
 0x53e   :  { %5454 = vsyncpa [#allocation4], 1 }
 0x53f   :  { %5456 = vsyncpa [#allocation4 + $0x1], 1 }
 0x540   :  { %5457 = vsyncpa [#allocation7], 1 }
 0x541   :  { %5458 = vsyncpa [#allocation5], 1 }
 0x542   :  { %5460 = vsyncpa [#allocation5 + $0x1], 1 }

</bundles_post_ra>
